<compile_context>
chip_gen: v6e
topology: v6e:2x2x1
jax: 0.10.0
libtpu: 0.0.40
codegen_flags: <defaults>
</compile_context>

<pallas_src>
import functools
import re

import jax
import jax.numpy as jnp
import numpy as np
from jax.experimental import pallas as pl
from jax.experimental.pallas import tpu as pltpu

F_PAD = 128   # lane-padded feature width (>= max(noFeatures, 2))
IN_DIM = 3    # (x, y, t)


def _round_up(v, m):
    return ((v + m - 1) // m) * m


def _cdiv(a, b):
    return (a + b - 1) // b


def _tpu_generation():
    """Best-effort TPU generation from device_kind ('TPU v5 lite' -> 5, ...)."""
    try:
        kind = jax.devices()[0].device_kind
    except Exception:
        return 0
    m = re.search(r"(\d+)", kind)
    return int(m.group(1)) if m else 0


def _tanh_dtype_for(matmul_dtype, low_precision_tanh=None):
    """bf16 tanh only where the EUP/VPU handle bf16 natively (v6e / v7x)."""
    gen = _tpu_generation()
    if low_precision_tanh is None:
        low_precision_tanh = gen >= 6
    if low_precision_tanh and jnp.dtype(matmul_dtype) == jnp.dtype(jnp.bfloat16):
        return jnp.bfloat16
    return jnp.float32


def _mlp_kernel(x_ref, w1_ref, b1_ref, w_ref, b_ref, o_ref, *,
                num_rest, mm_dtype, tanh_dtype):
    # x_ref : (tN, 3) f32          unpadded inputs
    # w1_ref: (3, F_PAD) f32       layer-1 weights with lb/ub affine folded in
    # b1_ref: (1, F_PAD) f32       layer-1 folded bias
    # w_ref : (num_rest, F_PAD, F_PAD) mm_dtype   remaining layer weights
    # b_ref : (num_rest, 1, F_PAD) f32            remaining biases
    # o_ref : (tN, F_PAD) f32
    x = x_ref[...]
    w1 = w1_ref[...]

    # Layer 1 on the VPU: three broadcast FMAs over the real input columns.
    pre = (x[:, 0:1] * w1[0:1, :]
           + x[:, 1:2] * w1[1:2, :]
           + x[:, 2:3] * w1[2:3, :]
           + b1_ref[...])
    # Activation is stored in mm_dtype between layers (cuts VMEM traffic);
    # tanh itself runs in tanh_dtype (bf16 on v6e/v7x, f32 on v5e).
    h = jnp.tanh(pre.astype(tanh_dtype)).astype(mm_dtype)

    # Hidden layers: MXU matmuls (mm_dtype inputs, f32 accumulate).
    # Statically unrolled so the LLO scheduler interleaves MXU and EUP work.
    for l in range(num_rest - 1):
        acc = jnp.dot(h, w_ref[l], preferred_element_type=jnp.float32)
        h = jnp.tanh((acc + b_ref[l]).astype(tanh_dtype)).astype(mm_dtype)

    # Final Linear (no activation).  Padded lanes carry zero weights/biases,
    # so lanes >= out_dim stay exactly zero.
    o_ref[...] = (jnp.dot(h, w_ref[num_rest - 1],
                          preferred_element_type=jnp.float32)
                  + b_ref[num_rest - 1])


def schrodinger_forward(x, lb, ub, weights, biases, *,
                        tile_n=1024, matmul_dtype=jnp.bfloat16,
                        low_precision_tanh=None):
    """x: [N, 3] f32. weights[i]: (in_i, out_i); biases[i]: (out_i,).
    Returns [N, 2] f32, matching SchrodingerNet.forward.

    matmul_dtype=jnp.float32 gives an exact-f32 path (recommended if this
    forward feeds PDE-residual autodiff in training)."""
    n, in_dim = x.shape
    assert in_dim == IN_DIM
    num_layers = len(weights)
    num_rest = num_layers - 1
    out_dim = int(weights[-1].shape[1])
    no_features = int(weights[0].shape[1])
    assert no_features <= F_PAD and out_dim <= F_PAD

    lb = jnp.asarray(lb, jnp.float32)
    ub = jnp.asarray(ub, jnp.float32)
    if bool(jnp.any(ub == lb)):
        raise ValueError("ub == lb along some coordinate; normalization "
                         "would divide by zero (same failure as PyTorch).")

    gen = _tpu_generation()
    mm_dtype = jnp.dtype(matmul_dtype)
    tanh_dtype = _tanh_dtype_for(mm_dtype, low_precision_tanh)
    num_cores = 2 if gen >= 7 else 1      # v7x: 2 TensorCores per chip

    # ---- fold the input normalization into layer 1 (host side, f32) -------
    s = 2.0 / (ub - lb)                     # t = x*s + c
    c = -2.0 * lb / (ub - lb) - 1.0
    w1 = jnp.asarray(weights[0], jnp.float32)          # (3, noF)
    b1 = jnp.asarray(biases[0], jnp.float32)           # (noF,)
    w1_fold = s[:, None] * w1                          # diag(s) @ W1
    b1_fold = c @ w1 + b1                              # c @ W1 + b1

    w1_p = jnp.zeros((IN_DIM, F_PAD), jnp.float32).at[:, :no_features].set(w1_fold)
    b1_p = jnp.zeros((1, F_PAD), jnp.float32).at[0, :no_features].set(b1_fold)

    # ---- remaining layers: stacked, lane-padded; weights in mm dtype -------
    w_stack = jnp.zeros((num_rest, F_PAD, F_PAD), jnp.float32)
    b_stack = jnp.zeros((num_rest, 1, F_PAD), jnp.float32)
    for i in range(num_rest):
        w = jnp.asarray(weights[i + 1], jnp.float32)
        b = jnp.asarray(biases[i + 1], jnp.float32)
        fi, fo = w.shape
        w_stack = w_stack.at[i, :fi, :fo].set(w)
        b_stack = b_stack.at[i, 0, :fo].set(b)
    w_stack = w_stack.astype(mm_dtype)

    # ---- batch tiling: balanced tiles, grid >= num_cores, VMEM-budgeted ----
    mm_bytes = int(mm_dtype.itemsize)
    # Per-row pipelined VMEM (x block is lane-padded to 128 in VMEM!):
    #   2x x block + 2x out block + ~3 activation temporaries.
    per_row_bytes = 2 * 128 * 4 + 2 * F_PAD * 4 + 3 * F_PAD * max(mm_bytes, 4)
    weight_bytes = 2 * (w1_p.size * 4 + b1_p.size * 4
                        + int(w_stack.size) * mm_bytes + b_stack.size * 4)
    vmem_cap = (48 << 20) if gen >= 7 else (100 << 20)   # v7x VMEM is 64 MiB/TC
    tile_budget = max(256, ((vmem_cap - weight_bytes - (4 << 20))
                            // per_row_bytes) // 8 * 8)

    tile_n_eff = max(8, min(int(tile_n), tile_budget))
    num_tiles = max(num_cores, _cdiv(n, tile_n_eff))
    tile = _round_up(_cdiv(n, num_tiles), 8)             # balanced -> tiny padding
    grid_steps = _cdiv(n, tile)
    n_pad = grid_steps * tile
    x_p = jnp.zeros((n_pad, IN_DIM), jnp.float32).at[:n].set(x)

    vmem_est = grid_steps and (tile * per_row_bytes + weight_bytes)
    vmem_limit = int(min(vmem_cap, max(32 << 20, int(vmem_est * 1.5))))

    kernel = functools.partial(_mlp_kernel, num_rest=num_rest,
                               mm_dtype=mm_dtype, tanh_dtype=tanh_dtype)

    # Advisory cost estimate: the kernel is compute-bound.
    flops = 2 * n_pad * (IN_DIM * F_PAD + num_rest * F_PAD * F_PAD)
    transcendentals = n_pad * F_PAD * num_rest          # tanh over padded lanes
    bytes_accessed = (x_p.size * 4 + n_pad * F_PAD * 4
                      + w1_p.size * 4 + b1_p.size * 4
                      + int(w_stack.size) * mm_bytes + b_stack.size * 4)

    out_p = pl.pallas_call(
        kernel,
        out_shape=jax.ShapeDtypeStruct((n_pad, F_PAD), jnp.float32),
        grid_spec=pltpu.PrefetchScalarGridSpec(
            num_scalar_prefetch=0,
            grid=(grid_steps,),
            in_specs=[
                pl.BlockSpec((tile, IN_DIM), lambda i: (i, 0)),
                pl.BlockSpec((IN_DIM, F_PAD), lambda i: (0, 0)),
                pl.BlockSpec((1, F_PAD), lambda i: (0, 0)),
                # constant index_map -> weight/bias stacks stay VMEM-resident
                pl.BlockSpec((num_rest, F_PAD, F_PAD), lambda i: (0, 0, 0)),
                pl.BlockSpec((num_rest, 1, F_PAD), lambda i: (0, 0, 0)),
            ],
            out_specs=pl.BlockSpec((tile, F_PAD), lambda i: (i, 0)),
        ),
        compiler_params=pltpu.CompilerParams(
            dimension_semantics=("parallel",),
            vmem_limit_bytes=vmem_limit,
        ),
        cost_estimate=pl.CostEstimate(
            flops=flops,
            transcendentals=transcendentals,
            bytes_accessed=bytes_accessed,
        ),
    )(x_p, w1_p, b1_p, w_stack, b_stack)

    # NOTE: downstream consumers that can read the padded (n_pad, 128) buffer
    # directly can skip this slice (saves one small HBM pass).
    return out_p[:n, :out_dim]


def init_params(key, no_layers=8, no_features=100, in_dim=3, out_dim=2):
    """Deterministic xavier-normal weights (bias = 0), stored as (in, out)."""
    dims = [in_dim] + [no_features] * (no_layers + 1) + [out_dim]
    weights, biases = [], []
    for i in range(len(dims) - 1):
        fi, fo = dims[i], dims[i + 1]
        key, sub = jax.random.split(key)
        std = float(np.sqrt(2.0 / (fi + fo)))  # xavier_normal, gain=1
        weights.append(std * jax.random.normal(sub, (fi, fo), jnp.float32))
        biases.append(jnp.zeros((fo,), jnp.float32))
    return weights, biases


def reference_forward(x, lb, ub, weights, biases,
                      matmul_dtype=jnp.float32, tanh_dtype=jnp.float32):
    """Pure-JAX reference.  matmul_dtype / tanh_dtype mirror the kernel's
    precision choices (f32 accumulation, f32 bias add) for matched comparison;
    defaults give the exact PyTorch-module (f32) semantics."""
    h = 2.0 * (x - lb) / (ub - lb) - 1.0
    pre = h @ weights[0] + biases[0]                       # layer 1 in f32
    h = jnp.tanh(pre.astype(tanh_dtype)).astype(matmul_dtype)
    for w, b in zip(weights[1:-1], biases[1:-1]):
        acc = jnp.dot(h, w.astype(matmul_dtype),
                      preferred_element_type=jnp.float32)
        h = jnp.tanh((acc + b).astype(tanh_dtype)).astype(matmul_dtype)
    return (jnp.dot(h, weights[-1].astype(matmul_dtype),
                    preferred_element_type=jnp.float32) + biases[-1])


if __name__ == "__main__":
    key = jax.random.PRNGKey(0)

    # module-style config: lb/ub for (x, y, t), 8 hidden layers x 100 features
    lb = jnp.array([-3.0, -3.0, 0.0], jnp.float32)
    ub = jnp.array([3.0, 3.0, 1.0], jnp.float32)
    weights, biases = init_params(key, no_layers=8, no_features=100)

    # small batch of (x, y, t) collocation points
    key, sub = jax.random.split(key)
    n = 256
    x = jax.random.uniform(
        sub, (n, 3), jnp.float32,
        minval=jnp.array([-3.0, -3.0, 0.0]),
        maxval=jnp.array([3.0, 3.0, 1.0]),
    )

    mm_dtype = jnp.bfloat16
    tanh_dtype = _tanh_dtype_for(mm_dtype)   # bf16 on v6e/v7x, f32 on v5e

    out = schrodinger_forward(x, lb, ub, weights, biases,
                              tile_n=1024, matmul_dtype=mm_dtype)
    out = jax.block_until_ready(out)

    # 1) matched-precision check (same MXU/tanh dtypes as the kernel) -- tight.
    ref_matched = reference_forward(x, lb, ub, weights, biases,
                                    mm_dtype, tanh_dtype)
    np.testing.assert_allclose(np.asarray(out), np.asarray(ref_matched),
                               rtol=2e-2, atol=2e-2)
    # 2) full-f32 module semantics -- loose bound on bf16 rounding.
    ref_f32 = reference_forward(x, lb, ub, weights, biases)
    np.testing.assert_allclose(np.asarray(out), np.asarray(ref_f32),
                               rtol=5e-2, atol=5e-2)

    # TODO(synk): net_uv/net_pde/loss_* (autograd PDE residuals, losses) are
    # training-side code outside forward() and are not translated here.

    print("KERNEL_OK")
</pallas_src>

<mosaic_0001>
module attributes {stable_mosaic.version = 11 : i64} {
  func.func @_mlp_kernel(%arg0: i32, %arg1: memref<256x3xf32, #tpu.memory_space<vmem>>, %arg2: memref<3x128xf32, #tpu.memory_space<vmem>>, %arg3: memref<1x128xf32, #tpu.memory_space<vmem>>, %arg4: memref<9x128x128xbf16, #tpu.memory_space<vmem>>, %arg5: memref<9x1x128xf32, #tpu.memory_space<vmem>>, %arg6: memref<256x128xf32, #tpu.memory_space<vmem>>) attributes {dimension_semantics = [#tpu.dimension_semantics<parallel>], iteration_bounds = array<i64: 1>, scalar_prefetch = 0 : i64, scratch_operands = 0 : i64, tpu.core_type = #tpu.core_type<tc>, window_params = [{transform_indices = @transform_0, window_bounds = array<i64: 256, 3>}, {pipeline_mode = #tpu.pipeline_mode<synchronous>, transform_indices = @transform_1, window_bounds = array<i64: 3, 128>}, {pipeline_mode = #tpu.pipeline_mode<synchronous>, transform_indices = @transform_2, window_bounds = array<i64: 1, 128>}, {pipeline_mode = #tpu.pipeline_mode<synchronous>, transform_indices = @transform_3, window_bounds = array<i64: 9, 128, 128>}, {pipeline_mode = #tpu.pipeline_mode<synchronous>, transform_indices = @transform_4, window_bounds = array<i64: 9, 1, 128>}, {transform_indices = @transform_5, window_bounds = array<i64: 256, 128>}]} {
    %c0 = arith.constant 0 : index
    %c0_0 = arith.constant 0 : index
    %0 = vector.load %arg1[%c0, %c0_0] : memref<256x3xf32, #tpu.memory_space<vmem>>, vector<256x3xf32>
    %c0_1 = arith.constant 0 : index
    %c0_2 = arith.constant 0 : index
    %1 = vector.load %arg2[%c0_1, %c0_2] : memref<3x128xf32, #tpu.memory_space<vmem>>, vector<3x128xf32>
    %2 = vector.extract_strided_slice %0 {offsets = [0, 0], sizes = [256, 1], strides = [1, 1]} : vector<256x3xf32> to vector<256x1xf32>
    %3 = vector.extract_strided_slice %1 {offsets = [0, 0], sizes = [1, 128], strides = [1, 1]} : vector<3x128xf32> to vector<1x128xf32>
    %4 = vector.broadcast %2 : vector<256x1xf32> to vector<256x128xf32>
    %5 = vector.broadcast %3 : vector<1x128xf32> to vector<256x128xf32>
    %6 = arith.mulf %4, %5 : vector<256x128xf32>
    %7 = vector.extract_strided_slice %0 {offsets = [0, 1], sizes = [256, 1], strides = [1, 1]} : vector<256x3xf32> to vector<256x1xf32>
    %8 = vector.extract_strided_slice %1 {offsets = [1, 0], sizes = [1, 128], strides = [1, 1]} : vector<3x128xf32> to vector<1x128xf32>
    %9 = vector.broadcast %7 : vector<256x1xf32> to vector<256x128xf32>
    %10 = vector.broadcast %8 : vector<1x128xf32> to vector<256x128xf32>
    %11 = arith.mulf %9, %10 : vector<256x128xf32>
    %12 = arith.addf %6, %11 : vector<256x128xf32>
    %13 = vector.extract_strided_slice %0 {offsets = [0, 2], sizes = [256, 1], strides = [1, 1]} : vector<256x3xf32> to vector<256x1xf32>
    %14 = vector.extract_strided_slice %1 {offsets = [2, 0], sizes = [1, 128], strides = [1, 1]} : vector<3x128xf32> to vector<1x128xf32>
    %15 = vector.broadcast %13 : vector<256x1xf32> to vector<256x128xf32>
    %16 = vector.broadcast %14 : vector<1x128xf32> to vector<256x128xf32>
    %17 = arith.mulf %15, %16 : vector<256x128xf32>
    %18 = arith.addf %12, %17 : vector<256x128xf32>
    %c0_3 = arith.constant 0 : index
    %c0_4 = arith.constant 0 : index
    %19 = vector.load %arg3[%c0_3, %c0_4] : memref<1x128xf32, #tpu.memory_space<vmem>>, vector<1x128xf32>
    %20 = vector.broadcast %19 : vector<1x128xf32> to vector<256x128xf32>
    %21 = arith.addf %18, %20 : vector<256x128xf32>
    %22 = math.tanh %21 : vector<256x128xf32>
    %23 = arith.truncf %22 : vector<256x128xf32> to vector<256x128xbf16>
    %c0_5 = arith.constant 0 : index
    %c0_6 = arith.constant 0 : index
    %c0_7 = arith.constant 0 : index
    %24 = vector.load %arg4[%c0_5, %c0_6, %c0_7] : memref<9x128x128xbf16, #tpu.memory_space<vmem>>, vector<1x128x128xbf16>
    %25 = vector.shape_cast %24 : vector<1x128x128xbf16> to vector<128x128xbf16>
    %cst = arith.constant dense<0.000000e+00> : vector<256x128xf32>
    %26 = tpu.matmul %23, %25, %cst {dimension_numbers = #tpu.dot_dimension_numbers<[1], [0], [0], [1], [0, 0, 1, 1], [], []>} : vector<256x128xbf16>, vector<128x128xbf16>, vector<256x128xf32> -> vector<256x128xf32>
    %c0_8 = arith.constant 0 : index
    %c0_9 = arith.constant 0 : index
    %c0_10 = arith.constant 0 : index
    %27 = vector.load %arg5[%c0_8, %c0_9, %c0_10] : memref<9x1x128xf32, #tpu.memory_space<vmem>>, vector<1x1x128xf32>
    %28 = vector.shape_cast %27 : vector<1x1x128xf32> to vector<1x128xf32>
    %29 = vector.broadcast %28 : vector<1x128xf32> to vector<256x128xf32>
    %30 = arith.addf %26, %29 : vector<256x128xf32>
    %31 = math.tanh %30 : vector<256x128xf32>
    %32 = arith.truncf %31 : vector<256x128xf32> to vector<256x128xbf16>
    %c1 = arith.constant 1 : index
    %c0_11 = arith.constant 0 : index
    %c0_12 = arith.constant 0 : index
    %33 = vector.load %arg4[%c1, %c0_11, %c0_12] : memref<9x128x128xbf16, #tpu.memory_space<vmem>>, vector<1x128x128xbf16>
    %34 = vector.shape_cast %33 : vector<1x128x128xbf16> to vector<128x128xbf16>
    %cst_13 = arith.constant dense<0.000000e+00> : vector<256x128xf32>
    %35 = tpu.matmul %32, %34, %cst_13 {dimension_numbers = #tpu.dot_dimension_numbers<[1], [0], [0], [1], [0, 0, 1, 1], [], []>} : vector<256x128xbf16>, vector<128x128xbf16>, vector<256x128xf32> -> vector<256x128xf32>
    %c1_14 = arith.constant 1 : index
    %c0_15 = arith.constant 0 : index
    %c0_16 = arith.constant 0 : index
    %36 = vector.load %arg5[%c1_14, %c0_15, %c0_16] : memref<9x1x128xf32, #tpu.memory_space<vmem>>, vector<1x1x128xf32>
    %37 = vector.shape_cast %36 : vector<1x1x128xf32> to vector<1x128xf32>
    %38 = vector.broadcast %37 : vector<1x128xf32> to vector<256x128xf32>
    %39 = arith.addf %35, %38 : vector<256x128xf32>
    %40 = math.tanh %39 : vector<256x128xf32>
    %41 = arith.truncf %40 : vector<256x128xf32> to vector<256x128xbf16>
    %c2 = arith.constant 2 : index
    %c0_17 = arith.constant 0 : index
    %c0_18 = arith.constant 0 : index
    %42 = vector.load %arg4[%c2, %c0_17, %c0_18] : memref<9x128x128xbf16, #tpu.memory_space<vmem>>, vector<1x128x128xbf16>
    %43 = vector.shape_cast %42 : vector<1x128x128xbf16> to vector<128x128xbf16>
    %cst_19 = arith.constant dense<0.000000e+00> : vector<256x128xf32>
    %44 = tpu.matmul %41, %43, %cst_19 {dimension_numbers = #tpu.dot_dimension_numbers<[1], [0], [0], [1], [0, 0, 1, 1], [], []>} : vector<256x128xbf16>, vector<128x128xbf16>, vector<256x128xf32> -> vector<256x128xf32>
    %c2_20 = arith.constant 2 : index
    %c0_21 = arith.constant 0 : index
    %c0_22 = arith.constant 0 : index
    %45 = vector.load %arg5[%c2_20, %c0_21, %c0_22] : memref<9x1x128xf32, #tpu.memory_space<vmem>>, vector<1x1x128xf32>
    %46 = vector.shape_cast %45 : vector<1x1x128xf32> to vector<1x128xf32>
    %47 = vector.broadcast %46 : vector<1x128xf32> to vector<256x128xf32>
    %48 = arith.addf %44, %47 : vector<256x128xf32>
    %49 = math.tanh %48 : vector<256x128xf32>
    %50 = arith.truncf %49 : vector<256x128xf32> to vector<256x128xbf16>
    %c3 = arith.constant 3 : index
    %c0_23 = arith.constant 0 : index
    %c0_24 = arith.constant 0 : index
    %51 = vector.load %arg4[%c3, %c0_23, %c0_24] : memref<9x128x128xbf16, #tpu.memory_space<vmem>>, vector<1x128x128xbf16>
    %52 = vector.shape_cast %51 : vector<1x128x128xbf16> to vector<128x128xbf16>
    %cst_25 = arith.constant dense<0.000000e+00> : vector<256x128xf32>
    %53 = tpu.matmul %50, %52, %cst_25 {dimension_numbers = #tpu.dot_dimension_numbers<[1], [0], [0], [1], [0, 0, 1, 1], [], []>} : vector<256x128xbf16>, vector<128x128xbf16>, vector<256x128xf32> -> vector<256x128xf32>
    %c3_26 = arith.constant 3 : index
    %c0_27 = arith.constant 0 : index
    %c0_28 = arith.constant 0 : index
    %54 = vector.load %arg5[%c3_26, %c0_27, %c0_28] : memref<9x1x128xf32, #tpu.memory_space<vmem>>, vector<1x1x128xf32>
    %55 = vector.shape_cast %54 : vector<1x1x128xf32> to vector<1x128xf32>
    %56 = vector.broadcast %55 : vector<1x128xf32> to vector<256x128xf32>
    %57 = arith.addf %53, %56 : vector<256x128xf32>
    %58 = math.tanh %57 : vector<256x128xf32>
    %59 = arith.truncf %58 : vector<256x128xf32> to vector<256x128xbf16>
    %c4 = arith.constant 4 : index
    %c0_29 = arith.constant 0 : index
    %c0_30 = arith.constant 0 : index
    %60 = vector.load %arg4[%c4, %c0_29, %c0_30] : memref<9x128x128xbf16, #tpu.memory_space<vmem>>, vector<1x128x128xbf16>
    %61 = vector.shape_cast %60 : vector<1x128x128xbf16> to vector<128x128xbf16>
    %cst_31 = arith.constant dense<0.000000e+00> : vector<256x128xf32>
    %62 = tpu.matmul %59, %61, %cst_31 {dimension_numbers = #tpu.dot_dimension_numbers<[1], [0], [0], [1], [0, 0, 1, 1], [], []>} : vector<256x128xbf16>, vector<128x128xbf16>, vector<256x128xf32> -> vector<256x128xf32>
    %c4_32 = arith.constant 4 : index
    %c0_33 = arith.constant 0 : index
    %c0_34 = arith.constant 0 : index
    %63 = vector.load %arg5[%c4_32, %c0_33, %c0_34] : memref<9x1x128xf32, #tpu.memory_space<vmem>>, vector<1x1x128xf32>
    %64 = vector.shape_cast %63 : vector<1x1x128xf32> to vector<1x128xf32>
    %65 = vector.broadcast %64 : vector<1x128xf32> to vector<256x128xf32>
    %66 = arith.addf %62, %65 : vector<256x128xf32>
    %67 = math.tanh %66 : vector<256x128xf32>
    %68 = arith.truncf %67 : vector<256x128xf32> to vector<256x128xbf16>
    %c5 = arith.constant 5 : index
    %c0_35 = arith.constant 0 : index
    %c0_36 = arith.constant 0 : index
    %69 = vector.load %arg4[%c5, %c0_35, %c0_36] : memref<9x128x128xbf16, #tpu.memory_space<vmem>>, vector<1x128x128xbf16>
    %70 = vector.shape_cast %69 : vector<1x128x128xbf16> to vector<128x128xbf16>
    %cst_37 = arith.constant dense<0.000000e+00> : vector<256x128xf32>
    %71 = tpu.matmul %68, %70, %cst_37 {dimension_numbers = #tpu.dot_dimension_numbers<[1], [0], [0], [1], [0, 0, 1, 1], [], []>} : vector<256x128xbf16>, vector<128x128xbf16>, vector<256x128xf32> -> vector<256x128xf32>
    %c5_38 = arith.constant 5 : index
    %c0_39 = arith.constant 0 : index
    %c0_40 = arith.constant 0 : index
    %72 = vector.load %arg5[%c5_38, %c0_39, %c0_40] : memref<9x1x128xf32, #tpu.memory_space<vmem>>, vector<1x1x128xf32>
    %73 = vector.shape_cast %72 : vector<1x1x128xf32> to vector<1x128xf32>
    %74 = vector.broadcast %73 : vector<1x128xf32> to vector<256x128xf32>
    %75 = arith.addf %71, %74 : vector<256x128xf32>
    %76 = math.tanh %75 : vector<256x128xf32>
    %77 = arith.truncf %76 : vector<256x128xf32> to vector<256x128xbf16>
    %c6 = arith.constant 6 : index
    %c0_41 = arith.constant 0 : index
    %c0_42 = arith.constant 0 : index
    %78 = vector.load %arg4[%c6, %c0_41, %c0_42] : memref<9x128x128xbf16, #tpu.memory_space<vmem>>, vector<1x128x128xbf16>
    %79 = vector.shape_cast %78 : vector<1x128x128xbf16> to vector<128x128xbf16>
    %cst_43 = arith.constant dense<0.000000e+00> : vector<256x128xf32>
    %80 = tpu.matmul %77, %79, %cst_43 {dimension_numbers = #tpu.dot_dimension_numbers<[1], [0], [0], [1], [0, 0, 1, 1], [], []>} : vector<256x128xbf16>, vector<128x128xbf16>, vector<256x128xf32> -> vector<256x128xf32>
    %c6_44 = arith.constant 6 : index
    %c0_45 = arith.constant 0 : index
    %c0_46 = arith.constant 0 : index
    %81 = vector.load %arg5[%c6_44, %c0_45, %c0_46] : memref<9x1x128xf32, #tpu.memory_space<vmem>>, vector<1x1x128xf32>
    %82 = vector.shape_cast %81 : vector<1x1x128xf32> to vector<1x128xf32>
    %83 = vector.broadcast %82 : vector<1x128xf32> to vector<256x128xf32>
    %84 = arith.addf %80, %83 : vector<256x128xf32>
    %85 = math.tanh %84 : vector<256x128xf32>
    %86 = arith.truncf %85 : vector<256x128xf32> to vector<256x128xbf16>
    %c7 = arith.constant 7 : index
    %c0_47 = arith.constant 0 : index
    %c0_48 = arith.constant 0 : index
    %87 = vector.load %arg4[%c7, %c0_47, %c0_48] : memref<9x128x128xbf16, #tpu.memory_space<vmem>>, vector<1x128x128xbf16>
    %88 = vector.shape_cast %87 : vector<1x128x128xbf16> to vector<128x128xbf16>
    %cst_49 = arith.constant dense<0.000000e+00> : vector<256x128xf32>
    %89 = tpu.matmul %86, %88, %cst_49 {dimension_numbers = #tpu.dot_dimension_numbers<[1], [0], [0], [1], [0, 0, 1, 1], [], []>} : vector<256x128xbf16>, vector<128x128xbf16>, vector<256x128xf32> -> vector<256x128xf32>
    %c7_50 = arith.constant 7 : index
    %c0_51 = arith.constant 0 : index
    %c0_52 = arith.constant 0 : index
    %90 = vector.load %arg5[%c7_50, %c0_51, %c0_52] : memref<9x1x128xf32, #tpu.memory_space<vmem>>, vector<1x1x128xf32>
    %91 = vector.shape_cast %90 : vector<1x1x128xf32> to vector<1x128xf32>
    %92 = vector.broadcast %91 : vector<1x128xf32> to vector<256x128xf32>
    %93 = arith.addf %89, %92 : vector<256x128xf32>
    %94 = math.tanh %93 : vector<256x128xf32>
    %95 = arith.truncf %94 : vector<256x128xf32> to vector<256x128xbf16>
    %c8 = arith.constant 8 : index
    %c0_53 = arith.constant 0 : index
    %c0_54 = arith.constant 0 : index
    %96 = vector.load %arg4[%c8, %c0_53, %c0_54] : memref<9x128x128xbf16, #tpu.memory_space<vmem>>, vector<1x128x128xbf16>
    %97 = vector.shape_cast %96 : vector<1x128x128xbf16> to vector<128x128xbf16>
    %cst_55 = arith.constant dense<0.000000e+00> : vector<256x128xf32>
    %98 = tpu.matmul %95, %97, %cst_55 {dimension_numbers = #tpu.dot_dimension_numbers<[1], [0], [0], [1], [0, 0, 1, 1], [], []>} : vector<256x128xbf16>, vector<128x128xbf16>, vector<256x128xf32> -> vector<256x128xf32>
    %c8_56 = arith.constant 8 : index
    %c0_57 = arith.constant 0 : index
    %c0_58 = arith.constant 0 : index
    %99 = vector.load %arg5[%c8_56, %c0_57, %c0_58] : memref<9x1x128xf32, #tpu.memory_space<vmem>>, vector<1x1x128xf32>
    %100 = vector.shape_cast %99 : vector<1x1x128xf32> to vector<1x128xf32>
    %101 = vector.broadcast %100 : vector<1x128xf32> to vector<256x128xf32>
    %102 = arith.addf %98, %101 : vector<256x128xf32>
    %c0_59 = arith.constant 0 : index
    %c0_60 = arith.constant 0 : index
    %103 = vector.load %arg6[%c0_59, %c0_60] : memref<256x128xf32, #tpu.memory_space<vmem>>, vector<256x128xf32>
    tpu.vector_store %arg6[%c0_59, %c0_60], %102 {strides = array<i32>} : memref<256x128xf32, #tpu.memory_space<vmem>>, vector<256x128xf32>,
    return
  }
  func.func @transform_0(%arg0: i32) -> (i32, i32) {
    %c0_i32 = arith.constant 0 : i32
    %c0_i32_0 = arith.constant 0 : i32
    return %arg0, %c0_i32 : i32, i32
  }
  func.func @transform_1(%arg0: i32) -> (i32, i32) {
    %c0_i32 = arith.constant 0 : i32
    %c0_i32_0 = arith.constant 0 : i32
    %c0_i32_1 = arith.constant 0 : i32
    return %c0_i32, %c0_i32_0 : i32, i32
  }
  func.func @transform_2(%arg0: i32) -> (i32, i32) {
    %c0_i32 = arith.constant 0 : i32
    %c0_i32_0 = arith.constant 0 : i32
    %c0_i32_1 = arith.constant 0 : i32
    return %c0_i32, %c0_i32_0 : i32, i32
  }
  func.func @transform_3(%arg0: i32) -> (i32, i32, i32) {
    %c0_i32 = arith.constant 0 : i32
    %c0_i32_0 = arith.constant 0 : i32
    %c0_i32_1 = arith.constant 0 : i32
    %c0_i32_2 = arith.constant 0 : i32
    return %c0_i32, %c0_i32_0, %c0_i32_1 : i32, i32, i32
  }
  func.func @transform_4(%arg0: i32) -> (i32, i32, i32) {
    %c0_i32 = arith.constant 0 : i32
    %c0_i32_0 = arith.constant 0 : i32
    %c0_i32_1 = arith.constant 0 : i32
    %c0_i32_2 = arith.constant 0 : i32
    return %c0_i32, %c0_i32_0, %c0_i32_1 : i32, i32, i32
  }
  func.func @transform_5(%arg0: i32) -> (i32, i32) {
    %c0_i32 = arith.constant 0 : i32
    %c0_i32_0 = arith.constant 0 : i32
    return %arg0, %c0_i32 : i32, i32
  }
}

</mosaic_0001>

<bundles_post_ra>
// kernel: tpu_custom_call.1
= control target key start
LH: loop header
LB: loop body
LE: loop exit
PB: predicated region body
PF: predicated region fallthrough
CT: control target
= control target key end

     0   :  { %10 = vsyncpa [#allocation3], 0  ;;  %s5604_s0 = inlined_call_operand.vmem [shape: f32[256,3], index: 0, kind: input, shape index: {}]   ;;  %s5605_s1 = inlined_call_operand.vmem [shape: f32[3,128], index: 1, kind: input, shape index: {}]   ;;  %s5606_s2 = inlined_call_operand.vmem [shape: f32[1,128], index: 2, kind: input, shape index: {}]   ;;  %s5607_s3 = inlined_call_operand.hbm [shape: bf16[9,128,128], index: 3, kind: input, shape index: {}]   ;;  %s5608_s4 = inlined_call_operand.vmem [shape: f32[9,1,128], index: 4, kind: input, shape index: {}]   ;;  %s5609_s5 = inlined_call_operand.hbm [shape: f32[256,128], index: 5, kind: output, shape index: {}]  }
   0x1   :  { %11 = vsyncpa [#allocation4], 0  ;;  %s4780_s18 = smov [#allocation2]  }
   0x2   :  { %s23_s19 = sshll.u32 %s4780_s18, 4  ;;  %s24_s19 = int_to_ptr.vmem [resolvable:$true] %s23_s19 }
   0x3   :  { %s4744_s20 = scalar_lea.vmem %s24_s19, 9216  ;;  %p4749_p1 = scmp.lt.s32.totalorder %s24_s19, %s24_s19 }
   0x4   :  { %p4745_p0 = scmp.ne.s32.totalorder %s24_s19, %s4744_s20  ;;  %p4750_p2 = scmp.lt.s32.totalorder %s4744_s20, %s4744_s20 }
   0x6   :  { %p4751_p3 = por %p4750_p2, %p4749_p1 }
   0x8   :  { %p4752_p4 = pnand %p4751_p3, %p4745_p0 }
   0xa   :  { %4755 = shalt.err (!%p4752_p4)
}
   0xb   :  { %s4781_s21 = smov 64   ;;  %s4782_s22 = smov 4  }
   0xc   :  { %29 = dma.hbm_to_vmem [thread:$0]  %s5607_s3, 9216, %s24_s19, [#allocation3], %s4781_s21, %s4781_s21, %s4782_s22  }
   0xd   :  { %4776 = dma.done.wait [#allocation3], 9216  }
   0xe   :  { %4777 = vsyncadd [#allocation3], 4294958080  ;;  %v4783_v0 = vmov 1   ;;  %v4827_v1 = vld [vmem:[%s5604_s0 + $0x10] sm:$0xff]  ;;  %v36_v2 = vld [vmem:[%s5604_s0] sm:$0xff]  ;;  %v4784_v7 = vmov 0   ;;  %v229_v60 = vlaneseq }
   0xf   :  { %4046 = vset.pattern.permute.xlu0 %v4783_v0  ;;  %4044 = vset.pattern.permute.xlu1 %v4783_v0  ;;  %v41_v3 = vld [vmem:[%s5604_s0 + $0x28] sm:$0xff]  ;;  %v42_v5 = vld [vmem:[%s5604_s0 + $0x30] sm:$0xff]  ;;  %v39_v6 = vld [vmem:[%s5604_s0 + $0x18] sm:$0xff]  ;;  %v4785_v8 = vmov 2  }
  0x10   :  { %274 = vperm.xlu0 %4046, %v4827_v1   ;;  %266 = vperm.xlu1 %4044, %v36_v2   ;;  %v37_v4 = vld [vmem:[%s5604_s0 + $0x8] sm:$0xff]  ;;  %v4850_v9 = vld [vmem:[%s5604_s0 + $0x20] sm:$0xff]  ;;  %v43_v10 = vld [vmem:[%s5604_s0 + $0x38] sm:$0xff]  ;;  %v230_v63 = vshrl.u32 %v229_v60, 7 }
  0x11   :  { %v4861_v11 = vld [vmem:[%s5604_s0 + $0x48] sm:$0xff]  ;;  %v4867_v12 = vld [vmem:[%s5604_s0 + $0x60] sm:$0xff]  ;;  %v4873_v13 = vld [vmem:[%s5604_s0 + $0x78] sm:$0xff] }
  0x12   :  { %v4880_v14 = vld [vmem:[%s5604_s0 + $0x88] sm:$0xff]  ;;  %v4889_v15 = vld [vmem:[%s5604_s0 + $0xa0] sm:$0xff]  ;;  %v4896_v16 = vld [vmem:[%s5604_s0 + $0xb8] sm:$0xff] }
  0x13   :  { %v4901_v17 = vld [vmem:[%s5604_s0 + $0xc8] sm:$0xff]  ;;  %v4088_v18 = vld [vmem:[#allocation2 + $0x38] sm:$0xff]   ;;  %v4089_v19 = vld [vmem:[#allocation2 + $0x30] sm:$0xff]  }
  0x14   :  { %286 = vperm.xlu0 %4046, %v41_v3   ;;  %270 = vperm.xlu1 %4044, %v37_v4   ;;  %v4090_v20 = vld [vmem:[#allocation2 + $0x28] sm:$0xff]   ;;  %v4091_v21 = vld [vmem:[#allocation2 + $0x20] sm:$0xff]   ;;  %v4092_v23 = vld [vmem:[#allocation2 + $0x18] sm:$0xff]  }
  0x15   :  { %3587 = vmatprep.subr.bf16.mxu0 %v4088_v18  ;;  %4019 = vmatprep.subr.bf16.mxu1 %v4088_v18  ;;  %v44_v22 = vld [vmem:[%s5604_s0 + $0x40] sm:$0xff]  ;;  %v4093_v24 = vld [vmem:[#allocation2 + $0x10] sm:$0xff]   ;;  %v4094_v26 = vld [vmem:[#allocation2 + $0x8] sm:$0xff]  }
  0x16   :  { %3588 = vmatpush3.bf16.msra.mxu0 %v4088_v18  ;;  %4027 = vmatpush3.bf16.msra.mxu1 %v4088_v18  ;;  %v46_v25 = vld [vmem:[%s5604_s0 + $0x50] sm:$0xff]  ;;  %v47_v27 = vld [vmem:[%s5604_s0 + $0x58] sm:$0xff]  ;;  %v4095_v28 = vld [vmem:[#allocation2] sm:$0xff]  }
  0x17   :  { %3589 = vmatprep.subr.bf16.mxu0 %v4089_v19  ;;  %4020 = vmatprep.subr.bf16.mxu1 %v4089_v19  ;;  %v4930_v29 = vld [vmem:[%s5604_s0 + $0x90] sm:$0xff]  ;;  %v4945_v31 = vld [vmem:[%s5604_s0 + $0xe0] sm:$0xff]  ;;  %v49_v32 = vld [vmem:[%s5604_s0 + $0x68] sm:$0xff] }
  0x18   :  { %290 = vperm.xlu0 %4046, %v42_v5   ;;  %4045 = vset.pattern.permute.xlu1 %v4784_v7  ;;  %v4939_v30 = vld [vmem:[%s5604_s0 + $0xd0] sm:$0xff]  ;;  %v4965_v34 = vld [vmem:[%s5604_s0 + $0xa8] sm:$0xff]  ;;  %v52_v42 = vld [vmem:[%s5604_s0 + $0x80] sm:$0xff] }
  0x19   :  { %86 = vperm.xlu1 %4045, %v39_v6   ;;  %v50_v33 = vld [vmem:[%s5604_s0 + $0x70] sm:$0xff]  ;;  %v4993_v43 = vld [vmem:[%s5604_s0 + $0xe8] sm:$0xff]  ;;  %v55_v51 = vld [vmem:[%s5604_s0 + $0x98] sm:$0xff] }
  0x1a   :  { %3590 = vmatpush3.bf16.msra.mxu0 %v4089_v19  ;;  %4028 = vmatpush3.bf16.msra.mxu1 %v4089_v19  ;;  %v4976_v37 = vld [vmem:[%s5604_s0 + $0xb0] sm:$0xff]  ;;  %v5021_v52 = vld [vmem:[%s5604_s0 + $0xf8] sm:$0xff] }
  0x1b   :  { %3591 = vmatprep.subr.bf16.mxu0 %v4090_v20  ;;  %4021 = vmatprep.subr.bf16.mxu1 %v4090_v20  ;;  %v5002_v45 = vld [vmem:[%s5604_s0 + $0xf0] sm:$0xff] }
  0x1c   :  { %4052 = vset.pattern.permute.xlu0 %v4785_v8 }
  0x1d   :  { %466 = vperm.xlu0 %4052, %v37_v4   ;;  %4047 = vset.pattern.permute.xlu1 %v4783_v0 }
  0x1e   :  { %278 = vperm.xlu1 %4047, %v39_v6   ;;  %3592 = vmatpush3.bf16.msra.mxu0 %v4090_v20 }
  0x1f   :  { %4029 = vmatpush3.bf16.msra.mxu1 %v4090_v20  ;;  %3593 = vmatprep.subr.bf16.mxu0 %v4091_v21 }
  0x20   :  { %4022 = vmatprep.subr.bf16.mxu1 %v4091_v21 }
  0x21   :  { %478 = vperm.xlu0 %4052, %v4850_v9  }
  0x22   :  { %4048 = vset.pattern.permute.xlu1 %v4785_v8  ;;  %3594 = vmatpush3.bf16.msra.mxu0 %v4091_v21 }
  0x23   :  { %462 = vperm.xlu1 %4048, %v36_v2   ;;  %4030 = vmatpush3.bf16.msra.mxu1 %v4091_v21 }
  0x24   :  { %3595 = vmatprep.subr.bf16.mxu0 %v4092_v23  ;;  %4023 = vmatprep.subr.bf16.mxu1 %v4092_v23 }
  0x25   :  { %490 = vperm.xlu0 %4052, %v43_v10  }
  0x26   :  { %3596 = vmatpush3.bf16.msra.mxu0 %v4092_v23 }
  0x27   :  { %470 = vperm.xlu1 %4048, %v4827_v1   ;;  %3597 = vmatprep.subr.bf16.mxu0 %v4093_v24 }
  0x28   :  { %4031 = vmatpush3.bf16.msra.mxu1 %v4092_v23 }
  0x29   :  { %498 = vperm.xlu0 %4052, %v4861_v11   ;;  %4024 = vmatprep.subr.bf16.mxu1 %v4093_v24 }
  0x2a   :  { %3598 = vmatpush3.bf16.msra.mxu0 %v4093_v24 }
  0x2b   :  { %474 = vperm.xlu1 %4048, %v39_v6   ;;  %3599 = vmatprep.subr.bf16.mxu0 %v4094_v26  ;;  %v591_v6 = vsub.s32 2, %v230_v63 }
  0x2c   :  { %4032 = vmatpush3.bf16.msra.mxu1 %v4093_v24 }
  0x2d   :  { %510 = vperm.xlu0 %4052, %v4867_v12   ;;  %4025 = vmatprep.subr.bf16.mxu1 %v4094_v26 }
  0x2e   :  { %3600 = vmatpush3.bf16.msra.mxu0 %v4094_v26 }
  0x2f   :  { %4049 = vset.pattern.permute.xlu1 %v4784_v7  ;;  %3601 = vmatprep.subr.bf16.mxu0 %v4095_v28 }
  0x30   :  { %96 = vperm.xlu1 %4049, %v41_v3   ;;  %4033 = vmatpush3.bf16.msra.mxu1 %v4094_v26 }
  0x31   :  { %522 = vperm.xlu0 %4052, %v4873_v13   ;;  %4026 = vmatprep.subr.bf16.mxu1 %v4095_v28 }
  0x32   :  { %3602 = vmatpush3.bf16.msra.mxu0 %v4095_v28 }
  0x34   :  { %4050 = vset.pattern.permute.xlu1 %v4783_v0  ;;  %4034 = vmatpush3.bf16.msra.mxu1 %v4095_v28 }
  0x35   :  { %530 = vperm.xlu0 %4052, %v4880_v14   ;;  %282 = vperm.xlu1 %4050, %v4850_v9  }
  0x39   :  { %542 = vperm.xlu0 %4052, %v4889_v15   ;;  %4051 = vset.pattern.permute.xlu1 %v4784_v7 }
  0x3a   :  { %101 = vperm.xlu1 %4051, %v42_v5  }
  0x3d   :  { %554 = vperm.xlu0 %4052, %v4896_v16  }
  0x3e   :  { %106 = vperm.xlu1 %4051, %v43_v10  }
  0x41   :  { %562 = vperm.xlu0 %4052, %v4901_v17  }
  0x42   :  { %4053 = vset.pattern.permute.xlu1 %v4783_v0 }
  0x43   :  { %294 = vperm.xlu1 %4053, %v43_v10  }
  0x45   :  { %4080 = vset.pattern.permute.xlu0 %v4784_v7 }
  0x46   :  { %71 = vperm.xlu0 %4080, %v36_v2  }
  0x47   :  { %4054 = vset.pattern.permute.xlu1 %v4785_v8 }
  0x48   :  { %482 = vperm.xlu1 %4054, %v41_v3   ;;  %v395_v3 = vsub.s32 1, %v230_v63 }
  0x4a   :  { %76 = vperm.xlu0 %4080, %v37_v4   ;;  %v68_v4 = vld [vmem:[%s5605_s1] sm:$0x7] }
  0x4b   :  { %v5049_v10 = vrot.slane %v68_v4, %v395_v3 }
  0x4c   :  { %486 = vperm.xlu1 %4054, %v42_v5   ;;  %v231_v5 = vsub.s32 0, %v230_v63 }
  0x4e   :  { %81 = vperm.xlu0 %4080, %v4827_v1  }
  0x50   :  { %4055 = vset.pattern.permute.xlu1 %v4784_v7 }
  0x51   :  { %111 = vperm.xlu1 %4055, %v44_v22  }
  0x52   :  { %91 = vperm.xlu0 %4080, %v4850_v9  }
  0x55   :  { %4056 = vset.pattern.permute.xlu1 %v4783_v0 }
  0x56   :  { %116 = vperm.xlu0 %4080, %v4861_v11   ;;  %298 = vperm.xlu1 %4056, %v44_v22  }
  0x5a   :  { %121 = vperm.xlu0 %4080, %v46_v25   ;;  %302 = vperm.xlu1 %4056, %v4861_v11  }
  0x5e   :  { %131 = vperm.xlu0 %4080, %v4867_v12   ;;  %4057 = vset.pattern.permute.xlu1 %v4784_v7 }
  0x5f   :  { %126 = vperm.xlu1 %4057, %v47_v27  }
  0x62   :  { %156 = vperm.xlu0 %4080, %v4880_v14  }
  0x63   :  { %4058 = vset.pattern.permute.xlu1 %v4783_v0 }
  0x64   :  { %310 = vperm.xlu1 %4058, %v47_v27  }
  0x66   :  { %161 = vperm.xlu0 %4080, %v4930_v29  }
  0x68   :  { %4059 = vset.pattern.permute.xlu1 %v4785_v8 }
  0x69   :  { %494 = vperm.xlu1 %4059, %v44_v22  }
  0x6a   :  { %171 = vperm.xlu0 %4080, %v4889_v15  }
  0x6d   :  { %502 = vperm.xlu1 %4059, %v46_v25  }
  0x6e   :  { %196 = vperm.xlu0 %4080, %v4901_v17  }
  0x71   :  { %506 = vperm.xlu1 %4059, %v47_v27  }
  0x72   :  { %201 = vperm.xlu0 %4080, %v4939_v30  }
  0x75   :  { %4060 = vset.pattern.permute.xlu1 %v4784_v7 }
  0x76   :  { %211 = vperm.xlu0 %4080, %v4945_v31   ;;  %136 = vperm.xlu1 %4060, %v49_v32  }
  0x7a   :  { %4081 = vset.pattern.permute.xlu0 %v4783_v0  ;;  %4061 = vset.pattern.permute.xlu1 %v4783_v0 }
  0x7b   :  { %306 = vperm.xlu0 %4081, %v46_v25   ;;  %314 = vperm.xlu1 %4061, %v4867_v12   ;;  %v5051_v12 = vrot.slane %v68_v4, %v231_v5 }
  0x7f   :  { %318 = vperm.xlu0 %4081, %v49_v32   ;;  %4062 = vset.pattern.permute.xlu1 %v4784_v7 }
  0x80   :  { %141 = vperm.xlu1 %4062, %v50_v33  }
  0x83   :  { %322 = vperm.xlu0 %4081, %v50_v33  }
  0x84   :  { %146 = vperm.xlu1 %4062, %v4873_v13  }
  0x87   :  { %338 = vperm.xlu0 %4081, %v4930_v29  }
  0x88   :  { %4063 = vset.pattern.permute.xlu1 %v4783_v0 }
  0x89   :  { %326 = vperm.xlu1 %4063, %v4873_v13   ;;  %v5053_v13 = vrot.slane %v68_v4, %v591_v6 }
  0x8b   :  { %v4968_v35 = vpop.permute.xlu1 %266  ;;  %v4970_v36 = vpop.permute.xlu0 %274  ;;  %350 = vperm.xlu0 %4081, %v4965_v34  }
  0x8c   :  { %v397_v19 = vmul.f32 %v5049_v10, %v4968_v35 }
  0x8d   :  { %4064 = vset.pattern.permute.xlu1 %v4785_v8 }
  0x8e   :  { %514 = vperm.xlu1 %4064, %v49_v32  }
  0x8f   :  { %v4979_v38 = vpop.permute.xlu1 %270  ;;  %v4981_v39 = vpop.permute.xlu0 %286  ;;  %354 = vperm.xlu0 %4081, %v4976_v37  }
  0x92   :  { %518 = vperm.xlu1 %4064, %v50_v33   ;;  %v402_v33 = vmul.f32 %v5049_v10, %v4981_v39 }
  0x93   :  { %v4984_v40 = vpop.permute.xlu0 %290  ;;  %370 = vperm.xlu0 %4081, %v4939_v30  }
  0x94   :  { %v87_v41 = vpop.permute.xlu1 %86 }
  0x95   :  { %v236_v21 = vmul.f32 %v5051_v12, %v87_v41 }
  0x96   :  { %4065 = vset.pattern.permute.xlu1 %v4784_v7 }
  0x97   :  { %151 = vperm.xlu1 %4065, %v52_v42   ;;  %382 = vperm.xlu0 %4081, %v4993_v43  }
  0x98   :  { %v4997_v44 = vpop.permute.xlu0 %466 }
  0x99   :  { %v279_v46 = vpop.permute.xlu1 %278  ;;  %v594_v28 = vmul.f32 %v5053_v13, %v4997_v44 }
  0x9b   :  { %4066 = vset.pattern.permute.xlu1 %v4783_v0  ;;  %386 = vperm.xlu0 %4081, %v5002_v45  }
  0x9c   :  { %330 = vperm.xlu1 %4066, %v52_v42   ;;  %v5006_v47 = vpop.permute.xlu0 %478 }
  0x9d   :  { %v597_v60 = vmul.f32 %v5053_v13, %v5006_v47 }
  0x9e   :  { %v463_v48 = vpop.permute.xlu1 %462 }
  0x9f   :  { %4086 = vset.pattern.permute.xlu0 %v4785_v8  ;;  %v593_v24 = vmul.f32 %v5053_v13, %v463_v48  ;;  %v403_v48 = vmul.f32 %v5049_v10, %v4984_v40 }
  0xa0   :  { %334 = vperm.xlu1 %4066, %v4880_v14   ;;  %v5010_v49 = vpop.permute.xlu0 %490  ;;  %574 = vperm.xlu0 %4086, %v4945_v31   ;;  %v400_v14 = vmul.f32 %v5049_v10, %v279_v46  ;;  %v399_v46 = vmul.f32 %v5049_v10, %v4970_v36 }
  0xa1   :  { %v600_v40 = vmul.f32 %v5053_v13, %v5010_v49 }
  0xa2   :  { %v5013_v50 = vpop.permute.xlu1 %470  ;;  %v432_v26 = vadd.f32 %v400_v14, %v236_v21 }
  0xa4   :  { %4067 = vset.pattern.permute.xlu1 %v4784_v7  ;;  %v5024_v53 = vpop.permute.xlu0 %498  ;;  %586 = vperm.xlu0 %4086, %v5021_v52  }
  0xa5   :  { %166 = vperm.xlu1 %4067, %v55_v51  }
  0xa6   :  { %v475_v54 = vpop.permute.xlu1 %474 }
  0xa7   :  { %v596_v22 = vmul.f32 %v5053_v13, %v475_v54 }
  0xa8   :  { %v5027_v55 = vpop.permute.xlu0 %510 }
  0xa9   :  { %4068 = vset.pattern.permute.xlu1 %v4783_v0  ;;  %v628_v35 = vadd.f32 %v596_v22, %v432_v26 }
  0xaa   :  { %342 = vperm.xlu1 %4068, %v55_v51  }
  0xab   :  { %v97_v56 = vpop.permute.xlu1 %96 }
  0xac   :  { %v5030_v57 = vpop.permute.xlu0 %522  ;;  %v238_v41 = vmul.f32 %v5051_v12, %v97_v56 }
  0xae   :  { %4069 = vset.pattern.permute.xlu1 %v4785_v8  ;;  %v434_v5 = vadd.f32 %v402_v33, %v238_v41 }
  0xaf   :  { %526 = vperm.xlu1 %4069, %v52_v42  }
  0xb0   :  { %v5033_v58 = vpop.permute.xlu1 %282  ;;  %v5035_v59 = vpop.permute.xlu0 %530 }
  0xb3   :  { %534 = vperm.xlu1 %4069, %v4930_v29  }
  0xb4   :  { %v5038_v61 = vpop.permute.xlu0 %542 }
  0xb5   :  { %v102_v62 = vpop.permute.xlu1 %101 }
  0xb7   :  { %538 = vperm.xlu1 %4069, %v55_v51   ;;  %v239_v51 = vmul.f32 %v5051_v12, %v102_v62  ;;  %v595_v62 = vmul.f32 %v5053_v13, %v5013_v50 }
  0xb8   :  { %v5040_v1 = vpop.permute.xlu0 %554 }
  0xb9   :  { %v107_v2 = vpop.permute.xlu1 %106 }
  0xba   :  { %v240_v6 = vmul.f32 %v5051_v12, %v107_v2 }
  0xbb   :  { %4070 = vset.pattern.permute.xlu1 %v4784_v7 }
  0xbc   :  { %176 = vperm.xlu1 %4070, %v4965_v34   ;;  %v5047_v9 = vpop.permute.xlu0 %562 }
  0xbe   :  { %v295_v11 = vpop.permute.xlu1 %294 }
  0xbf   :  { %v404_v36 = vmul.f32 %v5049_v10, %v295_v11 }
  0xc0   :  { %4071 = vset.pattern.permute.xlu1 %v4783_v0 }
  0xc1   :  { %v72_v18 = vpop.permute.xlu0 %71  ;;  %346 = vperm.xlu1 %4071, %v4889_v15   ;;  %v398_v15 = vmul.f32 %v5049_v10, %v4979_v38  ;;  %v5079_v38 = vld [vmem:[%s5606_s2] ss:$0 sm:$0xff]  ;;  %v436_v22 = vadd.f32 %v404_v36, %v240_v6 }
  0xc2   :  { %v233_v20 = vmul.f32 %v5051_v12, %v72_v18  ;;  %v667_v4 = vadd.f32 %v5079_v38, %v628_v35 }
  0xc3   :  { %v483_v23 = vpop.permute.xlu1 %482 }
  0xc4   :  { %v429_v25 = vadd.f32 %v397_v19, %v233_v20  ;;  %v598_v54 = vmul.f32 %v5053_v13, %v483_v23  ;;  %v401_v19 = vmul.f32 %v5049_v10, %v5033_v58  ;;  %v435_v20 = vadd.f32 %v403_v48, %v239_v51 }
  0xc5   :  { %v77_v27 = vpop.permute.xlu0 %76  ;;  %4072 = vset.pattern.permute.xlu1 %v4784_v7 }
  0xc6   :  { %v625_v29 = vadd.f32 %v593_v24, %v429_v25  ;;  %v234_v32 = vmul.f32 %v5051_v12, %v77_v27  ;;  %181 = vperm.xlu1 %4072, %v4976_v37   ;;  %v630_v49 = vadd.f32 %v598_v54, %v434_v5 }
  0xc7   :  { %v487_v42 = vpop.permute.xlu1 %486 }
  0xc8   :  { %v430_v44 = vadd.f32 %v398_v15, %v234_v32  ;;  %v664_v39 = vadd.f32 %v5079_v38, %v625_v29  ;;  %v599_v11 = vmul.f32 %v5053_v13, %v487_v42  ;;  %v669_v58 = vadd.f32 %v5079_v38, %v630_v49 }
  0xc9   :  { %v82_v56 = vpop.permute.xlu0 %81  ;;  %v632_v15 = vadd.f32 %v600_v40, %v436_v22 }
  0xca   :  { %v626_v63 = vadd.f32 %v594_v28, %v430_v44  ;;  %v235_v3 = vmul.f32 %v5051_v12, %v82_v56  ;;  %186 = vperm.xlu1 %4072, %v4896_v16   ;;  %4160 = vtanh.f32 %v664_v39  ;;  %v631_v2 = vadd.f32 %v599_v11, %v435_v20 }
  0xcb   :  { %v671_v35 = vadd.f32 %v5079_v38, %v632_v15  ;;  %v602_v56 = vmul.f32 %v5053_v13, %v5024_v53 }
  0xcc   :  { %v665_v47 = vadd.f32 %v5079_v38, %v626_v63  ;;  %v431_v14 = vadd.f32 %v399_v46, %v235_v3  ;;  %v112_v18 = vpop.permute.xlu1 %111  ;;  %v670_v29 = vadd.f32 %v5079_v38, %v631_v2 }
  0xcd   :  { %v92_v21 = vpop.permute.xlu0 %91 }
  0xce   :  { %4162 = vtanh.f32 %v665_v47  ;;  %v627_v50 = vadd.f32 %v595_v62, %v431_v14  ;;  %v237_v23 = vmul.f32 %v5051_v12, %v92_v21  ;;  %4073 = vset.pattern.permute.xlu1 %v4783_v0  ;;  %v241_v47 = vmul.f32 %v5051_v12, %v112_v18  ;;  %v63_v18 = vld [vmem:[%s5604_s0 + $0xd8] sm:$0xff] }
  0xcf   :  { %358 = vperm.xlu1 %4073, %v4896_v16   ;;  %4164 = vtanh.f32 %v667_v4 }
  0xd0   :  { %v666_v24 = vadd.f32 %v5079_v38, %v627_v50  ;;  %v433_v25 = vadd.f32 %v401_v19, %v237_v23 }
  0xd1   :  { %v299_v26 = vpop.permute.xlu1 %298  ;;  %v117_v27 = vpop.permute.xlu0 %116 }
  0xd2   :  { %4166 = vtanh.f32 %v666_v24  ;;  %v629_v28 = vadd.f32 %v597_v60, %v433_v25  ;;  %v242_v46 = vmul.f32 %v5051_v12, %v117_v27  ;;  %v405_v40 = vmul.f32 %v5049_v10, %v299_v26 }
  0xd3   :  { %4074 = vset.pattern.permute.xlu1 %v4785_v8  ;;  %4168 = vtanh.f32 %v669_v58 }
  0xd4   :  { %v668_v32 = vadd.f32 %v5079_v38, %v629_v28  ;;  %546 = vperm.xlu1 %4074, %v4965_v34   ;;  %v60_v34 = vld [vmem:[%s5604_s0 + $0xc0] sm:$0xff]  ;;  %v437_v19 = vadd.f32 %v405_v40, %v241_v47 }
  0xd5   :  { %v303_v16 = vpop.permute.xlu1 %302  ;;  %v5110_v33 = vpop.permute.xlu0 %121 }
  0xd6   :  { %4170 = vtanh.f32 %v668_v32  ;;  %v406_v44 = vmul.f32 %v5049_v10, %v303_v16  ;;  %v243_v16 = vmul.f32 %v5051_v12, %v5110_v33 }
  0xd7   :  { %4172 = vtanh.f32 %v670_v29  ;;  %v4161_v42 = vpop.eup %4160 }
  0xd8   :  { %550 = vperm.xlu1 %4074, %v4976_v37   ;;  %4174 = vtanh.f32 %v671_v35  ;;  %v438_v60 = vadd.f32 %v406_v44, %v242_v46 }
  0xd9   :  { %v5114_v41 = vpop.permute.xlu0 %131 }
  0xda   :  { %v127_v48 = vpop.permute.xlu1 %126  ;;  %v634_v5 = vadd.f32 %v602_v56, %v438_v60 }
  0xdb   :  { %v4163_v51 = vpop.eup %4162  ;;  %v244_v28 = vmul.f32 %v5051_v12, %v127_v48 }
  0xdc   :  { %4075 = vset.pattern.permute.xlu1 %v4784_v7  ;;  %v728_v39 = vpack.c.bf16 %v4163_v51, %v4161_v42  ;;  %v4165_v37 = vpop.eup %4164  ;;  %v673_v21 = vadd.f32 %v5079_v38, %v634_v5 }
  0xdd   :  { %191 = vperm.xlu1 %4075, %v60_v34   ;;  %v5122_v54 = vpop.permute.xlu0 %156 }
  0xde   :  { %3603 = vmatprep.mubr.bf16.mxu0 %v728_v39  ;;  %4176 = vtanh.f32 %v673_v21 }
  0xdf   :  { %v4167_v36 = vpop.eup %4166  ;;  %v311_v63 = vpop.permute.xlu1 %310 }
  0xe0   :  { %v729_v3 = vpack.c.bf16 %v4165_v37, %v4167_v36  ;;  %v4169_v4 = vpop.eup %4168  ;;  %v408_v26 = vmul.f32 %v5049_v10, %v311_v63 }
  0xe1   :  { %4076 = vset.pattern.permute.xlu1 %v4783_v0  ;;  %v5128_v62 = vpop.permute.xlu0 %161 }
  0xe2   :  { %362 = vperm.xlu1 %4076, %v60_v34   ;;  %3604 = vmatmul.mubr.bf16.vlgmr.msra.gmra.mxu0 %v729_v3  ;;  %v440_v32 = vadd.f32 %v408_v26, %v244_v28 }
  0xe3   :  { %v4171_v6 = vpop.eup %4170 }
  0xe4   :  { %v495_v11 = vpop.permute.xlu1 %494  ;;  %v730_v53 = vpack.c.bf16 %v4169_v4, %v4171_v6  ;;  %v4173_v14 = vpop.eup %4172 }
  0xe5   :  { %v601_v20 = vmul.f32 %v5053_v13, %v495_v11  ;;  %v5132_v49 = vpop.permute.xlu0 %171  ;;  %v4175_v22 = vpop.eup %4174 }
  0xe6   :  { %366 = vperm.xlu1 %4076, %v4901_v17   ;;  %3607 = vmatprep.mubr.bf16.mxu0 %v730_v53  ;;  %v731_v2 = vpack.c.bf16 %v4175_v22, %v4173_v14  ;;  %v608_v53 = vmul.f32 %v5053_v13, %v5030_v57 }
  0xe7   :  { %v633_v50 = vadd.f32 %v601_v20, %v437_v19 }
  0xe8   :  { %v503_v23 = vpop.permute.xlu1 %502 }
  0xe9   :  { %v672_v24 = vadd.f32 %v5079_v38, %v633_v50  ;;  %v5140_v25 = vpop.permute.xlu0 %196  ;;  %v603_v37 = vmul.f32 %v5053_v13, %v503_v23 }
  0xea   :  { %4077 = vset.pattern.permute.xlu1 %v4784_v7  ;;  %3608 = vmatmul.mubr.bf16.gmra.mxu0 %v731_v2 }
  0xeb   :  { %4178 = vtanh.f32 %v672_v24  ;;  %206 = vperm.xlu1 %4077, %v63_v18   ;;  %v4177_v44 = vpop.eup %4176 }
  0xec   :  { %v507_v17 = vpop.permute.xlu1 %506 }
  0xed   :  { %v5143_v58 = vpop.permute.xlu0 %201  ;;  %v604_v29 = vmul.f32 %v5053_v13, %v507_v17 }
  0xef   :  { %4078 = vset.pattern.permute.xlu1 %v4783_v0  ;;  %v636_v35 = vadd.f32 %v604_v29, %v440_v32 }
  0xf0   :  { %374 = vperm.xlu1 %4078, %v63_v18  }
  0xf1   :  { %v137_v27 = vpop.permute.xlu1 %136  ;;  %v5147_v15 = vpop.permute.xlu0 %211  ;;  %v675_v60 = vadd.f32 %v5079_v38, %v636_v35 }
  0xf3   :  { %4180 = vtanh.f32 %v675_v60 }
  0xf4   :  { %4079 = vset.pattern.permute.xlu1 %v4785_v8 }
  0xf5   :  { %558 = vperm.xlu1 %4079, %v60_v34   ;;  %v245_v34 = vmul.f32 %v5051_v12, %v5114_v41 }
  0xf6   :  { %v307_v42 = vpop.permute.xlu0 %306  ;;  %v315_v46 = vpop.permute.xlu1 %314 }
  0xf7   :  { %v407_v51 = vmul.f32 %v5049_v10, %v307_v42  ;;  %v409_v3 = vmul.f32 %v5049_v10, %v315_v46 }
  0xf8   :  { %v4179_v39 = vpop.eup %4178 }
  0xf9   :  { %v439_v56 = vadd.f32 %v407_v51, %v243_v16  ;;  %566 = vperm.xlu1 %4079, %v4939_v30   ;;  %v732_v48 = vpack.c.bf16 %v4177_v44, %v4179_v39  ;;  %v605_v30 = vmul.f32 %v5053_v13, %v5027_v55  ;;  %v441_v5 = vadd.f32 %v409_v3, %v245_v34  ;;  %v5191_v39 = vld [vmem:[#allocation2 + $0x78] sm:$0xff]  }
  0xfa   :  { %v319_v4 = vpop.permute.xlu0 %318  ;;  %v246_v55 = vmul.f32 %v5051_v12, %v137_v27  ;;  %v250_v44 = vmul.f32 %v5051_v12, %v5122_v54  ;;  %3635 = vmatprep.subr.bf16.mxu1 %v5191_v39 }
  0xfb   :  { %v635_v36 = vadd.f32 %v603_v37, %v439_v56  ;;  %3611 = vmatprep.mubr.bf16.mxu0 %v732_v48  ;;  %v142_v63 = vpop.permute.xlu1 %141  ;;  %v410_v41 = vmul.f32 %v5049_v10, %v319_v4  ;;  %v637_v14 = vadd.f32 %v605_v30, %v441_v5 }
  0xfc   :  { %v247_v17 = vmul.f32 %v5051_v12, %v142_v63 }
  0xfd   :  { %v674_v33 = vadd.f32 %v5079_v38, %v635_v36  ;;  %570 = vperm.xlu1 %4079, %v63_v18   ;;  %v442_v22 = vadd.f32 %v410_v41, %v246_v55  ;;  %v676_v18 = vadd.f32 %v5079_v38, %v637_v14 }
  0xfe   :  { %v323_v19 = vpop.permute.xlu0 %322 }
  0xff   :  { %4182 = vtanh.f32 %v674_v33  ;;  %v147_v40 = vpop.permute.xlu1 %146  ;;  %v411_v50 = vmul.f32 %v5049_v10, %v323_v19 }
 0x100   :  { %v248_v47 = vmul.f32 %v5051_v12, %v147_v40  ;;  %v4181_v2 = vpop.eup %4180  ;;  %4184 = vtanh.f32 %v676_v18  ;;  %v251_v40 = vmul.f32 %v5051_v12, %v5128_v62 }
 0x101   :  { %4082 = vset.pattern.permute.xlu1 %v4784_v7  ;;  %v443_v28 = vadd.f32 %v411_v50, %v247_v17  ;;  %v253_v17 = vmul.f32 %v5051_v12, %v5132_v49 }
 0x102   :  { %216 = vperm.xlu1 %4082, %v4993_v43   ;;  %v339_v34 = vpop.permute.xlu0 %338 }
 0x103   :  { %v415_v4 = vmul.f32 %v5049_v10, %v339_v34 }
 0x104   :  { %v327_v6 = vpop.permute.xlu1 %326 }
 0x105   :  { %v412_v11 = vmul.f32 %v5049_v10, %v327_v6 }
 0x106   :  { %4083 = vset.pattern.permute.xlu1 %v4783_v0 }
 0x107   :  { %v444_v20 = vadd.f32 %v412_v11, %v248_v47  ;;  %378 = vperm.xlu1 %4083, %v4945_v31   ;;  %v447_v11 = vadd.f32 %v415_v4, %v251_v40  ;;  %v4100_v4 = vld [vmem:[#allocation2 + $0x58] sm:$0xff]  }
 0x109   :  { %v515_v21 = vpop.permute.xlu1 %514  ;;  %v640_v24 = vadd.f32 %v608_v53, %v444_v20 }
 0x10a   :  { %v606_v23 = vmul.f32 %v5053_v13, %v515_v21 }
 0x10b   :  { %4084 = vset.pattern.permute.xlu1 %v4784_v7  ;;  %v679_v16 = vadd.f32 %v5079_v38, %v640_v24 }
 0x10c   :  { %v4183_v57 = vpop.eup %4182  ;;  %v638_v26 = vadd.f32 %v606_v23, %v442_v22  ;;  %221 = vperm.xlu1 %4084, %v5002_v45  }
 0x10d   :  { %v519_v31 = vpop.permute.xlu1 %518  ;;  %v733_v27 = vpack.c.bf16 %v4181_v2, %v4183_v57  ;;  %v4185_v37 = vpop.eup %4184 }
 0x10e   :  { %v677_v29 = vadd.f32 %v5079_v38, %v638_v26  ;;  %v607_v32 = vmul.f32 %v5053_v13, %v519_v31 }
 0x10f   :  { %3612 = vmatmul.mubr.bf16.gmra.mxu0 %v733_v27  ;;  %v613_v27 = vmul.f32 %v5053_v13, %v5038_v61  ;;  %v4098_v61 = vld [vmem:[#allocation2 + $0x68] sm:$0xff]  }
 0x110   :  { %4186 = vtanh.f32 %v677_v29  ;;  %v639_v35 = vadd.f32 %v607_v32, %v443_v28  ;;  %226 = vperm.xlu1 %4084, %v5021_v52  }
 0x111   :  { %4188 = vtanh.f32 %v679_v16 }
 0x112   :  { %v678_v7 = vadd.f32 %v5079_v38, %v639_v35  ;;  %v152_v42 = vpop.permute.xlu1 %151 }
 0x114   :  { %4190 = vtanh.f32 %v678_v7  ;;  %4085 = vset.pattern.permute.xlu1 %v4783_v0  ;;  %v610_v0 = vmul.f32 %v5053_v13, %v5035_v59  ;;  %v249_v59 = vmul.f32 %v5051_v12, %v152_v42 }
 0x115   :  { %390 = vperm.xlu1 %4085, %v5021_v52  }
 0x117   :  { %v331_v46 = vpop.permute.xlu1 %330 }
 0x118   :  { %v413_v3 = vmul.f32 %v5049_v10, %v331_v46 }
 0x119   :  { %4087 = vset.pattern.permute.xlu1 %v4785_v8 }
 0x11a   :  { %578 = vperm.xlu1 %4087, %v4993_v43   ;;  %v445_v30 = vadd.f32 %v413_v3, %v249_v59 }
 0x11b   :  { %v335_v51 = vpop.permute.xlu1 %334 }
 0x11c   :  { %v414_v56 = vmul.f32 %v5049_v10, %v335_v51  ;;  %v351_v51 = vpop.permute.xlu0 %350 }
 0x11d   :  { %v4187_v48 = vpop.eup %4186 }
 0x11e   :  { %v446_v52 = vadd.f32 %v414_v56, %v250_v44  ;;  %582 = vperm.xlu1 %4087, %v5002_v45   ;;  %v734_v8 = vpack.c.bf16 %v4187_v48, %v4185_v37  ;;  %v4189_v60 = vpop.eup %4188  ;;  %v4097_v44 = vld [vmem:[#allocation2 + $0x70] sm:$0xff]   ;;  %v418_v48 = vmul.f32 %v5049_v10, %v351_v51 }
 0x120   :  { %v642_v54 = vadd.f32 %v610_v0, %v446_v52  ;;  %3615 = vmatprep.mubr.bf16.mxu0 %v734_v8  ;;  %v167_v43 = vpop.permute.xlu1 %166  ;;  %v616_v8 = vmul.f32 %v5053_v13, %v5040_v1 }
 0x121   :  { %v4191_v36 = vpop.eup %4190  ;;  %v252_v62 = vmul.f32 %v5051_v12, %v167_v43  ;;  %v4099_v43 = vld [vmem:[#allocation2 + $0x60] sm:$0xff]  }
 0x122   :  { %v735_v63 = vpack.c.bf16 %v4189_v60, %v4191_v36  ;;  %v681_v6 = vadd.f32 %v5079_v38, %v642_v54  ;;  %v355_v60 = vpop.permute.xlu0 %354 }
 0x124   :  { %3616 = vmatmul.mubr.bf16.gmra.mxu0 %v735_v63  ;;  %4192 = vtanh.f32 %v681_v6 }
 0x125   :  { %v343_v33 = vpop.permute.xlu1 %342 }
 0x126   :  { %v416_v53 = vmul.f32 %v5049_v10, %v343_v33 }
 0x128   :  { %v448_v21 = vadd.f32 %v416_v53, %v252_v62  ;;  %v4102_v53 = vld [vmem:[#allocation2 + $0x48] sm:$0xff]  }
 0x12a   :  { %v527_v45 = vpop.permute.xlu1 %526 }
 0x12b   :  { %v609_v5 = vmul.f32 %v5053_v13, %v527_v45 }
 0x12d   :  { %v641_v47 = vadd.f32 %v609_v5, %v445_v30 }
 0x12e   :  { %v535_v41 = vpop.permute.xlu1 %534 }
 0x12f   :  { %v680_v14 = vadd.f32 %v5079_v38, %v641_v47  ;;  %v611_v19 = vmul.f32 %v5053_v13, %v535_v41  ;;  %v4101_v47 = vld [vmem:[#allocation2 + $0x50] sm:$0xff]  }
 0x131   :  { %4194 = vtanh.f32 %v680_v14  ;;  %v643_v20 = vadd.f32 %v611_v19, %v447_v11  ;;  %v4193_v57 = vpop.eup %4192  ;;  %v4103_v19 = vld [vmem:[#allocation2 + $0x40] sm:$0xff]  }
 0x132   :  { %v539_v55 = vpop.permute.xlu1 %538 }
 0x133   :  { %v612_v22 = vmul.f32 %v5053_v13, %v539_v55  ;;  %v682_v50 = vadd.f32 %v5079_v38, %v643_v20  ;;  %v258_v55 = vmul.f32 %v5051_v12, %v5140_v25 }
 0x135   :  { %v644_v23 = vadd.f32 %v612_v22, %v448_v21  ;;  %4196 = vtanh.f32 %v682_v50  ;;  %v618_v50 = vmul.f32 %v5053_v13, %v5047_v9  ;;  %v259_v9 = vmul.f32 %v5051_v12, %v5143_v58 }
 0x137   :  { %v683_v2 = vadd.f32 %v5079_v38, %v644_v23  ;;  %v177_v18 = vpop.permute.xlu1 %176 }
 0x138   :  { %v254_v0 = vmul.f32 %v5051_v12, %v177_v18 }
 0x139   :  { %4198 = vtanh.f32 %v683_v2 }
 0x13a   :  { %v450_v36 = vadd.f32 %v418_v48, %v254_v0 }
 0x13c   :  { %v347_v24 = vpop.permute.xlu1 %346 }
 0x13d   :  { %v417_v26 = vmul.f32 %v5049_v10, %v347_v24 }
 0x13e   :  { %v4195_v31 = vpop.eup %4194 }
 0x13f   :  { %v449_v28 = vadd.f32 %v417_v26, %v253_v17  ;;  %v736_v29 = vpack.c.bf16 %v4193_v57, %v4195_v31 }
 0x141   :  { %v645_v32 = vadd.f32 %v613_v27, %v449_v28  ;;  %3619 = vmatprep.mubr.bf16.mxu1 %v736_v29  ;;  %v182_v16 = vpop.permute.xlu1 %181  ;;  %v371_v27 = vpop.permute.xlu0 %370 }
 0x142   :  { %v4197_v35 = vpop.eup %4196  ;;  %v255_v63 = vmul.f32 %v5051_v12, %v182_v16 }
 0x143   :  { %v684_v34 = vadd.f32 %v5079_v38, %v645_v32  ;;  %v423_v32 = vmul.f32 %v5049_v10, %v371_v27 }
 0x145   :  { %v187_v7 = vpop.permute.xlu1 %186  ;;  %4200 = vtanh.f32 %v684_v34 }
 0x146   :  { %v4199_v42 = vpop.eup %4198  ;;  %v256_v49 = vmul.f32 %v5051_v12, %v187_v7 }
 0x147   :  { %v737_v46 = vpack.c.bf16 %v4199_v42, %v4197_v35 }
 0x149   :  { %3620 = vmatmul.mubr.bf16.vlgmr.msra.gmra.mxu1 %v737_v46 }
 0x14a   :  { %v359_v37 = vpop.permute.xlu1 %358  ;;  %3636 = vmatpush3.bf16.msra.mxu1 %v5191_v39  ;;  %v419_v39 = vmul.f32 %v5049_v10, %v355_v60 }
 0x14b   :  { %v420_v56 = vmul.f32 %v5049_v10, %v359_v37  ;;  %3637 = vmatprep.subr.bf16.mxu1 %v4097_v44 }
 0x14c   :  { %v451_v1 = vadd.f32 %v419_v39, %v255_v63 }
 0x14d   :  { %v452_v52 = vadd.f32 %v420_v56, %v256_v49 }
 0x14e   :  { %3638 = vmatpush3.bf16.msra.mxu1 %v4097_v44  ;;  %v455_v44 = vadd.f32 %v423_v32, %v259_v9 }
 0x14f   :  { %v547_v54 = vpop.permute.xlu1 %546  ;;  %3639 = vmatprep.subr.bf16.mxu1 %v4098_v61  ;;  %v648_v3 = vadd.f32 %v616_v8, %v452_v52 }
 0x150   :  { %v614_v33 = vmul.f32 %v5053_v13, %v547_v54 }
 0x151   :  { %v687_v5 = vadd.f32 %v5079_v38, %v648_v3 }
 0x152   :  { %v646_v40 = vadd.f32 %v614_v33, %v450_v36  ;;  %3640 = vmatpush3.bf16.msra.mxu1 %v4098_v61  ;;  %v4201_v20 = vpop.eup %4200 }
 0x153   :  { %v551_v59 = vpop.permute.xlu1 %550  ;;  %3641 = vmatprep.subr.bf16.mxu1 %v4099_v43 }
 0x154   :  { %v685_v45 = vadd.f32 %v5079_v38, %v646_v40  ;;  %v615_v30 = vmul.f32 %v5053_v13, %v551_v59 }
 0x156   :  { %4202 = vtanh.f32 %v685_v45  ;;  %v647_v6 = vadd.f32 %v615_v30, %v451_v1  ;;  %3642 = vmatpush3.bf16.msra.mxu1 %v4099_v43  ;;  %v383_v43 = vpop.permute.xlu0 %382  ;;  %v261_v30 = vmul.f32 %v5051_v12, %v5147_v15 }
 0x157   :  { %3643 = vmatprep.subr.bf16.mxu1 %v4100_v4  ;;  %4204 = vtanh.f32 %v687_v5 }
 0x158   :  { %v686_v11 = vadd.f32 %v5079_v38, %v647_v6  ;;  %v192_v41 = vpop.permute.xlu1 %191 }
 0x159   :  { %v257_v28 = vmul.f32 %v5051_v12, %v192_v41 }
 0x15a   :  { %4206 = vtanh.f32 %v686_v11  ;;  %3644 = vmatpush3.bf16.msra.mxu1 %v4100_v4  ;;  %v387_v3 = vpop.permute.xlu0 %386 }
 0x15b   :  { %3645 = vmatprep.subr.bf16.mxu1 %v4101_v47 }
 0x15d   :  { %v363_v14 = vpop.permute.xlu1 %362 }
 0x15e   :  { %3646 = vmatpush3.bf16.msra.mxu1 %v4101_v47  ;;  %v421_v25 = vmul.f32 %v5049_v10, %v363_v14  ;;  %v575_v45 = vpop.permute.xlu0 %574 }
 0x15f   :  { %3647 = vmatprep.subr.bf16.mxu1 %v4102_v53  ;;  %v621_v47 = vmul.f32 %v5053_v13, %v575_v45 }
 0x160   :  { %v453_v16 = vadd.f32 %v421_v25, %v257_v28 }
 0x161   :  { %v367_v62 = vpop.permute.xlu1 %366 }
 0x162   :  { %v422_v21 = vmul.f32 %v5049_v10, %v367_v62  ;;  %3648 = vmatpush3.bf16.msra.mxu1 %v4102_v53  ;;  %v587_v41 = vpop.permute.xlu0 %586 }
 0x163   :  { %v4203_v22 = vpop.eup %4202  ;;  %3649 = vmatprep.subr.bf16.mxu1 %v4103_v19 }
 0x164   :  { %v454_v23 = vadd.f32 %v422_v21, %v258_v55  ;;  %v738_v2 = vpack.c.bf16 %v4203_v22, %v4201_v20  ;;  %v4205_v18 = vpop.eup %4204  ;;  %v624_v55 = vmul.f32 %v5053_v13, %v587_v41  ;;  %v426_v21 = vmul.f32 %v5049_v10, %v383_v43 }
 0x166   :  { %v650_v24 = vadd.f32 %v618_v50, %v454_v23  ;;  %3623 = vmatprep.mubr.bf16.mxu1 %v738_v2  ;;  %v207_v57 = vpop.permute.xlu1 %206  ;;  %3650 = vmatpush3.bf16.msra.mxu1 %v4103_v19 }
 0x167   :  { %v4207_v17 = vpop.eup %4206  ;;  %v260_v56 = vmul.f32 %v5051_v12, %v207_v57 }
 0x168   :  { %v739_v26 = vpack.c.bf16 %v4205_v18, %v4207_v17  ;;  %v689_v7 = vadd.f32 %v5079_v38, %v650_v24  ;;  %v427_v24 = vmul.f32 %v5049_v10, %v387_v3 }
 0x16a   :  { %3624 = vmatmul.mubr.bf16.gmra.mxu1 %v739_v26  ;;  %4208 = vtanh.f32 %v689_v7 }
 0x16b   :  { %v375_v31 = vpop.permute.xlu1 %374 }
 0x16c   :  { %v424_v51 = vmul.f32 %v5049_v10, %v375_v31 }
 0x16e   :  { %v456_v48 = vadd.f32 %v424_v51, %v260_v56 }
 0x170   :  { %v559_v29 = vpop.permute.xlu1 %558 }
 0x171   :  { %v617_v35 = vmul.f32 %v5053_v13, %v559_v29 }
 0x173   :  { %v649_v42 = vadd.f32 %v617_v35, %v453_v16 }
 0x174   :  { %v567_v46 = vpop.permute.xlu1 %566 }
 0x175   :  { %v688_v37 = vadd.f32 %v5079_v38, %v649_v42  ;;  %v619_v49 = vmul.f32 %v5053_v13, %v567_v46 }
 0x177   :  { %4210 = vtanh.f32 %v688_v37  ;;  %v651_v58 = vadd.f32 %v619_v49, %v455_v44  ;;  %v4209_v36 = vpop.eup %4208 }
 0x178   :  { %v571_v61 = vpop.permute.xlu1 %570 }
 0x179   :  { %v620_v0 = vmul.f32 %v5053_v13, %v571_v61  ;;  %v690_v52 = vadd.f32 %v5079_v38, %v651_v58 }
 0x17b   :  { %v652_v8 = vadd.f32 %v620_v0, %v456_v48  ;;  %4212 = vtanh.f32 %v690_v52 }
 0x17d   :  { %v691_v60 = vadd.f32 %v5079_v38, %v652_v8  ;;  %v217_v54 = vpop.permute.xlu1 %216 }
 0x17e   :  { %v262_v19 = vmul.f32 %v5051_v12, %v217_v54 }
 0x17f   :  { %4214 = vtanh.f32 %v691_v60 }
 0x180   :  { %v458_v22 = vadd.f32 %v426_v21, %v262_v19 }
 0x182   :  { %v379_v39 = vpop.permute.xlu1 %378 }
 0x183   :  { %v425_v59 = vmul.f32 %v5049_v10, %v379_v39 }
 0x184   :  { %v4211_v63 = vpop.eup %4210 }
 0x185   :  { %v740_v33 = vpack.c.bf16 %v4209_v36, %v4211_v63  ;;  %v457_v6 = vadd.f32 %v425_v59, %v261_v30 }
 0x187   :  { %3627 = vmatprep.mubr.bf16.mxu1 %v740_v33  ;;  %v222_v34 = vpop.permute.xlu1 %221  ;;  %v653_v62 = vadd.f32 %v621_v47, %v457_v6 }
 0x188   :  { %v4213_v40 = vpop.eup %4212  ;;  %v263_v50 = vmul.f32 %v5051_v12, %v222_v34 }
 0x189   :  { %v692_v2 = vadd.f32 %v5079_v38, %v653_v62 }
 0x18a   :  { %v459_v26 = vadd.f32 %v427_v24, %v263_v50 }
 0x18b   :  { %v227_v4 = vpop.permute.xlu1 %226  ;;  %4216 = vtanh.f32 %v692_v2 }
 0x18c   :  { %v4215_v1 = vpop.eup %4214  ;;  %v264_v53 = vmul.f32 %v5051_v12, %v227_v4 }
 0x18d   :  { %v741_v5 = vpack.c.bf16 %v4215_v1, %v4213_v40 }
 0x18f   :  { %3628 = vmatmul.mubr.bf16.gmra.mxu1 %v741_v5 }
 0x190   :  { %v391_v11 = vpop.permute.xlu1 %390 }
 0x191   :  { %v428_v14 = vmul.f32 %v5049_v10, %v391_v11  ;;  %v5271_v10 = vld [vmem:[%s5608_s4] ss:$0 sm:$0xff] }
 0x193   :  { %v460_v20 = vadd.f32 %v428_v14, %v264_v53 }
 0x195   :  { %v579_v15 = vpop.permute.xlu1 %578  ;;  %v656_v18 = vadd.f32 %v624_v55, %v460_v20 }
 0x196   :  { %v622_v23 = vmul.f32 %v5053_v13, %v579_v15 }
 0x197   :  { %v695_v27 = vadd.f32 %v5079_v38, %v656_v18 }
 0x198   :  { %v654_v57 = vadd.f32 %v622_v23, %v458_v22  ;;  %v4217_v35 = vpop.eup %4216 }
 0x199   :  { %v583_v17 = vpop.permute.xlu1 %582 }
 0x19a   :  { %v693_v31 = vadd.f32 %v5079_v38, %v654_v57  ;;  %v623_v25 = vmul.f32 %v5053_v13, %v583_v17  ;;  %v4104_v17 = vld [vmem:[#allocation2 + $0xb8] sm:$0xff]  }
 0x19b   :  { %3683 = vmatprep.subr.bf16.mxu0 %v4104_v17 }
 0x19c   :  { %4218 = vtanh.f32 %v693_v31  ;;  %v655_v28 = vadd.f32 %v623_v25, %v459_v26  ;;  %3684 = vmatpush3.bf16.msra.mxu0 %v4104_v17  ;;  %v4105_v25 = vld [vmem:[#allocation2 + $0xb0] sm:$0xff]  }
 0x19d   :  { %4220 = vtanh.f32 %v695_v27  ;;  %3685 = vmatprep.subr.bf16.mxu0 %v4105_v25 }
 0x19e   :  { %v694_v12 = vadd.f32 %v5079_v38, %v655_v28 }
 0x1a0   :  { %4222 = vtanh.f32 %v694_v12  ;;  %3686 = vmatpush3.bf16.msra.mxu0 %v4105_v25 }
 0x1a2   :  { %v3605_v29 = vpop.f32.mrf.mxu0 }
 0x1a3   :  { %v858_v7 = vadd.f32 %v3605_v29, %v5271_v10 }
 0x1a4   :  { %v849_v9 = vpop.f32.mrf.mxu0 }
 0x1a5   :  { %v850_v32 = vadd.f32 %v5271_v10, %v849_v9  ;;  %v4106_v9 = vld [vmem:[#allocation2 + $0xa8] sm:$0xff]  }
 0x1a6   :  { %v3606_v16 = vpop.f32.mrf.mxu0  ;;  %3687 = vmatprep.subr.bf16.mxu0 %v4106_v9 }
 0x1a7   :  { %v861_v13 = vadd.f32 %v3606_v16, %v5271_v10  ;;  %4224 = vtanh.f32 %v850_v32  ;;  %3688 = vmatpush3.bf16.msra.mxu0 %v4106_v9  ;;  %v4107_v32 = vld [vmem:[#allocation2 + $0xa0] sm:$0xff]   ;;  %v4108_v16 = vld [vmem:[#allocation2 + $0x98] sm:$0xff]  }
 0x1a8   :  { %v852_v42 = vpop.f32.mrf.mxu0  ;;  %3689 = vmatprep.subr.bf16.mxu0 %v4107_v32 }
 0x1a9   :  { %v4219_v46 = vpop.eup %4218  ;;  %v853_v38 = vadd.f32 %v5271_v10, %v852_v42  ;;  %4226 = vtanh.f32 %v861_v13 }
 0x1aa   :  { %v3609_v44 = vpop.f32.mrf.mxu0  ;;  %v742_v51 = vpack.c.bf16 %v4219_v46, %v4217_v35  ;;  %v4221_v37 = vpop.eup %4220  ;;  %v4109_v35 = vld [vmem:[#allocation2 + $0x90] sm:$0xff]  }
 0x1ab   :  { %4228 = vtanh.f32 %v853_v38  ;;  %v874_v52 = vadd.f32 %v3609_v44, %v5271_v10  ;;  %3690 = vmatpush3.bf16.msra.mxu0 %v4107_v32  ;;  %v4110_v38 = vld [vmem:[#allocation2 + $0x88] sm:$0xff]   ;;  %v4111_v44 = vld [vmem:[#allocation2 + $0x80] sm:$0xff]  }
 0x1ac   :  { %4230 = vtanh.f32 %v858_v7  ;;  %v865_v49 = vpop.f32.mrf.mxu0  ;;  %3631 = vmatprep.mubr.bf16.mxu1 %v742_v51  ;;  %3691 = vmatprep.subr.bf16.mxu0 %v4108_v16 }
 0x1ad   :  { %v4223_v56 = vpop.eup %4222  ;;  %v866_v58 = vadd.f32 %v5271_v10, %v865_v49 }
 0x1ae   :  { %v3610_v61 = vpop.f32.mrf.mxu0  ;;  %v743_v48 = vpack.c.bf16 %v4221_v37, %v4223_v56 }
 0x1af   :  { %v877_v0 = vadd.f32 %v3610_v61, %v5271_v10  ;;  %4232 = vtanh.f32 %v866_v58  ;;  %3692 = vmatpush3.bf16.msra.mxu0 %v4108_v16 }
 0x1b0   :  { %v868_v8 = vpop.f32.mrf.mxu0  ;;  %3632 = vmatmul.mubr.bf16.gmra.mxu1 %v743_v48  ;;  %3693 = vmatprep.subr.bf16.mxu0 %v4109_v35 }
 0x1b1   :  { %v869_v60 = vadd.f32 %v5271_v10, %v868_v8  ;;  %4234 = vtanh.f32 %v877_v0 }
 0x1b3   :  { %4236 = vtanh.f32 %v869_v60  ;;  %3694 = vmatpush3.bf16.msra.mxu0 %v4109_v35 }
 0x1b4   :  { %4238 = vtanh.f32 %v874_v52  ;;  %v4225_v54 = vpop.eup %4224  ;;  %3695 = vmatprep.subr.bf16.mxu0 %v4110_v38 }
 0x1b6   :  { %v4227_v43 = vpop.eup %4226 }
 0x1b7   :  { %3696 = vmatpush3.bf16.msra.mxu0 %v4110_v38 }
 0x1b8   :  { %v4229_v39 = vpop.eup %4228  ;;  %3697 = vmatprep.subr.bf16.mxu0 %v4111_v44 }
 0x1b9   :  { %v4231_v36 = vpop.eup %4230  ;;  %v1008_v63 = vpack.c.bf16 %v4229_v39, %v4225_v54 }
 0x1ba   :  { %v1009_v33 = vpack.c.bf16 %v4227_v43, %v4231_v36 }
 0x1bb   :  { %3651 = vmatprep.mubr.bf16.mxu1 %v1008_v63  ;;  %3698 = vmatpush3.bf16.msra.mxu0 %v4111_v44 }
 0x1bc   :  { %3652 = vmatmul.mubr.bf16.vlgmr.msra.gmra.mxu1 %v1009_v33  ;;  %v4233_v34 = vpop.eup %4232 }
 0x1be   :  { %v4235_v3 = vpop.eup %4234 }
 0x1c0   :  { %v4237_v40 = vpop.eup %4236 }
 0x1c1   :  { %v4239_v59 = vpop.eup %4238  ;;  %v1010_v4 = vpack.c.bf16 %v4237_v40, %v4233_v34 }
 0x1c2   :  { %v1011_v1 = vpack.c.bf16 %v4235_v3, %v4239_v59 }
 0x1c3   :  { %3655 = vmatprep.mubr.bf16.mxu1 %v1010_v4 }
 0x1c4   :  { %3656 = vmatmul.mubr.bf16.gmra.mxu1 %v1011_v1 }
 0x1cf   :  { %v3613_v45 = vpop.f32.mrf.mxu0 }
 0x1d0   :  { %v890_v11 = vadd.f32 %v3613_v45, %v5271_v10 }
 0x1d1   :  { %v881_v30 = vpop.f32.mrf.mxu0 }
 0x1d2   :  { %v882_v5 = vadd.f32 %v5271_v10, %v881_v30 }
 0x1d3   :  { %v3614_v6 = vpop.f32.mrf.mxu0 }
 0x1d4   :  { %v893_v47 = vadd.f32 %v3614_v6, %v5271_v10  ;;  %4240 = vtanh.f32 %v882_v5 }
 0x1d5   :  { %v884_v41 = vpop.f32.mrf.mxu0 }
 0x1d6   :  { %v885_v53 = vadd.f32 %v5271_v10, %v884_v41  ;;  %4242 = vtanh.f32 %v893_v47 }
 0x1d8   :  { %4244 = vtanh.f32 %v885_v53 }
 0x1d9   :  { %4246 = vtanh.f32 %v890_v11 }
 0x1e1   :  { %v4241_v14 = vpop.eup %4240 }
 0x1e3   :  { %v4243_v19 = vpop.eup %4242 }
 0x1e4   :  { %v3617_v62 = vpop.f32.mrf.mxu0 }
 0x1e5   :  { %v4245_v20 = vpop.eup %4244  ;;  %v906_v18 = vadd.f32 %v3617_v62, %v5271_v10 }
 0x1e6   :  { %v4247_v55 = vpop.eup %4246  ;;  %v897_v21 = vpop.f32.mrf.mxu0  ;;  %v1012_v15 = vpack.c.bf16 %v4245_v20, %v4241_v14 }
 0x1e7   :  { %v898_v22 = vadd.f32 %v5271_v10, %v897_v21  ;;  %v1013_v50 = vpack.c.bf16 %v4243_v19, %v4247_v55 }
 0x1e8   :  { %v3618_v23 = vpop.f32.mrf.mxu0  ;;  %3659 = vmatprep.mubr.bf16.mxu1 %v1012_v15 }
 0x1e9   :  { %v909_v2 = vadd.f32 %v3618_v23, %v5271_v10  ;;  %3660 = vmatmul.mubr.bf16.gmra.mxu1 %v1013_v50  ;;  %4248 = vtanh.f32 %v898_v22 }
 0x1ea   :  { %v900_v24 = vpop.f32.mrf.mxu0 }
 0x1eb   :  { %v901_v57 = vadd.f32 %v5271_v10, %v900_v24  ;;  %4250 = vtanh.f32 %v909_v2 }
 0x1ed   :  { %4252 = vtanh.f32 %v901_v57 }
 0x1ee   :  { %4254 = vtanh.f32 %v906_v18 }
 0x1f6   :  { %v4249_v26 = vpop.eup %4248 }
 0x1f8   :  { %v4251_v31 = vpop.eup %4250 }
 0x1fa   :  { %v4253_v27 = vpop.eup %4252 }
 0x1fb   :  { %v4255_v28 = vpop.eup %4254  ;;  %v1014_v12 = vpack.c.bf16 %v4253_v27, %v4249_v26 }
 0x1fc   :  { %v1015_v29 = vpack.c.bf16 %v4251_v31, %v4255_v28  ;;  %v5308_v31 = vld [vmem:[%s5608_s4 + $0x1] ss:$0 sm:$0xff] }
 0x1fd   :  { %3663 = vmatprep.mubr.bf16.mxu1 %v1014_v12 }
 0x1fe   :  { %3664 = vmatmul.mubr.bf16.gmra.mxu1 %v1015_v29 }
 0x209   :  { %v3621_v13 = vpop.f32.mrf.mxu1 }
 0x20a   :  { %v922_v37 = vadd.f32 %v3621_v13, %v5271_v10 }
 0x20b   :  { %v913_v7 = vpop.f32.mrf.mxu1 }
 0x20c   :  { %v914_v42 = vadd.f32 %v5271_v10, %v913_v7 }
 0x20d   :  { %v3622_v46 = vpop.f32.mrf.mxu1 }
 0x20e   :  { %v925_v51 = vadd.f32 %v3622_v46, %v5271_v10  ;;  %4256 = vtanh.f32 %v914_v42 }
 0x20f   :  { %v916_v49 = vpop.f32.mrf.mxu1 }
 0x210   :  { %v917_v56 = vadd.f32 %v5271_v10, %v916_v49  ;;  %4258 = vtanh.f32 %v925_v51 }
 0x212   :  { %4260 = vtanh.f32 %v917_v56 }
 0x213   :  { %4262 = vtanh.f32 %v922_v37 }
 0x21b   :  { %v4257_v58 = vpop.eup %4256 }
 0x21d   :  { %v4259_v61 = vpop.eup %4258 }
 0x21f   :  { %v4261_v48 = vpop.eup %4260 }
 0x220   :  { %v4263_v0 = vpop.eup %4262  ;;  %v1016_v52 = vpack.c.bf16 %v4261_v48, %v4257_v58 }
 0x221   :  { %v1017_v8 = vpack.c.bf16 %v4259_v61, %v4263_v0 }
 0x222   :  { %3667 = vmatprep.mubr.bf16.mxu1 %v1016_v52 }
 0x223   :  { %3668 = vmatmul.mubr.bf16.gmra.mxu1 %v1017_v8 }
 0x22a   :  { %v3625_v60 = vpop.f32.mrf.mxu1 }
 0x22b   :  { %v938_v63 = vadd.f32 %v3625_v60, %v5271_v10 }
 0x22c   :  { %v929_v54 = vpop.f32.mrf.mxu1 }
 0x22d   :  { %v930_v43 = vadd.f32 %v5271_v10, %v929_v54 }
 0x22e   :  { %v3626_v39 = vpop.f32.mrf.mxu1 }
 0x22f   :  { %v941_v36 = vadd.f32 %v3626_v39, %v5271_v10  ;;  %4264 = vtanh.f32 %v930_v43 }
 0x230   :  { %v932_v33 = vpop.f32.mrf.mxu1 }
 0x231   :  { %v933_v34 = vadd.f32 %v5271_v10, %v932_v33  ;;  %4266 = vtanh.f32 %v941_v36 }
 0x233   :  { %4268 = vtanh.f32 %v933_v34 }
 0x234   :  { %4270 = vtanh.f32 %v938_v63 }
 0x23c   :  { %v4265_v3 = vpop.eup %4264 }
 0x23e   :  { %v4267_v40 = vpop.eup %4266 }
 0x240   :  { %v4269_v59 = vpop.eup %4268 }
 0x241   :  { %v4271_v4 = vpop.eup %4270  ;;  %v1018_v1 = vpack.c.bf16 %v4269_v59, %v4265_v3 }
 0x242   :  { %v1019_v45 = vpack.c.bf16 %v4267_v40, %v4271_v4 }
 0x243   :  { %3671 = vmatprep.mubr.bf16.mxu1 %v1018_v1 }
 0x244   :  { %3672 = vmatmul.mubr.bf16.gmra.mxu1 %v1019_v45 }
 0x24f   :  { %v3629_v30 = vpop.f32.mrf.mxu1 }
 0x250   :  { %v954_v41 = vadd.f32 %v3629_v30, %v5271_v10 }
 0x251   :  { %v945_v5 = vpop.f32.mrf.mxu1 }
 0x252   :  { %v946_v6 = vadd.f32 %v5271_v10, %v945_v5 }
 0x253   :  { %v3630_v47 = vpop.f32.mrf.mxu1 }
 0x254   :  { %v957_v11 = vadd.f32 %v3630_v47, %v5271_v10  ;;  %4272 = vtanh.f32 %v946_v6 }
 0x255   :  { %v948_v53 = vpop.f32.mrf.mxu1 }
 0x256   :  { %v949_v14 = vadd.f32 %v5271_v10, %v948_v53  ;;  %4274 = vtanh.f32 %v957_v11 }
 0x258   :  { %4276 = vtanh.f32 %v949_v14 }
 0x259   :  { %4278 = vtanh.f32 %v954_v41 }
 0x261   :  { %v4273_v19 = vpop.eup %4272 }
 0x263   :  { %v4275_v62 = vpop.eup %4274 }
 0x265   :  { %v4277_v20 = vpop.eup %4276 }
 0x266   :  { %v4279_v55 = vpop.eup %4278  ;;  %v1020_v21 = vpack.c.bf16 %v4277_v20, %v4273_v19 }
 0x267   :  { %v1021_v15 = vpack.c.bf16 %v4275_v62, %v4279_v55 }
 0x268   :  { %3675 = vmatprep.mubr.bf16.mxu1 %v1020_v21 }
 0x269   :  { %3676 = vmatmul.mubr.bf16.gmra.mxu1 %v1021_v15 }
 0x270   :  { %v3633_v22 = vpop.f32.mrf.mxu1 }
 0x271   :  { %v970_v24 = vadd.f32 %v3633_v22, %v5271_v10 }
 0x272   :  { %v961_v50 = vpop.f32.mrf.mxu1 }
 0x273   :  { %v962_v23 = vadd.f32 %v5271_v10, %v961_v50  ;;  %v4112_v50 = vld [vmem:[#allocation2 + $0xf8] sm:$0xff]  }
 0x274   :  { %v3634_v2 = vpop.f32.mrf.mxu1  ;;  %3731 = vmatprep.subr.bf16.mxu1 %v4112_v50 }
 0x275   :  { %v973_v18 = vadd.f32 %v3634_v2, %v5271_v10  ;;  %4280 = vtanh.f32 %v962_v23  ;;  %3732 = vmatpush3.bf16.msra.mxu1 %v4112_v50 }
 0x276   :  { %v964_v57 = vpop.f32.mrf.mxu1 }
 0x277   :  { %v965_v17 = vadd.f32 %v5271_v10, %v964_v57  ;;  %4282 = vtanh.f32 %v973_v18  ;;  %v4113_v18 = vld [vmem:[#allocation2 + $0xf0] sm:$0xff]  }
 0x278   :  { %3733 = vmatprep.subr.bf16.mxu1 %v4113_v18 }
 0x279   :  { %4284 = vtanh.f32 %v965_v17  ;;  %3734 = vmatpush3.bf16.msra.mxu1 %v4113_v18 }
 0x27a   :  { %4286 = vtanh.f32 %v970_v24 }
 0x27c   :  { %v3653_v26 = vpop.f32.mrf.mxu1 }
 0x27d   :  { %v1140_v29 = vadd.f32 %v3653_v26, %v5308_v31 }
 0x27e   :  { %v1131_v25 = vpop.f32.mrf.mxu1 }
 0x27f   :  { %v1132_v27 = vadd.f32 %v5308_v31, %v1131_v25  ;;  %v4114_v25 = vld [vmem:[#allocation2 + $0xe8] sm:$0xff]  }
 0x280   :  { %v3654_v28 = vpop.f32.mrf.mxu1  ;;  %3735 = vmatprep.subr.bf16.mxu1 %v4114_v25 }
 0x281   :  { %v1143_v12 = vadd.f32 %v3654_v28, %v5308_v31  ;;  %4288 = vtanh.f32 %v1132_v27  ;;  %3736 = vmatpush3.bf16.msra.mxu1 %v4114_v25  ;;  %v4115_v27 = vld [vmem:[#allocation2 + $0xe0] sm:$0xff]   ;;  %v4116_v28 = vld [vmem:[#allocation2 + $0xd8] sm:$0xff]  }
 0x282   :  { %v1134_v9 = vpop.f32.mrf.mxu1  ;;  %v4281_v32 = vpop.eup %4280  ;;  %3737 = vmatprep.subr.bf16.mxu1 %v4115_v27 }
 0x283   :  { %v1135_v10 = vadd.f32 %v5308_v31, %v1134_v9  ;;  %4290 = vtanh.f32 %v1143_v12 }
 0x284   :  { %v3657_v16 = vpop.f32.mrf.mxu1  ;;  %v4283_v13 = vpop.eup %4282 }
 0x285   :  { %4292 = vtanh.f32 %v1135_v10  ;;  %v1156_v49 = vadd.f32 %v3657_v16, %v5308_v31  ;;  %3738 = vmatpush3.bf16.msra.mxu1 %v4115_v27  ;;  %v4118_v16 = vld [vmem:[#allocation2 + $0xc8] sm:$0xff]  }
 0x286   :  { %v4285_v35 = vpop.eup %4284  ;;  %4294 = vtanh.f32 %v1140_v29  ;;  %v1147_v7 = vpop.f32.mrf.mxu1  ;;  %3739 = vmatprep.subr.bf16.mxu1 %v4116_v28  ;;  %v4117_v29 = vld [vmem:[#allocation2 + $0xd0] sm:$0xff]  }
 0x287   :  { %v4287_v42 = vpop.eup %4286  ;;  %v1148_v46 = vadd.f32 %v5308_v31, %v1147_v7  ;;  %v1022_v38 = vpack.c.bf16 %v4285_v35, %v4281_v32 }
 0x288   :  { %v3658_v44 = vpop.f32.mrf.mxu1  ;;  %v1023_v51 = vpack.c.bf16 %v4283_v13, %v4287_v42  ;;  %v4119_v13 = vld [vmem:[#allocation2 + $0xc0] sm:$0xff]  }
 0x289   :  { %v1159_v37 = vadd.f32 %v3658_v44, %v5308_v31  ;;  %3679 = vmatprep.mubr.bf16.mxu1 %v1022_v38  ;;  %4296 = vtanh.f32 %v1148_v46  ;;  %3740 = vmatpush3.bf16.msra.mxu1 %v4116_v28 }
 0x28a   :  { %v1150_v56 = vpop.f32.mrf.mxu1  ;;  %3680 = vmatmul.mubr.bf16.gmra.mxu1 %v1023_v51  ;;  %3741 = vmatprep.subr.bf16.mxu1 %v4117_v29 }
 0x28b   :  { %v1151_v58 = vadd.f32 %v5308_v31, %v1150_v56  ;;  %4298 = vtanh.f32 %v1159_v37 }
 0x28d   :  { %4300 = vtanh.f32 %v1151_v58  ;;  %3742 = vmatpush3.bf16.msra.mxu1 %v4117_v29 }
 0x28e   :  { %4302 = vtanh.f32 %v1156_v49  ;;  %v4289_v61 = vpop.eup %4288  ;;  %3743 = vmatprep.subr.bf16.mxu1 %v4118_v16 }
 0x290   :  { %v4291_v48 = vpop.eup %4290 }
 0x291   :  { %3744 = vmatpush3.bf16.msra.mxu1 %v4118_v16 }
 0x292   :  { %v4293_v0 = vpop.eup %4292  ;;  %3745 = vmatprep.subr.bf16.mxu1 %v4119_v13 }
 0x293   :  { %v4295_v52 = vpop.eup %4294  ;;  %v1290_v8 = vpack.c.bf16 %v4293_v0, %v4289_v61 }
 0x294   :  { %v1291_v60 = vpack.c.bf16 %v4291_v48, %v4295_v52 }
 0x295   :  { %3699 = vmatprep.mubr.bf16.mxu0 %v1290_v8  ;;  %3746 = vmatpush3.bf16.msra.mxu1 %v4119_v13 }
 0x296   :  { %3700 = vmatmul.mubr.bf16.vlgmr.msra.gmra.mxu0 %v1291_v60  ;;  %v4297_v54 = vpop.eup %4296 }
 0x298   :  { %v4299_v43 = vpop.eup %4298 }
 0x29a   :  { %v4301_v39 = vpop.eup %4300 }
 0x29b   :  { %v4303_v36 = vpop.eup %4302  ;;  %v1292_v63 = vpack.c.bf16 %v4301_v39, %v4297_v54 }
 0x29c   :  { %v1293_v33 = vpack.c.bf16 %v4299_v43, %v4303_v36 }
 0x29d   :  { %3703 = vmatprep.mubr.bf16.mxu0 %v1292_v63 }
 0x29e   :  { %3704 = vmatmul.mubr.bf16.gmra.mxu0 %v1293_v33 }
 0x2a9   :  { %v3661_v34 = vpop.f32.mrf.mxu1 }
 0x2aa   :  { %v1172_v1 = vadd.f32 %v3661_v34, %v5308_v31 }
 0x2ab   :  { %v1163_v3 = vpop.f32.mrf.mxu1 }
 0x2ac   :  { %v1164_v40 = vadd.f32 %v5308_v31, %v1163_v3 }
 0x2ad   :  { %v3662_v59 = vpop.f32.mrf.mxu1 }
 0x2ae   :  { %v1175_v4 = vadd.f32 %v3662_v59, %v5308_v31  ;;  %4304 = vtanh.f32 %v1164_v40 }
 0x2af   :  { %v1166_v45 = vpop.f32.mrf.mxu1 }
 0x2b0   :  { %v1167_v30 = vadd.f32 %v5308_v31, %v1166_v45  ;;  %4306 = vtanh.f32 %v1175_v4 }
 0x2b2   :  { %4308 = vtanh.f32 %v1167_v30 }
 0x2b3   :  { %4310 = vtanh.f32 %v1172_v1 }
 0x2bb   :  { %v4305_v5 = vpop.eup %4304 }
 0x2bd   :  { %v4307_v6 = vpop.eup %4306 }
 0x2be   :  { %v3665_v47 = vpop.f32.mrf.mxu1 }
 0x2bf   :  { %v4309_v11 = vpop.eup %4308  ;;  %v1188_v21 = vadd.f32 %v3665_v47, %v5308_v31 }
 0x2c0   :  { %v4311_v41 = vpop.eup %4310  ;;  %v1179_v53 = vpop.f32.mrf.mxu1  ;;  %v1294_v14 = vpack.c.bf16 %v4309_v11, %v4305_v5 }
 0x2c1   :  { %v1180_v19 = vadd.f32 %v5308_v31, %v1179_v53  ;;  %v1295_v62 = vpack.c.bf16 %v4307_v6, %v4311_v41 }
 0x2c2   :  { %v3666_v20 = vpop.f32.mrf.mxu1  ;;  %3707 = vmatprep.mubr.bf16.mxu0 %v1294_v14 }
 0x2c3   :  { %v1191_v55 = vadd.f32 %v3666_v20, %v5308_v31  ;;  %3708 = vmatmul.mubr.bf16.gmra.mxu0 %v1295_v62  ;;  %4312 = vtanh.f32 %v1180_v19 }
 0x2c4   :  { %v1182_v15 = vpop.f32.mrf.mxu1 }
 0x2c5   :  { %v1183_v22 = vadd.f32 %v5308_v31, %v1182_v15  ;;  %4314 = vtanh.f32 %v1191_v55 }
 0x2c7   :  { %4316 = vtanh.f32 %v1183_v22 }
 0x2c8   :  { %4318 = vtanh.f32 %v1188_v21 }
 0x2d0   :  { %v4313_v23 = vpop.eup %4312 }
 0x2d2   :  { %v4315_v2 = vpop.eup %4314 }
 0x2d4   :  { %v4317_v24 = vpop.eup %4316 }
 0x2d5   :  { %v4319_v57 = vpop.eup %4318  ;;  %v1296_v17 = vpack.c.bf16 %v4317_v24, %v4313_v23 }
 0x2d6   :  { %v1297_v26 = vpack.c.bf16 %v4315_v2, %v4319_v57  ;;  %v5345_v2 = vld [vmem:[%s5608_s4 + $0x2] ss:$0 sm:$0xff] }
 0x2d7   :  { %3711 = vmatprep.mubr.bf16.mxu0 %v1296_v17 }
 0x2d8   :  { %3712 = vmatmul.mubr.bf16.gmra.mxu0 %v1297_v26 }
 0x2e3   :  { %v3669_v12 = vpop.f32.mrf.mxu1 }
 0x2e4   :  { %v1204_v7 = vadd.f32 %v3669_v12, %v5308_v31 }
 0x2e5   :  { %v1195_v9 = vpop.f32.mrf.mxu1 }
 0x2e6   :  { %v1196_v10 = vadd.f32 %v5308_v31, %v1195_v9 }
 0x2e7   :  { %v3670_v32 = vpop.f32.mrf.mxu1 }
 0x2e8   :  { %v1207_v35 = vadd.f32 %v3670_v32, %v5308_v31  ;;  %4320 = vtanh.f32 %v1196_v10 }
 0x2e9   :  { %v1198_v42 = vpop.f32.mrf.mxu1 }
 0x2ea   :  { %v1199_v46 = vadd.f32 %v5308_v31, %v1198_v42  ;;  %4322 = vtanh.f32 %v1207_v35 }
 0x2ec   :  { %4324 = vtanh.f32 %v1199_v46 }
 0x2ed   :  { %4326 = vtanh.f32 %v1204_v7 }
 0x2f5   :  { %v4321_v38 = vpop.eup %4320 }
 0x2f7   :  { %v4323_v44 = vpop.eup %4322 }
 0x2f9   :  { %v4325_v51 = vpop.eup %4324 }
 0x2fa   :  { %v4327_v37 = vpop.eup %4326  ;;  %v1298_v49 = vpack.c.bf16 %v4325_v51, %v4321_v38 }
 0x2fb   :  { %v1299_v56 = vpack.c.bf16 %v4323_v44, %v4327_v37 }
 0x2fc   :  { %3715 = vmatprep.mubr.bf16.mxu0 %v1298_v49 }
 0x2fd   :  { %3716 = vmatmul.mubr.bf16.gmra.mxu0 %v1299_v56 }
 0x304   :  { %v3673_v58 = vpop.f32.mrf.mxu1 }
 0x305   :  { %v1220_v8 = vadd.f32 %v3673_v58, %v5308_v31 }
 0x306   :  { %v1211_v61 = vpop.f32.mrf.mxu1 }
 0x307   :  { %v1212_v48 = vadd.f32 %v5308_v31, %v1211_v61 }
 0x308   :  { %v3674_v0 = vpop.f32.mrf.mxu1 }
 0x309   :  { %v1223_v52 = vadd.f32 %v3674_v0, %v5308_v31  ;;  %4328 = vtanh.f32 %v1212_v48 }
 0x30a   :  { %v1214_v60 = vpop.f32.mrf.mxu1 }
 0x30b   :  { %v1215_v54 = vadd.f32 %v5308_v31, %v1214_v60  ;;  %4330 = vtanh.f32 %v1223_v52 }
 0x30d   :  { %4332 = vtanh.f32 %v1215_v54 }
 0x30e   :  { %4334 = vtanh.f32 %v1220_v8 }
 0x316   :  { %v4329_v43 = vpop.eup %4328 }
 0x318   :  { %v4331_v39 = vpop.eup %4330 }
 0x31a   :  { %v4333_v36 = vpop.eup %4332 }
 0x31b   :  { %v4335_v63 = vpop.eup %4334  ;;  %v1300_v33 = vpack.c.bf16 %v4333_v36, %v4329_v43 }
 0x31c   :  { %v1301_v34 = vpack.c.bf16 %v4331_v39, %v4335_v63 }
 0x31d   :  { %3719 = vmatprep.mubr.bf16.mxu0 %v1300_v33 }
 0x31e   :  { %3720 = vmatmul.mubr.bf16.gmra.mxu0 %v1301_v34 }
 0x329   :  { %v3677_v3 = vpop.f32.mrf.mxu1 }
 0x32a   :  { %v1236_v45 = vadd.f32 %v3677_v3, %v5308_v31 }
 0x32b   :  { %v1227_v40 = vpop.f32.mrf.mxu1 }
 0x32c   :  { %v1228_v59 = vadd.f32 %v5308_v31, %v1227_v40 }
 0x32d   :  { %v3678_v4 = vpop.f32.mrf.mxu1 }
 0x32e   :  { %v1239_v1 = vadd.f32 %v3678_v4, %v5308_v31  ;;  %4336 = vtanh.f32 %v1228_v59 }
 0x32f   :  { %v1230_v30 = vpop.f32.mrf.mxu1 }
 0x330   :  { %v1231_v5 = vadd.f32 %v5308_v31, %v1230_v30  ;;  %4338 = vtanh.f32 %v1239_v1 }
 0x332   :  { %4340 = vtanh.f32 %v1231_v5 }
 0x333   :  { %4342 = vtanh.f32 %v1236_v45 }
 0x33b   :  { %v4337_v6 = vpop.eup %4336 }
 0x33d   :  { %v4339_v47 = vpop.eup %4338 }
 0x33f   :  { %v4341_v11 = vpop.eup %4340 }
 0x340   :  { %v4343_v41 = vpop.eup %4342  ;;  %v1302_v53 = vpack.c.bf16 %v4341_v11, %v4337_v6 }
 0x341   :  { %v1303_v14 = vpack.c.bf16 %v4339_v47, %v4343_v41 }
 0x342   :  { %3723 = vmatprep.mubr.bf16.mxu0 %v1302_v53 }
 0x343   :  { %3724 = vmatmul.mubr.bf16.gmra.mxu0 %v1303_v14 }
 0x34a   :  { %v3681_v19 = vpop.f32.mrf.mxu1 }
 0x34b   :  { %v1252_v15 = vadd.f32 %v3681_v19, %v5308_v31 }
 0x34c   :  { %v1243_v62 = vpop.f32.mrf.mxu1 }
 0x34d   :  { %v1244_v20 = vadd.f32 %v5308_v31, %v1243_v62  ;;  %v4120_v62 = vld [vmem:[#allocation2 + $0x138] sm:$0xff]  }
 0x34e   :  { %v3682_v55 = vpop.f32.mrf.mxu1  ;;  %3779 = vmatprep.subr.bf16.mxu0 %v4120_v62 }
 0x34f   :  { %v1255_v21 = vadd.f32 %v3682_v55, %v5308_v31  ;;  %4344 = vtanh.f32 %v1244_v20  ;;  %3780 = vmatpush3.bf16.msra.mxu0 %v4120_v62 }
 0x350   :  { %v1246_v22 = vpop.f32.mrf.mxu1 }
 0x351   :  { %v1247_v50 = vadd.f32 %v5308_v31, %v1246_v22  ;;  %4346 = vtanh.f32 %v1255_v21  ;;  %v4121_v21 = vld [vmem:[#allocation2 + $0x130] sm:$0xff]  }
 0x352   :  { %3781 = vmatprep.subr.bf16.mxu0 %v4121_v21 }
 0x353   :  { %4348 = vtanh.f32 %v1247_v50  ;;  %3782 = vmatpush3.bf16.msra.mxu0 %v4121_v21 }
 0x354   :  { %4350 = vtanh.f32 %v1252_v15 }
 0x356   :  { %v3701_v23 = vpop.f32.mrf.mxu0 }
 0x357   :  { %v1422_v26 = vadd.f32 %v3701_v23, %v5345_v2 }
 0x358   :  { %v1413_v18 = vpop.f32.mrf.mxu0 }
 0x359   :  { %v1414_v24 = vadd.f32 %v5345_v2, %v1413_v18  ;;  %v4122_v18 = vld [vmem:[#allocation2 + $0x128] sm:$0xff]  }
 0x35a   :  { %v3702_v57 = vpop.f32.mrf.mxu0  ;;  %3783 = vmatprep.subr.bf16.mxu0 %v4122_v18 }
 0x35b   :  { %v1425_v17 = vadd.f32 %v3702_v57, %v5345_v2  ;;  %4352 = vtanh.f32 %v1414_v24  ;;  %3784 = vmatpush3.bf16.msra.mxu0 %v4122_v18  ;;  %v4123_v24 = vld [vmem:[#allocation2 + $0x120] sm:$0xff]   ;;  %v4124_v57 = vld [vmem:[#allocation2 + $0x118] sm:$0xff]  }
 0x35c   :  { %v1416_v25 = vpop.f32.mrf.mxu0  ;;  %v4345_v27 = vpop.eup %4344  ;;  %3785 = vmatprep.subr.bf16.mxu0 %v4123_v24 }
 0x35d   :  { %v1417_v31 = vadd.f32 %v5345_v2, %v1416_v25  ;;  %4354 = vtanh.f32 %v1425_v17 }
 0x35e   :  { %v3705_v28 = vpop.f32.mrf.mxu0  ;;  %v4347_v12 = vpop.eup %4346 }
 0x35f   :  { %4356 = vtanh.f32 %v1417_v31  ;;  %v1438_v42 = vadd.f32 %v3705_v28, %v5345_v2  ;;  %3786 = vmatpush3.bf16.msra.mxu0 %v4123_v24  ;;  %v4126_v28 = vld [vmem:[#allocation2 + $0x108] sm:$0xff]  }
 0x360   :  { %v4349_v29 = vpop.eup %4348  ;;  %4358 = vtanh.f32 %v1422_v26  ;;  %v1429_v9 = vpop.f32.mrf.mxu0  ;;  %3787 = vmatprep.subr.bf16.mxu0 %v4124_v57  ;;  %v4125_v26 = vld [vmem:[#allocation2 + $0x110] sm:$0xff]  }
 0x361   :  { %v4351_v10 = vpop.eup %4350  ;;  %v1430_v32 = vadd.f32 %v5345_v2, %v1429_v9  ;;  %v1304_v16 = vpack.c.bf16 %v4349_v29, %v4345_v27 }
 0x362   :  { %v3706_v13 = vpop.f32.mrf.mxu0  ;;  %v1305_v35 = vpack.c.bf16 %v4347_v12, %v4351_v10  ;;  %v4127_v12 = vld [vmem:[#allocation2 + $0x100] sm:$0xff]  }
 0x363   :  { %v1441_v7 = vadd.f32 %v3706_v13, %v5345_v2  ;;  %3727 = vmatprep.mubr.bf16.mxu0 %v1304_v16  ;;  %4360 = vtanh.f32 %v1430_v32  ;;  %3788 = vmatpush3.bf16.msra.mxu0 %v4124_v57 }
 0x364   :  { %v1432_v46 = vpop.f32.mrf.mxu0  ;;  %3728 = vmatmul.mubr.bf16.gmra.mxu0 %v1305_v35  ;;  %3789 = vmatprep.subr.bf16.mxu0 %v4125_v26 }
 0x365   :  { %v1433_v38 = vadd.f32 %v5345_v2, %v1432_v46  ;;  %4362 = vtanh.f32 %v1441_v7 }
 0x367   :  { %4364 = vtanh.f32 %v1433_v38  ;;  %3790 = vmatpush3.bf16.msra.mxu0 %v4125_v26 }
 0x368   :  { %4366 = vtanh.f32 %v1438_v42  ;;  %v4353_v44 = vpop.eup %4352  ;;  %3791 = vmatprep.subr.bf16.mxu0 %v4126_v28 }
 0x36a   :  { %v4355_v51 = vpop.eup %4354 }
 0x36b   :  { %3792 = vmatpush3.bf16.msra.mxu0 %v4126_v28 }
 0x36c   :  { %v4357_v37 = vpop.eup %4356  ;;  %3793 = vmatprep.subr.bf16.mxu0 %v4127_v12 }
 0x36d   :  { %v4359_v49 = vpop.eup %4358  ;;  %v1572_v56 = vpack.c.bf16 %v4357_v37, %v4353_v44 }
 0x36e   :  { %v1573_v58 = vpack.c.bf16 %v4355_v51, %v4359_v49 }
 0x36f   :  { %3747 = vmatprep.mubr.bf16.mxu1 %v1572_v56  ;;  %3794 = vmatpush3.bf16.msra.mxu0 %v4127_v12 }
 0x370   :  { %3748 = vmatmul.mubr.bf16.vlgmr.msra.gmra.mxu1 %v1573_v58  ;;  %v4361_v61 = vpop.eup %4360 }
 0x372   :  { %v4363_v48 = vpop.eup %4362 }
 0x374   :  { %v4365_v0 = vpop.eup %4364 }
 0x375   :  { %v4367_v52 = vpop.eup %4366  ;;  %v1574_v8 = vpack.c.bf16 %v4365_v0, %v4361_v61 }
 0x376   :  { %v1575_v60 = vpack.c.bf16 %v4363_v48, %v4367_v52 }
 0x377   :  { %3751 = vmatprep.mubr.bf16.mxu1 %v1574_v8 }
 0x378   :  { %3752 = vmatmul.mubr.bf16.gmra.mxu1 %v1575_v60 }
 0x383   :  { %v3709_v54 = vpop.f32.mrf.mxu0 }
 0x384   :  { %v1454_v33 = vadd.f32 %v3709_v54, %v5345_v2 }
 0x385   :  { %v1445_v43 = vpop.f32.mrf.mxu0 }
 0x386   :  { %v1446_v39 = vadd.f32 %v5345_v2, %v1445_v43 }
 0x387   :  { %v3710_v36 = vpop.f32.mrf.mxu0 }
 0x388   :  { %v1457_v63 = vadd.f32 %v3710_v36, %v5345_v2  ;;  %4368 = vtanh.f32 %v1446_v39 }
 0x389   :  { %v1448_v34 = vpop.f32.mrf.mxu0 }
 0x38a   :  { %v1449_v3 = vadd.f32 %v5345_v2, %v1448_v34  ;;  %4370 = vtanh.f32 %v1457_v63 }
 0x38c   :  { %4372 = vtanh.f32 %v1449_v3 }
 0x38d   :  { %4374 = vtanh.f32 %v1454_v33 }
 0x395   :  { %v4369_v40 = vpop.eup %4368 }
 0x397   :  { %v4371_v59 = vpop.eup %4370 }
 0x398   :  { %v3713_v4 = vpop.f32.mrf.mxu0 }
 0x399   :  { %v4373_v1 = vpop.eup %4372  ;;  %v1470_v53 = vadd.f32 %v3713_v4, %v5345_v2 }
 0x39a   :  { %v4375_v45 = vpop.eup %4374  ;;  %v1461_v30 = vpop.f32.mrf.mxu0  ;;  %v1576_v5 = vpack.c.bf16 %v4373_v1, %v4369_v40 }
 0x39b   :  { %v1462_v6 = vadd.f32 %v5345_v2, %v1461_v30  ;;  %v1577_v47 = vpack.c.bf16 %v4371_v59, %v4375_v45 }
 0x39c   :  { %v3714_v11 = vpop.f32.mrf.mxu0  ;;  %3755 = vmatprep.mubr.bf16.mxu1 %v1576_v5 }
 0x39d   :  { %v1473_v41 = vadd.f32 %v3714_v11, %v5345_v2  ;;  %3756 = vmatmul.mubr.bf16.gmra.mxu1 %v1577_v47  ;;  %4376 = vtanh.f32 %v1462_v6 }
 0x39e   :  { %v1464_v14 = vpop.f32.mrf.mxu0 }
 0x39f   :  { %v1465_v19 = vadd.f32 %v5345_v2, %v1464_v14  ;;  %4378 = vtanh.f32 %v1473_v41 }
 0x3a1   :  { %4380 = vtanh.f32 %v1465_v19 }
 0x3a2   :  { %4382 = vtanh.f32 %v1470_v53 }
 0x3aa   :  { %v4377_v20 = vpop.eup %4376 }
 0x3ac   :  { %v4379_v55 = vpop.eup %4378 }
 0x3ae   :  { %v4381_v15 = vpop.eup %4380 }
 0x3af   :  { %v4383_v22 = vpop.eup %4382  ;;  %v1578_v50 = vpack.c.bf16 %v4381_v15, %v4377_v20 }
 0x3b0   :  { %v1579_v23 = vpack.c.bf16 %v4379_v55, %v4383_v22  ;;  %v5382_v55 = vld [vmem:[%s5608_s4 + $0x3] ss:$0 sm:$0xff] }
 0x3b1   :  { %3759 = vmatprep.mubr.bf16.mxu1 %v1578_v50 }
 0x3b2   :  { %3760 = vmatmul.mubr.bf16.gmra.mxu1 %v1579_v23 }
 0x3bd   :  { %v3717_v17 = vpop.f32.mrf.mxu0 }
 0x3be   :  { %v1486_v9 = vadd.f32 %v3717_v17, %v5345_v2 }
 0x3bf   :  { %v1477_v25 = vpop.f32.mrf.mxu0 }
 0x3c0   :  { %v1478_v31 = vadd.f32 %v5345_v2, %v1477_v25 }
 0x3c1   :  { %v3718_v27 = vpop.f32.mrf.mxu0 }
 0x3c2   :  { %v1489_v29 = vadd.f32 %v3718_v27, %v5345_v2  ;;  %4384 = vtanh.f32 %v1478_v31 }
 0x3c3   :  { %v1480_v10 = vpop.f32.mrf.mxu0 }
 0x3c4   :  { %v1481_v32 = vadd.f32 %v5345_v2, %v1480_v10  ;;  %4386 = vtanh.f32 %v1489_v29 }
 0x3c6   :  { %4388 = vtanh.f32 %v1481_v32 }
 0x3c7   :  { %4390 = vtanh.f32 %v1486_v9 }
 0x3cf   :  { %v4385_v16 = vpop.eup %4384 }
 0x3d1   :  { %v4387_v13 = vpop.eup %4386 }
 0x3d3   :  { %v4389_v35 = vpop.eup %4388 }
 0x3d4   :  { %v4391_v7 = vpop.eup %4390  ;;  %v1580_v42 = vpack.c.bf16 %v4389_v35, %v4385_v16 }
 0x3d5   :  { %v1581_v46 = vpack.c.bf16 %v4387_v13, %v4391_v7 }
 0x3d6   :  { %3763 = vmatprep.mubr.bf16.mxu1 %v1580_v42 }
 0x3d7   :  { %3764 = vmatmul.mubr.bf16.gmra.mxu1 %v1581_v46 }
 0x3de   :  { %v3721_v38 = vpop.f32.mrf.mxu0 }
 0x3df   :  { %v1502_v56 = vadd.f32 %v3721_v38, %v5345_v2 }
 0x3e0   :  { %v1493_v44 = vpop.f32.mrf.mxu0 }
 0x3e1   :  { %v1494_v51 = vadd.f32 %v5345_v2, %v1493_v44 }
 0x3e2   :  { %v3722_v37 = vpop.f32.mrf.mxu0 }
 0x3e3   :  { %v1505_v49 = vadd.f32 %v3722_v37, %v5345_v2  ;;  %4392 = vtanh.f32 %v1494_v51 }
 0x3e4   :  { %v1496_v58 = vpop.f32.mrf.mxu0 }
 0x3e5   :  { %v1497_v61 = vadd.f32 %v5345_v2, %v1496_v58  ;;  %4394 = vtanh.f32 %v1505_v49 }
 0x3e7   :  { %4396 = vtanh.f32 %v1497_v61 }
 0x3e8   :  { %4398 = vtanh.f32 %v1502_v56 }
 0x3f0   :  { %v4393_v48 = vpop.eup %4392 }
 0x3f2   :  { %v4395_v0 = vpop.eup %4394 }
 0x3f4   :  { %v4397_v52 = vpop.eup %4396 }
 0x3f5   :  { %v4399_v8 = vpop.eup %4398  ;;  %v1582_v60 = vpack.c.bf16 %v4397_v52, %v4393_v48 }
 0x3f6   :  { %v1583_v54 = vpack.c.bf16 %v4395_v0, %v4399_v8 }
 0x3f7   :  { %3767 = vmatprep.mubr.bf16.mxu1 %v1582_v60 }
 0x3f8   :  { %3768 = vmatmul.mubr.bf16.gmra.mxu1 %v1583_v54 }
 0x403   :  { %v3725_v43 = vpop.f32.mrf.mxu0 }
 0x404   :  { %v1518_v34 = vadd.f32 %v3725_v43, %v5345_v2 }
 0x405   :  { %v1509_v39 = vpop.f32.mrf.mxu0 }
 0x406   :  { %v1510_v36 = vadd.f32 %v5345_v2, %v1509_v39 }
 0x407   :  { %v3726_v63 = vpop.f32.mrf.mxu0 }
 0x408   :  { %v1521_v33 = vadd.f32 %v3726_v63, %v5345_v2  ;;  %4400 = vtanh.f32 %v1510_v36 }
 0x409   :  { %v1512_v3 = vpop.f32.mrf.mxu0 }
 0x40a   :  { %v1513_v40 = vadd.f32 %v5345_v2, %v1512_v3  ;;  %4402 = vtanh.f32 %v1521_v33 }
 0x40c   :  { %4404 = vtanh.f32 %v1513_v40 }
 0x40d   :  { %4406 = vtanh.f32 %v1518_v34 }
 0x415   :  { %v4401_v59 = vpop.eup %4400 }
 0x417   :  { %v4403_v4 = vpop.eup %4402 }
 0x419   :  { %v4405_v1 = vpop.eup %4404 }
 0x41a   :  { %v4407_v45 = vpop.eup %4406  ;;  %v1584_v30 = vpack.c.bf16 %v4405_v1, %v4401_v59 }
 0x41b   :  { %v1585_v5 = vpack.c.bf16 %v4403_v4, %v4407_v45 }
 0x41c   :  { %3771 = vmatprep.mubr.bf16.mxu1 %v1584_v30 }
 0x41d   :  { %3772 = vmatmul.mubr.bf16.gmra.mxu1 %v1585_v5 }
 0x424   :  { %v3729_v6 = vpop.f32.mrf.mxu0 }
 0x425   :  { %v1534_v14 = vadd.f32 %v3729_v6, %v5345_v2 }
 0x426   :  { %v1525_v47 = vpop.f32.mrf.mxu0 }
 0x427   :  { %v1526_v11 = vadd.f32 %v5345_v2, %v1525_v47  ;;  %v4128_v47 = vld [vmem:[#allocation2 + $0x178] sm:$0xff]  }
 0x428   :  { %v3730_v41 = vpop.f32.mrf.mxu0  ;;  %3827 = vmatprep.subr.bf16.mxu1 %v4128_v47 }
 0x429   :  { %v1537_v53 = vadd.f32 %v3730_v41, %v5345_v2  ;;  %4408 = vtanh.f32 %v1526_v11  ;;  %3828 = vmatpush3.bf16.msra.mxu1 %v4128_v47 }
 0x42a   :  { %v1528_v19 = vpop.f32.mrf.mxu0 }
 0x42b   :  { %v1529_v62 = vadd.f32 %v5345_v2, %v1528_v19  ;;  %4410 = vtanh.f32 %v1537_v53  ;;  %v4129_v53 = vld [vmem:[#allocation2 + $0x170] sm:$0xff]  }
 0x42c   :  { %3829 = vmatprep.subr.bf16.mxu1 %v4129_v53 }
 0x42d   :  { %4412 = vtanh.f32 %v1529_v62  ;;  %3830 = vmatpush3.bf16.msra.mxu1 %v4129_v53 }
 0x42e   :  { %4414 = vtanh.f32 %v1534_v14 }
 0x430   :  { %v3749_v20 = vpop.f32.mrf.mxu1 }
 0x431   :  { %v1704_v23 = vadd.f32 %v3749_v20, %v5382_v55 }
 0x432   :  { %v1695_v21 = vpop.f32.mrf.mxu1 }
 0x433   :  { %v1696_v15 = vadd.f32 %v5382_v55, %v1695_v21  ;;  %v4130_v21 = vld [vmem:[#allocation2 + $0x168] sm:$0xff]  }
 0x434   :  { %v3750_v22 = vpop.f32.mrf.mxu1  ;;  %3831 = vmatprep.subr.bf16.mxu1 %v4130_v21 }
 0x435   :  { %v1707_v50 = vadd.f32 %v3750_v22, %v5382_v55  ;;  %4416 = vtanh.f32 %v1696_v15  ;;  %3832 = vmatpush3.bf16.msra.mxu1 %v4130_v21  ;;  %v4131_v15 = vld [vmem:[#allocation2 + $0x160] sm:$0xff]   ;;  %v4132_v22 = vld [vmem:[#allocation2 + $0x158] sm:$0xff]  }
 0x436   :  { %v1698_v18 = vpop.f32.mrf.mxu1  ;;  %v4409_v24 = vpop.eup %4408  ;;  %3833 = vmatprep.subr.bf16.mxu1 %v4131_v15 }
 0x437   :  { %v1699_v2 = vadd.f32 %v5382_v55, %v1698_v18  ;;  %4418 = vtanh.f32 %v1707_v50 }
 0x438   :  { %v3753_v57 = vpop.f32.mrf.mxu1  ;;  %v4411_v17 = vpop.eup %4410 }
 0x439   :  { %4420 = vtanh.f32 %v1699_v2  ;;  %v1720_v10 = vadd.f32 %v3753_v57, %v5382_v55  ;;  %3834 = vmatpush3.bf16.msra.mxu1 %v4131_v15  ;;  %v4134_v57 = vld [vmem:[#allocation2 + $0x148] sm:$0xff]  }
 0x43a   :  { %v4413_v26 = vpop.eup %4412  ;;  %4422 = vtanh.f32 %v1704_v23  ;;  %v1711_v25 = vpop.f32.mrf.mxu1  ;;  %3835 = vmatprep.subr.bf16.mxu1 %v4132_v22  ;;  %v4133_v23 = vld [vmem:[#allocation2 + $0x150] sm:$0xff]  }
 0x43b   :  { %v4415_v31 = vpop.eup %4414  ;;  %v1712_v27 = vadd.f32 %v5382_v55, %v1711_v25  ;;  %v1586_v28 = vpack.c.bf16 %v4413_v26, %v4409_v24 }
 0x43c   :  { %v3754_v12 = vpop.f32.mrf.mxu1  ;;  %v1587_v29 = vpack.c.bf16 %v4411_v17, %v4415_v31  ;;  %v4135_v17 = vld [vmem:[#allocation2 + $0x140] sm:$0xff]  }
 0x43d   :  { %v1723_v9 = vadd.f32 %v3754_v12, %v5382_v55  ;;  %3775 = vmatprep.mubr.bf16.mxu1 %v1586_v28  ;;  %4424 = vtanh.f32 %v1712_v27  ;;  %3836 = vmatpush3.bf16.msra.mxu1 %v4132_v22 }
 0x43e   :  { %v1714_v32 = vpop.f32.mrf.mxu1  ;;  %3776 = vmatmul.mubr.bf16.gmra.mxu1 %v1587_v29  ;;  %3837 = vmatprep.subr.bf16.mxu1 %v4133_v23 }
 0x43f   :  { %v1715_v16 = vadd.f32 %v5382_v55, %v1714_v32  ;;  %4426 = vtanh.f32 %v1723_v9 }
 0x441   :  { %4428 = vtanh.f32 %v1715_v16  ;;  %3838 = vmatpush3.bf16.msra.mxu1 %v4133_v23 }
 0x442   :  { %4430 = vtanh.f32 %v1720_v10  ;;  %v4417_v13 = vpop.eup %4416  ;;  %3839 = vmatprep.subr.bf16.mxu1 %v4134_v57 }
 0x444   :  { %v4419_v35 = vpop.eup %4418 }
 0x445   :  { %3840 = vmatpush3.bf16.msra.mxu1 %v4134_v57 }
 0x446   :  { %v4421_v7 = vpop.eup %4420  ;;  %3841 = vmatprep.subr.bf16.mxu1 %v4135_v17 }
 0x447   :  { %v4423_v42 = vpop.eup %4422  ;;  %v1854_v46 = vpack.c.bf16 %v4421_v7, %v4417_v13 }
 0x448   :  { %v1855_v38 = vpack.c.bf16 %v4419_v35, %v4423_v42 }
 0x449   :  { %3795 = vmatprep.mubr.bf16.mxu0 %v1854_v46  ;;  %3842 = vmatpush3.bf16.msra.mxu1 %v4135_v17 }
 0x44a   :  { %3796 = vmatmul.mubr.bf16.vlgmr.msra.gmra.mxu0 %v1855_v38  ;;  %v4425_v44 = vpop.eup %4424 }
 0x44c   :  { %v4427_v51 = vpop.eup %4426 }
 0x44e   :  { %v4429_v37 = vpop.eup %4428 }
 0x44f   :  { %v4431_v49 = vpop.eup %4430  ;;  %v1856_v56 = vpack.c.bf16 %v4429_v37, %v4425_v44 }
 0x450   :  { %v1857_v58 = vpack.c.bf16 %v4427_v51, %v4431_v49 }
 0x451   :  { %3799 = vmatprep.mubr.bf16.mxu0 %v1856_v56 }
 0x452   :  { %3800 = vmatmul.mubr.bf16.gmra.mxu0 %v1857_v58 }
 0x45d   :  { %v3757_v61 = vpop.f32.mrf.mxu1 }
 0x45e   :  { %v1736_v60 = vadd.f32 %v3757_v61, %v5382_v55 }
 0x45f   :  { %v1727_v48 = vpop.f32.mrf.mxu1 }
 0x460   :  { %v1728_v0 = vadd.f32 %v5382_v55, %v1727_v48 }
 0x461   :  { %v3758_v52 = vpop.f32.mrf.mxu1 }
 0x462   :  { %v1739_v8 = vadd.f32 %v3758_v52, %v5382_v55  ;;  %4432 = vtanh.f32 %v1728_v0 }
 0x463   :  { %v1730_v54 = vpop.f32.mrf.mxu1 }
 0x464   :  { %v1731_v43 = vadd.f32 %v5382_v55, %v1730_v54  ;;  %4434 = vtanh.f32 %v1739_v8 }
 0x466   :  { %4436 = vtanh.f32 %v1731_v43 }
 0x467   :  { %4438 = vtanh.f32 %v1736_v60 }
 0x46f   :  { %v4433_v39 = vpop.eup %4432 }
 0x471   :  { %v4435_v36 = vpop.eup %4434 }
 0x472   :  { %v3761_v63 = vpop.f32.mrf.mxu1 }
 0x473   :  { %v4437_v33 = vpop.eup %4436  ;;  %v1752_v30 = vadd.f32 %v3761_v63, %v5382_v55 }
 0x474   :  { %v4439_v34 = vpop.eup %4438  ;;  %v1743_v3 = vpop.f32.mrf.mxu1  ;;  %v1858_v40 = vpack.c.bf16 %v4437_v33, %v4433_v39 }
 0x475   :  { %v1744_v59 = vadd.f32 %v5382_v55, %v1743_v3  ;;  %v1859_v4 = vpack.c.bf16 %v4435_v36, %v4439_v34 }
 0x476   :  { %v3762_v1 = vpop.f32.mrf.mxu1  ;;  %3803 = vmatprep.mubr.bf16.mxu0 %v1858_v40 }
 0x477   :  { %v1755_v45 = vadd.f32 %v3762_v1, %v5382_v55  ;;  %3804 = vmatmul.mubr.bf16.gmra.mxu0 %v1859_v4  ;;  %4440 = vtanh.f32 %v1744_v59 }
 0x478   :  { %v1746_v5 = vpop.f32.mrf.mxu1 }
 0x479   :  { %v1747_v6 = vadd.f32 %v5382_v55, %v1746_v5  ;;  %4442 = vtanh.f32 %v1755_v45 }
 0x47b   :  { %4444 = vtanh.f32 %v1747_v6 }
 0x47c   :  { %4446 = vtanh.f32 %v1752_v30 }
 0x484   :  { %v4441_v11 = vpop.eup %4440 }
 0x486   :  { %v4443_v41 = vpop.eup %4442 }
 0x488   :  { %v4445_v14 = vpop.eup %4444 }
 0x489   :  { %v4447_v19 = vpop.eup %4446  ;;  %v1860_v62 = vpack.c.bf16 %v4445_v14, %v4441_v11 }
 0x48a   :  { %v1861_v20 = vpack.c.bf16 %v4443_v41, %v4447_v19  ;;  %v5419_v41 = vld [vmem:[%s5608_s4 + $0x4] ss:$0 sm:$0xff] }
 0x48b   :  { %3807 = vmatprep.mubr.bf16.mxu0 %v1860_v62 }
 0x48c   :  { %3808 = vmatmul.mubr.bf16.gmra.mxu0 %v1861_v20 }
 0x497   :  { %v3765_v50 = vpop.f32.mrf.mxu1 }
 0x498   :  { %v1768_v25 = vadd.f32 %v3765_v50, %v5382_v55 }
 0x499   :  { %v1759_v18 = vpop.f32.mrf.mxu1 }
 0x49a   :  { %v1760_v2 = vadd.f32 %v5382_v55, %v1759_v18 }
 0x49b   :  { %v3766_v24 = vpop.f32.mrf.mxu1 }
 0x49c   :  { %v1771_v26 = vadd.f32 %v3766_v24, %v5382_v55  ;;  %4448 = vtanh.f32 %v1760_v2 }
 0x49d   :  { %v1762_v31 = vpop.f32.mrf.mxu1 }
 0x49e   :  { %v1763_v27 = vadd.f32 %v5382_v55, %v1762_v31  ;;  %4450 = vtanh.f32 %v1771_v26 }
 0x4a0   :  { %4452 = vtanh.f32 %v1763_v27 }
 0x4a1   :  { %4454 = vtanh.f32 %v1768_v25 }
 0x4a9   :  { %v4449_v28 = vpop.eup %4448 }
 0x4ab   :  { %v4451_v12 = vpop.eup %4450 }
 0x4ad   :  { %v4453_v29 = vpop.eup %4452 }
 0x4ae   :  { %v4455_v9 = vpop.eup %4454  ;;  %v1862_v10 = vpack.c.bf16 %v4453_v29, %v4449_v28 }
 0x4af   :  { %v1863_v32 = vpack.c.bf16 %v4451_v12, %v4455_v9 }
 0x4b0   :  { %3811 = vmatprep.mubr.bf16.mxu0 %v1862_v10 }
 0x4b1   :  { %3812 = vmatmul.mubr.bf16.gmra.mxu0 %v1863_v32 }
 0x4b8   :  { %v3769_v16 = vpop.f32.mrf.mxu1 }
 0x4b9   :  { %v1784_v46 = vadd.f32 %v3769_v16, %v5382_v55 }
 0x4ba   :  { %v1775_v13 = vpop.f32.mrf.mxu1 }
 0x4bb   :  { %v1776_v35 = vadd.f32 %v5382_v55, %v1775_v13 }
 0x4bc   :  { %v3770_v7 = vpop.f32.mrf.mxu1 }
 0x4bd   :  { %v1787_v42 = vadd.f32 %v3770_v7, %v5382_v55  ;;  %4456 = vtanh.f32 %v1776_v35 }
 0x4be   :  { %v1778_v38 = vpop.f32.mrf.mxu1 }
 0x4bf   :  { %v1779_v44 = vadd.f32 %v5382_v55, %v1778_v38  ;;  %4458 = vtanh.f32 %v1787_v42 }
 0x4c1   :  { %4460 = vtanh.f32 %v1779_v44 }
 0x4c2   :  { %4462 = vtanh.f32 %v1784_v46 }
 0x4ca   :  { %v4457_v51 = vpop.eup %4456 }
 0x4cc   :  { %v4459_v37 = vpop.eup %4458 }
 0x4ce   :  { %v4461_v49 = vpop.eup %4460 }
 0x4cf   :  { %v4463_v56 = vpop.eup %4462  ;;  %v1864_v58 = vpack.c.bf16 %v4461_v49, %v4457_v51 }
 0x4d0   :  { %v1865_v61 = vpack.c.bf16 %v4459_v37, %v4463_v56 }
 0x4d1   :  { %3815 = vmatprep.mubr.bf16.mxu0 %v1864_v58 }
 0x4d2   :  { %3816 = vmatmul.mubr.bf16.gmra.mxu0 %v1865_v61 }
 0x4dd   :  { %v3773_v48 = vpop.f32.mrf.mxu1 }
 0x4de   :  { %v1800_v54 = vadd.f32 %v3773_v48, %v5382_v55 }
 0x4df   :  { %v1791_v0 = vpop.f32.mrf.mxu1 }
 0x4e0   :  { %v1792_v52 = vadd.f32 %v5382_v55, %v1791_v0 }
 0x4e1   :  { %v3774_v8 = vpop.f32.mrf.mxu1 }
 0x4e2   :  { %v1803_v60 = vadd.f32 %v3774_v8, %v5382_v55  ;;  %4464 = vtanh.f32 %v1792_v52 }
 0x4e3   :  { %v1794_v43 = vpop.f32.mrf.mxu1 }
 0x4e4   :  { %v1795_v39 = vadd.f32 %v5382_v55, %v1794_v43  ;;  %4466 = vtanh.f32 %v1803_v60 }
 0x4e6   :  { %4468 = vtanh.f32 %v1795_v39 }
 0x4e7   :  { %4470 = vtanh.f32 %v1800_v54 }
 0x4ef   :  { %v4465_v36 = vpop.eup %4464 }
 0x4f1   :  { %v4467_v63 = vpop.eup %4466 }
 0x4f3   :  { %v4469_v33 = vpop.eup %4468 }
 0x4f4   :  { %v4471_v34 = vpop.eup %4470  ;;  %v1866_v3 = vpack.c.bf16 %v4469_v33, %v4465_v36 }
 0x4f5   :  { %v1867_v40 = vpack.c.bf16 %v4467_v63, %v4471_v34 }
 0x4f6   :  { %3819 = vmatprep.mubr.bf16.mxu0 %v1866_v3 }
 0x4f7   :  { %3820 = vmatmul.mubr.bf16.gmra.mxu0 %v1867_v40 }
 0x4fe   :  { %v3777_v59 = vpop.f32.mrf.mxu1 }
 0x4ff   :  { %v1816_v5 = vadd.f32 %v3777_v59, %v5382_v55 }
 0x500   :  { %v1807_v4 = vpop.f32.mrf.mxu1 }
 0x501   :  { %v1808_v1 = vadd.f32 %v5382_v55, %v1807_v4  ;;  %v4136_v4 = vld [vmem:[#allocation2 + $0x1b8] sm:$0xff]  }
 0x502   :  { %v3778_v45 = vpop.f32.mrf.mxu1  ;;  %3875 = vmatprep.subr.bf16.mxu0 %v4136_v4 }
 0x503   :  { %v1819_v30 = vadd.f32 %v3778_v45, %v5382_v55  ;;  %4472 = vtanh.f32 %v1808_v1  ;;  %3876 = vmatpush3.bf16.msra.mxu0 %v4136_v4 }
 0x504   :  { %v1810_v6 = vpop.f32.mrf.mxu1 }
 0x505   :  { %v1811_v47 = vadd.f32 %v5382_v55, %v1810_v6  ;;  %4474 = vtanh.f32 %v1819_v30  ;;  %v4137_v30 = vld [vmem:[#allocation2 + $0x1b0] sm:$0xff]  }
 0x506   :  { %3877 = vmatprep.subr.bf16.mxu0 %v4137_v30 }
 0x507   :  { %4476 = vtanh.f32 %v1811_v47  ;;  %3878 = vmatpush3.bf16.msra.mxu0 %v4137_v30 }
 0x508   :  { %4478 = vtanh.f32 %v1816_v5 }
 0x50a   :  { %v3797_v11 = vpop.f32.mrf.mxu0 }
 0x50b   :  { %v1986_v20 = vadd.f32 %v3797_v11, %v5419_v41 }
 0x50c   :  { %v1977_v53 = vpop.f32.mrf.mxu0 }
 0x50d   :  { %v1978_v14 = vadd.f32 %v5419_v41, %v1977_v53  ;;  %v4138_v53 = vld [vmem:[#allocation2 + $0x1a8] sm:$0xff]  }
 0x50e   :  { %v3798_v19 = vpop.f32.mrf.mxu0  ;;  %3879 = vmatprep.subr.bf16.mxu0 %v4138_v53 }
 0x50f   :  { %v1989_v62 = vadd.f32 %v3798_v19, %v5419_v41  ;;  %4480 = vtanh.f32 %v1978_v14  ;;  %3880 = vmatpush3.bf16.msra.mxu0 %v4138_v53  ;;  %v4139_v14 = vld [vmem:[#allocation2 + $0x1a0] sm:$0xff]   ;;  %v4140_v19 = vld [vmem:[#allocation2 + $0x198] sm:$0xff]  }
 0x510   :  { %v1980_v21 = vpop.f32.mrf.mxu0  ;;  %v4473_v15 = vpop.eup %4472  ;;  %3881 = vmatprep.subr.bf16.mxu0 %v4139_v14 }
 0x511   :  { %v1981_v55 = vadd.f32 %v5419_v41, %v1980_v21  ;;  %4482 = vtanh.f32 %v1989_v62 }
 0x512   :  { %v3801_v22 = vpop.f32.mrf.mxu0  ;;  %v4475_v50 = vpop.eup %4474 }
 0x513   :  { %4484 = vtanh.f32 %v1981_v55  ;;  %v2002_v31 = vadd.f32 %v3801_v22, %v5419_v41  ;;  %3882 = vmatpush3.bf16.msra.mxu0 %v4139_v14  ;;  %v4142_v22 = vld [vmem:[#allocation2 + $0x188] sm:$0xff]  }
 0x514   :  { %v4477_v23 = vpop.eup %4476  ;;  %4486 = vtanh.f32 %v1986_v20  ;;  %v1993_v18 = vpop.f32.mrf.mxu0  ;;  %3883 = vmatprep.subr.bf16.mxu0 %v4140_v19  ;;  %v4141_v20 = vld [vmem:[#allocation2 + $0x190] sm:$0xff]  }
 0x515   :  { %v4479_v2 = vpop.eup %4478  ;;  %v1994_v24 = vadd.f32 %v5419_v41, %v1993_v18  ;;  %v1868_v57 = vpack.c.bf16 %v4477_v23, %v4473_v15 }
 0x516   :  { %v3802_v17 = vpop.f32.mrf.mxu0  ;;  %v1869_v26 = vpack.c.bf16 %v4475_v50, %v4479_v2  ;;  %v4143_v50 = vld [vmem:[#allocation2 + $0x180] sm:$0xff]  }
 0x517   :  { %v2005_v25 = vadd.f32 %v3802_v17, %v5419_v41  ;;  %3823 = vmatprep.mubr.bf16.mxu0 %v1868_v57  ;;  %4488 = vtanh.f32 %v1994_v24  ;;  %3884 = vmatpush3.bf16.msra.mxu0 %v4140_v19 }
 0x518   :  { %v1996_v27 = vpop.f32.mrf.mxu0  ;;  %3824 = vmatmul.mubr.bf16.gmra.mxu0 %v1869_v26  ;;  %3885 = vmatprep.subr.bf16.mxu0 %v4141_v20 }
 0x519   :  { %v1997_v28 = vadd.f32 %v5419_v41, %v1996_v27  ;;  %4490 = vtanh.f32 %v2005_v25 }
 0x51b   :  { %4492 = vtanh.f32 %v1997_v28  ;;  %3886 = vmatpush3.bf16.msra.mxu0 %v4141_v20 }
 0x51c   :  { %4494 = vtanh.f32 %v2002_v31  ;;  %v4481_v12 = vpop.eup %4480  ;;  %3887 = vmatprep.subr.bf16.mxu0 %v4142_v22 }
 0x51e   :  { %v4483_v29 = vpop.eup %4482 }
 0x51f   :  { %3888 = vmatpush3.bf16.msra.mxu0 %v4142_v22 }
 0x520   :  { %v4485_v9 = vpop.eup %4484  ;;  %3889 = vmatprep.subr.bf16.mxu0 %v4143_v50 }
 0x521   :  { %v4487_v10 = vpop.eup %4486  ;;  %v2136_v32 = vpack.c.bf16 %v4485_v9, %v4481_v12 }
 0x522   :  { %v2137_v16 = vpack.c.bf16 %v4483_v29, %v4487_v10 }
 0x523   :  { %3843 = vmatprep.mubr.bf16.mxu1 %v2136_v32  ;;  %3890 = vmatpush3.bf16.msra.mxu0 %v4143_v50 }
 0x524   :  { %3844 = vmatmul.mubr.bf16.vlgmr.msra.gmra.mxu1 %v2137_v16  ;;  %v4489_v13 = vpop.eup %4488 }
 0x526   :  { %v4491_v35 = vpop.eup %4490 }
 0x528   :  { %v4493_v7 = vpop.eup %4492 }
 0x529   :  { %v4495_v42 = vpop.eup %4494  ;;  %v2138_v46 = vpack.c.bf16 %v4493_v7, %v4489_v13 }
 0x52a   :  { %v2139_v38 = vpack.c.bf16 %v4491_v35, %v4495_v42 }
 0x52b   :  { %3847 = vmatprep.mubr.bf16.mxu1 %v2138_v46 }
 0x52c   :  { %3848 = vmatmul.mubr.bf16.gmra.mxu1 %v2139_v38 }
 0x537   :  { %v3805_v44 = vpop.f32.mrf.mxu0 }
 0x538   :  { %v2018_v58 = vadd.f32 %v3805_v44, %v5419_v41 }
 0x539   :  { %v2009_v51 = vpop.f32.mrf.mxu0 }
 0x53a   :  { %v2010_v37 = vadd.f32 %v5419_v41, %v2009_v51 }
 0x53b   :  { %v3806_v49 = vpop.f32.mrf.mxu0 }
 0x53c   :  { %v2021_v56 = vadd.f32 %v3806_v49, %v5419_v41  ;;  %4496 = vtanh.f32 %v2010_v37 }
 0x53d   :  { %v2012_v61 = vpop.f32.mrf.mxu0 }
 0x53e   :  { %v2013_v48 = vadd.f32 %v5419_v41, %v2012_v61  ;;  %4498 = vtanh.f32 %v2021_v56 }
 0x540   :  { %4500 = vtanh.f32 %v2013_v48 }
 0x541   :  { %4502 = vtanh.f32 %v2018_v58 }
 0x549   :  { %v4497_v0 = vpop.eup %4496 }
 0x54b   :  { %v4499_v52 = vpop.eup %4498 }
 0x54c   :  { %v3809_v8 = vpop.f32.mrf.mxu0 }
 0x54d   :  { %v4501_v60 = vpop.eup %4500  ;;  %v2034_v3 = vadd.f32 %v3809_v8, %v5419_v41 }
 0x54e   :  { %v4503_v54 = vpop.eup %4502  ;;  %v2025_v43 = vpop.f32.mrf.mxu0  ;;  %v2140_v39 = vpack.c.bf16 %v4501_v60, %v4497_v0 }
 0x54f   :  { %v2026_v36 = vadd.f32 %v5419_v41, %v2025_v43  ;;  %v2141_v63 = vpack.c.bf16 %v4499_v52, %v4503_v54 }
 0x550   :  { %v3810_v33 = vpop.f32.mrf.mxu0  ;;  %3851 = vmatprep.mubr.bf16.mxu1 %v2140_v39 }
 0x551   :  { %v2037_v34 = vadd.f32 %v3810_v33, %v5419_v41  ;;  %3852 = vmatmul.mubr.bf16.gmra.mxu1 %v2141_v63  ;;  %4504 = vtanh.f32 %v2026_v36 }
 0x552   :  { %v2028_v40 = vpop.f32.mrf.mxu0 }
 0x553   :  { %v2029_v59 = vadd.f32 %v5419_v41, %v2028_v40  ;;  %4506 = vtanh.f32 %v2037_v34 }
 0x555   :  { %4508 = vtanh.f32 %v2029_v59 }
 0x556   :  { %4510 = vtanh.f32 %v2034_v3 }
 0x55e   :  { %v4505_v1 = vpop.eup %4504 }
 0x560   :  { %v4507_v45 = vpop.eup %4506 }
 0x562   :  { %v4509_v5 = vpop.eup %4508 }
 0x563   :  { %v4511_v6 = vpop.eup %4510  ;;  %v2142_v47 = vpack.c.bf16 %v4509_v5, %v4505_v1 }
 0x564   :  { %v2143_v11 = vpack.c.bf16 %v4507_v45, %v4511_v6  ;;  %v5456_v45 = vld [vmem:[%s5608_s4 + $0x5] ss:$0 sm:$0xff] }
 0x565   :  { %3855 = vmatprep.mubr.bf16.mxu1 %v2142_v47 }
 0x566   :  { %3856 = vmatmul.mubr.bf16.gmra.mxu1 %v2143_v11 }
 0x571   :  { %v3813_v62 = vpop.f32.mrf.mxu0 }
 0x572   :  { %v2050_v18 = vadd.f32 %v3813_v62, %v5419_v41 }
 0x573   :  { %v2041_v21 = vpop.f32.mrf.mxu0 }
 0x574   :  { %v2042_v55 = vadd.f32 %v5419_v41, %v2041_v21 }
 0x575   :  { %v3814_v15 = vpop.f32.mrf.mxu0 }
 0x576   :  { %v2053_v23 = vadd.f32 %v3814_v15, %v5419_v41  ;;  %4512 = vtanh.f32 %v2042_v55 }
 0x577   :  { %v2044_v2 = vpop.f32.mrf.mxu0 }
 0x578   :  { %v2045_v24 = vadd.f32 %v5419_v41, %v2044_v2  ;;  %4514 = vtanh.f32 %v2053_v23 }
 0x57a   :  { %4516 = vtanh.f32 %v2045_v24 }
 0x57b   :  { %4518 = vtanh.f32 %v2050_v18 }
 0x583   :  { %v4513_v57 = vpop.eup %4512 }
 0x585   :  { %v4515_v17 = vpop.eup %4514 }
 0x587   :  { %v4517_v26 = vpop.eup %4516 }
 0x588   :  { %v4519_v25 = vpop.eup %4518  ;;  %v2144_v31 = vpack.c.bf16 %v4517_v26, %v4513_v57 }
 0x589   :  { %v2145_v27 = vpack.c.bf16 %v4515_v17, %v4519_v25 }
 0x58a   :  { %3859 = vmatprep.mubr.bf16.mxu1 %v2144_v31 }
 0x58b   :  { %3860 = vmatmul.mubr.bf16.gmra.mxu1 %v2145_v27 }
 0x592   :  { %v3817_v28 = vpop.f32.mrf.mxu0 }
 0x593   :  { %v2066_v32 = vadd.f32 %v3817_v28, %v5419_v41 }
 0x594   :  { %v2057_v12 = vpop.f32.mrf.mxu0 }
 0x595   :  { %v2058_v29 = vadd.f32 %v5419_v41, %v2057_v12 }
 0x596   :  { %v3818_v9 = vpop.f32.mrf.mxu0 }
 0x597   :  { %v2069_v10 = vadd.f32 %v3818_v9, %v5419_v41  ;;  %4520 = vtanh.f32 %v2058_v29 }
 0x598   :  { %v2060_v16 = vpop.f32.mrf.mxu0 }
 0x599   :  { %v2061_v13 = vadd.f32 %v5419_v41, %v2060_v16  ;;  %4522 = vtanh.f32 %v2069_v10 }
 0x59b   :  { %4524 = vtanh.f32 %v2061_v13 }
 0x59c   :  { %4526 = vtanh.f32 %v2066_v32 }
 0x5a4   :  { %v4521_v35 = vpop.eup %4520 }
 0x5a6   :  { %v4523_v7 = vpop.eup %4522 }
 0x5a8   :  { %v4525_v42 = vpop.eup %4524 }
 0x5a9   :  { %v4527_v46 = vpop.eup %4526  ;;  %v2146_v38 = vpack.c.bf16 %v4525_v42, %v4521_v35 }
 0x5aa   :  { %v2147_v44 = vpack.c.bf16 %v4523_v7, %v4527_v46 }
 0x5ab   :  { %3863 = vmatprep.mubr.bf16.mxu1 %v2146_v38 }
 0x5ac   :  { %3864 = vmatmul.mubr.bf16.gmra.mxu1 %v2147_v44 }
 0x5b7   :  { %v3821_v51 = vpop.f32.mrf.mxu0 }
 0x5b8   :  { %v2082_v61 = vadd.f32 %v3821_v51, %v5419_v41 }
 0x5b9   :  { %v2073_v37 = vpop.f32.mrf.mxu0 }
 0x5ba   :  { %v2074_v49 = vadd.f32 %v5419_v41, %v2073_v37 }
 0x5bb   :  { %v3822_v56 = vpop.f32.mrf.mxu0 }
 0x5bc   :  { %v2085_v58 = vadd.f32 %v3822_v56, %v5419_v41  ;;  %4528 = vtanh.f32 %v2074_v49 }
 0x5bd   :  { %v2076_v48 = vpop.f32.mrf.mxu0 }
 0x5be   :  { %v2077_v0 = vadd.f32 %v5419_v41, %v2076_v48  ;;  %4530 = vtanh.f32 %v2085_v58 }
 0x5c0   :  { %4532 = vtanh.f32 %v2077_v0 }
 0x5c1   :  { %4534 = vtanh.f32 %v2082_v61 }
 0x5c9   :  { %v4529_v52 = vpop.eup %4528 }
 0x5cb   :  { %v4531_v8 = vpop.eup %4530 }
 0x5cd   :  { %v4533_v60 = vpop.eup %4532 }
 0x5ce   :  { %v4535_v54 = vpop.eup %4534  ;;  %v2148_v43 = vpack.c.bf16 %v4533_v60, %v4529_v52 }
 0x5cf   :  { %v2149_v39 = vpack.c.bf16 %v4531_v8, %v4535_v54 }
 0x5d0   :  { %3867 = vmatprep.mubr.bf16.mxu1 %v2148_v43 }
 0x5d1   :  { %3868 = vmatmul.mubr.bf16.gmra.mxu1 %v2149_v39 }
 0x5d8   :  { %v3825_v36 = vpop.f32.mrf.mxu0 }
 0x5d9   :  { %v2098_v40 = vadd.f32 %v3825_v36, %v5419_v41 }
 0x5da   :  { %v2089_v63 = vpop.f32.mrf.mxu0 }
 0x5db   :  { %v2090_v33 = vadd.f32 %v5419_v41, %v2089_v63  ;;  %v4144_v63 = vld [vmem:[#allocation2 + $0x1f8] sm:$0xff]  }
 0x5dc   :  { %v3826_v34 = vpop.f32.mrf.mxu0  ;;  %3923 = vmatprep.subr.bf16.mxu1 %v4144_v63 }
 0x5dd   :  { %v2101_v3 = vadd.f32 %v3826_v34, %v5419_v41  ;;  %4536 = vtanh.f32 %v2090_v33  ;;  %3924 = vmatpush3.bf16.msra.mxu1 %v4144_v63 }
 0x5de   :  { %v2092_v59 = vpop.f32.mrf.mxu0 }
 0x5df   :  { %v2093_v4 = vadd.f32 %v5419_v41, %v2092_v59  ;;  %4538 = vtanh.f32 %v2101_v3  ;;  %v4145_v3 = vld [vmem:[#allocation2 + $0x1f0] sm:$0xff]  }
 0x5e0   :  { %3925 = vmatprep.subr.bf16.mxu1 %v4145_v3 }
 0x5e1   :  { %4540 = vtanh.f32 %v2093_v4  ;;  %3926 = vmatpush3.bf16.msra.mxu1 %v4145_v3 }
 0x5e2   :  { %4542 = vtanh.f32 %v2098_v40 }
 0x5e4   :  { %v3845_v1 = vpop.f32.mrf.mxu1 }
 0x5e5   :  { %v2268_v11 = vadd.f32 %v3845_v1, %v5456_v45 }
 0x5e6   :  { %v2259_v30 = vpop.f32.mrf.mxu1 }
 0x5e7   :  { %v2260_v5 = vadd.f32 %v5456_v45, %v2259_v30  ;;  %v4146_v30 = vld [vmem:[#allocation2 + $0x1e8] sm:$0xff]  }
 0x5e8   :  { %v3846_v6 = vpop.f32.mrf.mxu1  ;;  %3927 = vmatprep.subr.bf16.mxu1 %v4146_v30 }
 0x5e9   :  { %v2271_v47 = vadd.f32 %v3846_v6, %v5456_v45  ;;  %4544 = vtanh.f32 %v2260_v5  ;;  %3928 = vmatpush3.bf16.msra.mxu1 %v4146_v30  ;;  %v4147_v5 = vld [vmem:[#allocation2 + $0x1e0] sm:$0xff]   ;;  %v4148_v6 = vld [vmem:[#allocation2 + $0x1d8] sm:$0xff]  }
 0x5ea   :  { %v2262_v53 = vpop.f32.mrf.mxu1  ;;  %v4537_v14 = vpop.eup %4536  ;;  %3929 = vmatprep.subr.bf16.mxu1 %v4147_v5 }
 0x5eb   :  { %v2263_v41 = vadd.f32 %v5456_v45, %v2262_v53  ;;  %4546 = vtanh.f32 %v2271_v47 }
 0x5ec   :  { %v3849_v19 = vpop.f32.mrf.mxu1  ;;  %v4539_v62 = vpop.eup %4538 }
 0x5ed   :  { %4548 = vtanh.f32 %v2263_v41  ;;  %v2284_v2 = vadd.f32 %v3849_v19, %v5456_v45  ;;  %3930 = vmatpush3.bf16.msra.mxu1 %v4147_v5  ;;  %v4150_v19 = vld [vmem:[#allocation2 + $0x1c8] sm:$0xff]  }
 0x5ee   :  { %v4541_v20 = vpop.eup %4540  ;;  %4550 = vtanh.f32 %v2268_v11  ;;  %v2275_v21 = vpop.f32.mrf.mxu1  ;;  %3931 = vmatprep.subr.bf16.mxu1 %v4148_v6  ;;  %v4149_v11 = vld [vmem:[#allocation2 + $0x1d0] sm:$0xff]  }
 0x5ef   :  { %v4543_v55 = vpop.eup %4542  ;;  %v2276_v15 = vadd.f32 %v5456_v45, %v2275_v21  ;;  %v2150_v22 = vpack.c.bf16 %v4541_v20, %v4537_v14 }
 0x5f0   :  { %v3850_v50 = vpop.f32.mrf.mxu1  ;;  %v2151_v23 = vpack.c.bf16 %v4539_v62, %v4543_v55 }
 0x5f1   :  { %v2287_v18 = vadd.f32 %v3850_v50, %v5456_v45  ;;  %3871 = vmatprep.mubr.bf16.mxu1 %v2150_v22  ;;  %4552 = vtanh.f32 %v2276_v15  ;;  %3932 = vmatpush3.bf16.msra.mxu1 %v4148_v6  ;;  %v4151_v15 = vld [vmem:[#allocation2 + $0x1c0] sm:$0xff]  }
 0x5f2   :  { %v2278_v24 = vpop.f32.mrf.mxu1  ;;  %3872 = vmatmul.mubr.bf16.gmra.mxu1 %v2151_v23  ;;  %3933 = vmatprep.subr.bf16.mxu1 %v4149_v11 }
 0x5f3   :  { %v2279_v57 = vadd.f32 %v5456_v45, %v2278_v24  ;;  %4554 = vtanh.f32 %v2287_v18 }
 0x5f5   :  { %4556 = vtanh.f32 %v2279_v57  ;;  %3934 = vmatpush3.bf16.msra.mxu1 %v4149_v11 }
 0x5f6   :  { %4558 = vtanh.f32 %v2284_v2  ;;  %v4545_v17 = vpop.eup %4544  ;;  %3935 = vmatprep.subr.bf16.mxu1 %v4150_v19 }
 0x5f8   :  { %v4547_v26 = vpop.eup %4546 }
 0x5f9   :  { %3936 = vmatpush3.bf16.msra.mxu1 %v4150_v19 }
 0x5fa   :  { %v4549_v25 = vpop.eup %4548  ;;  %3937 = vmatprep.subr.bf16.mxu1 %v4151_v15 }
 0x5fb   :  { %v4551_v31 = vpop.eup %4550  ;;  %v2418_v27 = vpack.c.bf16 %v4549_v25, %v4545_v17 }
 0x5fc   :  { %v2419_v28 = vpack.c.bf16 %v4547_v26, %v4551_v31 }
 0x5fd   :  { %3891 = vmatprep.mubr.bf16.mxu0 %v2418_v27  ;;  %3938 = vmatpush3.bf16.msra.mxu1 %v4151_v15 }
 0x5fe   :  { %3892 = vmatmul.mubr.bf16.vlgmr.msra.gmra.mxu0 %v2419_v28  ;;  %v4553_v12 = vpop.eup %4552 }
 0x600   :  { %v4555_v29 = vpop.eup %4554 }
 0x602   :  { %v4557_v9 = vpop.eup %4556 }
 0x603   :  { %v4559_v10 = vpop.eup %4558  ;;  %v2420_v32 = vpack.c.bf16 %v4557_v9, %v4553_v12 }
 0x604   :  { %v2421_v16 = vpack.c.bf16 %v4555_v29, %v4559_v10 }
 0x605   :  { %3895 = vmatprep.mubr.bf16.mxu0 %v2420_v32 }
 0x606   :  { %3896 = vmatmul.mubr.bf16.gmra.mxu0 %v2421_v16 }
 0x611   :  { %v3853_v13 = vpop.f32.mrf.mxu1 }
 0x612   :  { %v2300_v38 = vadd.f32 %v3853_v13, %v5456_v45 }
 0x613   :  { %v2291_v35 = vpop.f32.mrf.mxu1 }
 0x614   :  { %v2292_v7 = vadd.f32 %v5456_v45, %v2291_v35 }
 0x615   :  { %v3854_v42 = vpop.f32.mrf.mxu1 }
 0x616   :  { %v2303_v46 = vadd.f32 %v3854_v42, %v5456_v45  ;;  %4560 = vtanh.f32 %v2292_v7 }
 0x617   :  { %v2294_v44 = vpop.f32.mrf.mxu1 }
 0x618   :  { %v2295_v51 = vadd.f32 %v5456_v45, %v2294_v44  ;;  %4562 = vtanh.f32 %v2303_v46 }
 0x61a   :  { %4564 = vtanh.f32 %v2295_v51 }
 0x61b   :  { %4566 = vtanh.f32 %v2300_v38 }
 0x623   :  { %v4561_v37 = vpop.eup %4560 }
 0x625   :  { %v4563_v49 = vpop.eup %4562 }
 0x626   :  { %v3857_v56 = vpop.f32.mrf.mxu1 }
 0x627   :  { %v4565_v58 = vpop.eup %4564  ;;  %v2316_v43 = vadd.f32 %v3857_v56, %v5456_v45 }
 0x628   :  { %v4567_v61 = vpop.eup %4566  ;;  %v2307_v48 = vpop.f32.mrf.mxu1  ;;  %v2422_v0 = vpack.c.bf16 %v4565_v58, %v4561_v37 }
 0x629   :  { %v2308_v52 = vadd.f32 %v5456_v45, %v2307_v48  ;;  %v2423_v8 = vpack.c.bf16 %v4563_v49, %v4567_v61 }
 0x62a   :  { %v3858_v60 = vpop.f32.mrf.mxu1  ;;  %3899 = vmatprep.mubr.bf16.mxu0 %v2422_v0 }
 0x62b   :  { %v2319_v54 = vadd.f32 %v3858_v60, %v5456_v45  ;;  %3900 = vmatmul.mubr.bf16.gmra.mxu0 %v2423_v8  ;;  %4568 = vtanh.f32 %v2308_v52 }
 0x62c   :  { %v2310_v39 = vpop.f32.mrf.mxu1 }
 0x62d   :  { %v2311_v36 = vadd.f32 %v5456_v45, %v2310_v39  ;;  %4570 = vtanh.f32 %v2319_v54 }
 0x62f   :  { %4572 = vtanh.f32 %v2311_v36 }
 0x630   :  { %4574 = vtanh.f32 %v2316_v43 }
 0x638   :  { %v4569_v33 = vpop.eup %4568 }
 0x63a   :  { %v4571_v34 = vpop.eup %4570 }
 0x63c   :  { %v4573_v40 = vpop.eup %4572 }
 0x63d   :  { %v4575_v59 = vpop.eup %4574  ;;  %v2424_v4 = vpack.c.bf16 %v4573_v40, %v4569_v33 }
 0x63e   :  { %v2425_v1 = vpack.c.bf16 %v4571_v34, %v4575_v59  ;;  %v5493_v34 = vld [vmem:[%s5608_s4 + $0x6] ss:$0 sm:$0xff] }
 0x63f   :  { %3903 = vmatprep.mubr.bf16.mxu0 %v2424_v4 }
 0x640   :  { %3904 = vmatmul.mubr.bf16.gmra.mxu0 %v2425_v1 }
 0x64b   :  { %v3861_v47 = vpop.f32.mrf.mxu1 }
 0x64c   :  { %v2332_v20 = vadd.f32 %v3861_v47, %v5456_v45 }
 0x64d   :  { %v2323_v53 = vpop.f32.mrf.mxu1 }
 0x64e   :  { %v2324_v41 = vadd.f32 %v5456_v45, %v2323_v53 }
 0x64f   :  { %v3862_v14 = vpop.f32.mrf.mxu1 }
 0x650   :  { %v2335_v62 = vadd.f32 %v3862_v14, %v5456_v45  ;;  %4576 = vtanh.f32 %v2324_v41 }
 0x651   :  { %v2326_v21 = vpop.f32.mrf.mxu1 }
 0x652   :  { %v2327_v55 = vadd.f32 %v5456_v45, %v2326_v21  ;;  %4578 = vtanh.f32 %v2335_v62 }
 0x654   :  { %4580 = vtanh.f32 %v2327_v55 }
 0x655   :  { %4582 = vtanh.f32 %v2332_v20 }
 0x65d   :  { %v4577_v22 = vpop.eup %4576 }
 0x65f   :  { %v4579_v50 = vpop.eup %4578 }
 0x661   :  { %v4581_v23 = vpop.eup %4580 }
 0x662   :  { %v4583_v18 = vpop.eup %4582  ;;  %v2426_v2 = vpack.c.bf16 %v4581_v23, %v4577_v22 }
 0x663   :  { %v2427_v24 = vpack.c.bf16 %v4579_v50, %v4583_v18 }
 0x664   :  { %3907 = vmatprep.mubr.bf16.mxu0 %v2426_v2 }
 0x665   :  { %3908 = vmatmul.mubr.bf16.gmra.mxu0 %v2427_v24 }
 0x66c   :  { %v3865_v57 = vpop.f32.mrf.mxu1 }
 0x66d   :  { %v2348_v27 = vadd.f32 %v3865_v57, %v5456_v45 }
 0x66e   :  { %v2339_v17 = vpop.f32.mrf.mxu1 }
 0x66f   :  { %v2340_v26 = vadd.f32 %v5456_v45, %v2339_v17 }
 0x670   :  { %v3866_v25 = vpop.f32.mrf.mxu1 }
 0x671   :  { %v2351_v31 = vadd.f32 %v3866_v25, %v5456_v45  ;;  %4584 = vtanh.f32 %v2340_v26 }
 0x672   :  { %v2342_v28 = vpop.f32.mrf.mxu1 }
 0x673   :  { %v2343_v12 = vadd.f32 %v5456_v45, %v2342_v28  ;;  %4586 = vtanh.f32 %v2351_v31 }
 0x675   :  { %4588 = vtanh.f32 %v2343_v12 }
 0x676   :  { %4590 = vtanh.f32 %v2348_v27 }
 0x67e   :  { %v4585_v29 = vpop.eup %4584 }
 0x680   :  { %v4587_v9 = vpop.eup %4586 }
 0x682   :  { %v4589_v10 = vpop.eup %4588 }
 0x683   :  { %v4591_v32 = vpop.eup %4590  ;;  %v2428_v16 = vpack.c.bf16 %v4589_v10, %v4585_v29 }
 0x684   :  { %v2429_v13 = vpack.c.bf16 %v4587_v9, %v4591_v32 }
 0x685   :  { %3911 = vmatprep.mubr.bf16.mxu0 %v2428_v16 }
 0x686   :  { %3912 = vmatmul.mubr.bf16.gmra.mxu0 %v2429_v13 }
 0x691   :  { %v3869_v35 = vpop.f32.mrf.mxu1 }
 0x692   :  { %v2364_v44 = vadd.f32 %v3869_v35, %v5456_v45 }
 0x693   :  { %v2355_v7 = vpop.f32.mrf.mxu1 }
 0x694   :  { %v2356_v42 = vadd.f32 %v5456_v45, %v2355_v7 }
 0x695   :  { %v3870_v46 = vpop.f32.mrf.mxu1 }
 0x696   :  { %v2367_v38 = vadd.f32 %v3870_v46, %v5456_v45  ;;  %4592 = vtanh.f32 %v2356_v42 }
 0x697   :  { %v2358_v51 = vpop.f32.mrf.mxu1 }
 0x698   :  { %v2359_v37 = vadd.f32 %v5456_v45, %v2358_v51  ;;  %4594 = vtanh.f32 %v2367_v38 }
 0x69a   :  { %4596 = vtanh.f32 %v2359_v37 }
 0x69b   :  { %4598 = vtanh.f32 %v2364_v44 }
 0x6a3   :  { %v4593_v49 = vpop.eup %4592 }
 0x6a5   :  { %v4595_v56 = vpop.eup %4594 }
 0x6a7   :  { %v4597_v58 = vpop.eup %4596 }
 0x6a8   :  { %v4599_v61 = vpop.eup %4598  ;;  %v2430_v48 = vpack.c.bf16 %v4597_v58, %v4593_v49 }
 0x6a9   :  { %v2431_v0 = vpack.c.bf16 %v4595_v56, %v4599_v61 }
 0x6aa   :  { %3915 = vmatprep.mubr.bf16.mxu0 %v2430_v48 }
 0x6ab   :  { %3916 = vmatmul.mubr.bf16.gmra.mxu0 %v2431_v0 }
 0x6b2   :  { %v3873_v52 = vpop.f32.mrf.mxu1 }
 0x6b3   :  { %v2380_v39 = vadd.f32 %v3873_v52, %v5456_v45 }
 0x6b4   :  { %v2371_v8 = vpop.f32.mrf.mxu1 }
 0x6b5   :  { %v2372_v60 = vadd.f32 %v5456_v45, %v2371_v8  ;;  %v4152_v8 = vld [vmem:[#allocation2 + $0x238] sm:$0xff]  }
 0x6b6   :  { %v3874_v54 = vpop.f32.mrf.mxu1  ;;  %3971 = vmatprep.subr.bf16.mxu0 %v4152_v8 }
 0x6b7   :  { %v2383_v43 = vadd.f32 %v3874_v54, %v5456_v45  ;;  %4600 = vtanh.f32 %v2372_v60  ;;  %3972 = vmatpush3.bf16.msra.mxu0 %v4152_v8 }
 0x6b8   :  { %v2374_v36 = vpop.f32.mrf.mxu1 }
 0x6b9   :  { %v2375_v63 = vadd.f32 %v5456_v45, %v2374_v36  ;;  %4602 = vtanh.f32 %v2383_v43  ;;  %v4153_v43 = vld [vmem:[#allocation2 + $0x230] sm:$0xff]  }
 0x6ba   :  { %3973 = vmatprep.subr.bf16.mxu0 %v4153_v43 }
 0x6bb   :  { %4604 = vtanh.f32 %v2375_v63  ;;  %3974 = vmatpush3.bf16.msra.mxu0 %v4153_v43 }
 0x6bc   :  { %4606 = vtanh.f32 %v2380_v39 }
 0x6be   :  { %v3893_v33 = vpop.f32.mrf.mxu0 }
 0x6bf   :  { %v2550_v1 = vadd.f32 %v3893_v33, %v5493_v34 }
 0x6c0   :  { %v2541_v3 = vpop.f32.mrf.mxu0 }
 0x6c1   :  { %v2542_v40 = vadd.f32 %v5493_v34, %v2541_v3  ;;  %v4154_v3 = vld [vmem:[#allocation2 + $0x228] sm:$0xff]  }
 0x6c2   :  { %v3894_v59 = vpop.f32.mrf.mxu0  ;;  %3975 = vmatprep.subr.bf16.mxu0 %v4154_v3 }
 0x6c3   :  { %v2553_v4 = vadd.f32 %v3894_v59, %v5493_v34  ;;  %4608 = vtanh.f32 %v2542_v40  ;;  %3976 = vmatpush3.bf16.msra.mxu0 %v4154_v3  ;;  %v4155_v40 = vld [vmem:[#allocation2 + $0x220] sm:$0xff]   ;;  %v4156_v59 = vld [vmem:[#allocation2 + $0x218] sm:$0xff]  }
 0x6c4   :  { %v2544_v30 = vpop.f32.mrf.mxu0  ;;  %v4601_v5 = vpop.eup %4600  ;;  %3977 = vmatprep.subr.bf16.mxu0 %v4155_v40 }
 0x6c5   :  { %v2545_v45 = vadd.f32 %v5493_v34, %v2544_v30  ;;  %4610 = vtanh.f32 %v2553_v4 }
 0x6c6   :  { %v3897_v6 = vpop.f32.mrf.mxu0  ;;  %v4603_v47 = vpop.eup %4602 }
 0x6c7   :  { %4612 = vtanh.f32 %v2545_v45  ;;  %v2566_v55 = vadd.f32 %v3897_v6, %v5493_v34  ;;  %3978 = vmatpush3.bf16.msra.mxu0 %v4155_v40  ;;  %v4158_v6 = vld [vmem:[#allocation2 + $0x208] sm:$0xff]  }
 0x6c8   :  { %v4605_v11 = vpop.eup %4604  ;;  %4614 = vtanh.f32 %v2550_v1  ;;  %v2557_v53 = vpop.f32.mrf.mxu0  ;;  %3979 = vmatprep.subr.bf16.mxu0 %v4156_v59  ;;  %v4157_v1 = vld [vmem:[#allocation2 + $0x210] sm:$0xff]  }
 0x6c9   :  { %v4607_v41 = vpop.eup %4606  ;;  %v2558_v14 = vadd.f32 %v5493_v34, %v2557_v53  ;;  %v2432_v19 = vpack.c.bf16 %v4605_v11, %v4601_v5 }
 0x6ca   :  { %v3898_v62 = vpop.f32.mrf.mxu0  ;;  %v2433_v20 = vpack.c.bf16 %v4603_v47, %v4607_v41 }
 0x6cb   :  { %v2569_v21 = vadd.f32 %v3898_v62, %v5493_v34  ;;  %3919 = vmatprep.mubr.bf16.mxu0 %v2432_v19  ;;  %4616 = vtanh.f32 %v2558_v14  ;;  %3980 = vmatpush3.bf16.msra.mxu0 %v4156_v59  ;;  %v4159_v14 = vld [vmem:[#allocation2 + $0x200] sm:$0xff]  }
 0x6cc   :  { %v2560_v15 = vpop.f32.mrf.mxu0  ;;  %3920 = vmatmul.mubr.bf16.gmra.mxu0 %v2433_v20  ;;  %3981 = vmatprep.subr.bf16.mxu0 %v4157_v1 }
 0x6cd   :  { %v2561_v22 = vadd.f32 %v5493_v34, %v2560_v15  ;;  %4618 = vtanh.f32 %v2569_v21 }
 0x6cf   :  { %4620 = vtanh.f32 %v2561_v22  ;;  %3982 = vmatpush3.bf16.msra.mxu0 %v4157_v1 }
 0x6d0   :  { %4622 = vtanh.f32 %v2566_v55  ;;  %v4609_v50 = vpop.eup %4608  ;;  %3983 = vmatprep.subr.bf16.mxu0 %v4158_v6 }
 0x6d2   :  { %v4611_v23 = vpop.eup %4610 }
 0x6d3   :  { %3984 = vmatpush3.bf16.msra.mxu0 %v4158_v6 }
 0x6d4   :  { %v4613_v18 = vpop.eup %4612  ;;  %3985 = vmatprep.subr.bf16.mxu0 %v4159_v14 }
 0x6d5   :  { %v4615_v2 = vpop.eup %4614  ;;  %v2700_v24 = vpack.c.bf16 %v4613_v18, %v4609_v50 }
 0x6d6   :  { %v2701_v57 = vpack.c.bf16 %v4611_v23, %v4615_v2 }
 0x6d7   :  { %3939 = vmatprep.mubr.bf16.mxu1 %v2700_v24  ;;  %3986 = vmatpush3.bf16.msra.mxu0 %v4159_v14 }
 0x6d8   :  { %3940 = vmatmul.mubr.bf16.vlgmr.msra.gmra.mxu1 %v2701_v57  ;;  %v4617_v17 = vpop.eup %4616 }
 0x6da   :  { %v4619_v26 = vpop.eup %4618 }
 0x6dc   :  { %v4621_v25 = vpop.eup %4620 }
 0x6dd   :  { %v4623_v31 = vpop.eup %4622  ;;  %v2702_v27 = vpack.c.bf16 %v4621_v25, %v4617_v17 }
 0x6de   :  { %v2703_v28 = vpack.c.bf16 %v4619_v26, %v4623_v31 }
 0x6df   :  { %3943 = vmatprep.mubr.bf16.mxu1 %v2702_v27 }
 0x6e0   :  { %3944 = vmatmul.mubr.bf16.gmra.mxu1 %v2703_v28 }
 0x6eb   :  { %v3901_v12 = vpop.f32.mrf.mxu0 }
 0x6ec   :  { %v2582_v16 = vadd.f32 %v3901_v12, %v5493_v34 }
 0x6ed   :  { %v2573_v29 = vpop.f32.mrf.mxu0 }
 0x6ee   :  { %v2574_v9 = vadd.f32 %v5493_v34, %v2573_v29 }
 0x6ef   :  { %v3902_v10 = vpop.f32.mrf.mxu0 }
 0x6f0   :  { %v2585_v32 = vadd.f32 %v3902_v10, %v5493_v34  ;;  %4624 = vtanh.f32 %v2574_v9 }
 0x6f1   :  { %v2576_v13 = vpop.f32.mrf.mxu0 }
 0x6f2   :  { %v2577_v35 = vadd.f32 %v5493_v34, %v2576_v13  ;;  %4626 = vtanh.f32 %v2585_v32 }
 0x6f4   :  { %4628 = vtanh.f32 %v2577_v35 }
 0x6f5   :  { %4630 = vtanh.f32 %v2582_v16 }
 0x6fd   :  { %v4625_v7 = vpop.eup %4624 }
 0x6ff   :  { %v4627_v42 = vpop.eup %4626 }
 0x700   :  { %v3905_v46 = vpop.f32.mrf.mxu0 }
 0x701   :  { %v4629_v38 = vpop.eup %4628  ;;  %v2598_v48 = vadd.f32 %v3905_v46, %v5493_v34 }
 0x702   :  { %v4631_v44 = vpop.eup %4630  ;;  %v2589_v51 = vpop.f32.mrf.mxu0  ;;  %v2704_v37 = vpack.c.bf16 %v4629_v38, %v4625_v7 }
 0x703   :  { %v2590_v49 = vadd.f32 %v5493_v34, %v2589_v51  ;;  %v2705_v56 = vpack.c.bf16 %v4627_v42, %v4631_v44 }
 0x704   :  { %v3906_v58 = vpop.f32.mrf.mxu0  ;;  %3947 = vmatprep.mubr.bf16.mxu1 %v2704_v37 }
 0x705   :  { %v2601_v61 = vadd.f32 %v3906_v58, %v5493_v34  ;;  %3948 = vmatmul.mubr.bf16.gmra.mxu1 %v2705_v56  ;;  %4632 = vtanh.f32 %v2590_v49 }
 0x706   :  { %v2592_v0 = vpop.f32.mrf.mxu0 }
 0x707   :  { %v2593_v52 = vadd.f32 %v5493_v34, %v2592_v0  ;;  %4634 = vtanh.f32 %v2601_v61 }
 0x709   :  { %4636 = vtanh.f32 %v2593_v52 }
 0x70a   :  { %4638 = vtanh.f32 %v2598_v48 }
 0x712   :  { %v4633_v60 = vpop.eup %4632 }
 0x714   :  { %v4635_v54 = vpop.eup %4634 }
 0x716   :  { %v4637_v39 = vpop.eup %4636 }
 0x717   :  { %v4639_v36 = vpop.eup %4638  ;;  %v2706_v63 = vpack.c.bf16 %v4637_v39, %v4633_v60 }
 0x718   :  { %v2707_v33 = vpack.c.bf16 %v4635_v54, %v4639_v36  ;;  %v5530_v54 = vld [vmem:[%s5608_s4 + $0x7] ss:$0 sm:$0xff] }
 0x719   :  { %3951 = vmatprep.mubr.bf16.mxu1 %v2706_v63 }
 0x71a   :  { %3952 = vmatmul.mubr.bf16.gmra.mxu1 %v2707_v33 }
 0x725   :  { %v3909_v4 = vpop.f32.mrf.mxu0 }
 0x726   :  { %v2614_v11 = vadd.f32 %v3909_v4, %v5493_v34 }
 0x727   :  { %v2605_v30 = vpop.f32.mrf.mxu0 }
 0x728   :  { %v2606_v45 = vadd.f32 %v5493_v34, %v2605_v30 }
 0x729   :  { %v3910_v5 = vpop.f32.mrf.mxu0 }
 0x72a   :  { %v2617_v47 = vadd.f32 %v3910_v5, %v5493_v34  ;;  %4640 = vtanh.f32 %v2606_v45 }
 0x72b   :  { %v2608_v53 = vpop.f32.mrf.mxu0 }
 0x72c   :  { %v2609_v41 = vadd.f32 %v5493_v34, %v2608_v53  ;;  %4642 = vtanh.f32 %v2617_v47 }
 0x72e   :  { %4644 = vtanh.f32 %v2609_v41 }
 0x72f   :  { %4646 = vtanh.f32 %v2614_v11 }
 0x737   :  { %v4641_v19 = vpop.eup %4640 }
 0x739   :  { %v4643_v62 = vpop.eup %4642 }
 0x73b   :  { %v4645_v20 = vpop.eup %4644 }
 0x73c   :  { %v4647_v21 = vpop.eup %4646  ;;  %v2708_v55 = vpack.c.bf16 %v4645_v20, %v4641_v19 }
 0x73d   :  { %v2709_v15 = vpack.c.bf16 %v4643_v62, %v4647_v21 }
 0x73e   :  { %3955 = vmatprep.mubr.bf16.mxu1 %v2708_v55 }
 0x73f   :  { %3956 = vmatmul.mubr.bf16.gmra.mxu1 %v2709_v15 }
 0x746   :  { %v3913_v22 = vpop.f32.mrf.mxu0 }
 0x747   :  { %v2630_v24 = vadd.f32 %v3913_v22, %v5493_v34 }
 0x748   :  { %v2621_v50 = vpop.f32.mrf.mxu0 }
 0x749   :  { %v2622_v23 = vadd.f32 %v5493_v34, %v2621_v50 }
 0x74a   :  { %v3914_v18 = vpop.f32.mrf.mxu0 }
 0x74b   :  { %v2633_v2 = vadd.f32 %v3914_v18, %v5493_v34  ;;  %4648 = vtanh.f32 %v2622_v23 }
 0x74c   :  { %v2624_v57 = vpop.f32.mrf.mxu0 }
 0x74d   :  { %v2625_v17 = vadd.f32 %v5493_v34, %v2624_v57  ;;  %4650 = vtanh.f32 %v2633_v2 }
 0x74f   :  { %4652 = vtanh.f32 %v2625_v17 }
 0x750   :  { %4654 = vtanh.f32 %v2630_v24 }
 0x758   :  { %v4649_v26 = vpop.eup %4648 }
 0x75a   :  { %v4651_v25 = vpop.eup %4650 }
 0x75c   :  { %v4653_v31 = vpop.eup %4652 }
 0x75d   :  { %v4655_v27 = vpop.eup %4654  ;;  %v2710_v28 = vpack.c.bf16 %v4653_v31, %v4649_v26 }
 0x75e   :  { %v2711_v12 = vpack.c.bf16 %v4651_v25, %v4655_v27 }
 0x75f   :  { %3959 = vmatprep.mubr.bf16.mxu1 %v2710_v28 }
 0x760   :  { %3960 = vmatmul.mubr.bf16.gmra.mxu1 %v2711_v12 }
 0x76b   :  { %v3917_v29 = vpop.f32.mrf.mxu0 }
 0x76c   :  { %v2646_v13 = vadd.f32 %v3917_v29, %v5493_v34 }
 0x76d   :  { %v2637_v9 = vpop.f32.mrf.mxu0 }
 0x76e   :  { %v2638_v10 = vadd.f32 %v5493_v34, %v2637_v9 }
 0x76f   :  { %v3918_v32 = vpop.f32.mrf.mxu0 }
 0x770   :  { %v2649_v16 = vadd.f32 %v3918_v32, %v5493_v34  ;;  %4656 = vtanh.f32 %v2638_v10 }
 0x771   :  { %v2640_v35 = vpop.f32.mrf.mxu0 }
 0x772   :  { %v2641_v7 = vadd.f32 %v5493_v34, %v2640_v35  ;;  %4658 = vtanh.f32 %v2649_v16 }
 0x774   :  { %4660 = vtanh.f32 %v2641_v7 }
 0x775   :  { %4662 = vtanh.f32 %v2646_v13 }
 0x77d   :  { %v4657_v42 = vpop.eup %4656 }
 0x77f   :  { %v4659_v46 = vpop.eup %4658 }
 0x781   :  { %v4661_v38 = vpop.eup %4660 }
 0x782   :  { %v4663_v44 = vpop.eup %4662  ;;  %v2712_v51 = vpack.c.bf16 %v4661_v38, %v4657_v42 }
 0x783   :  { %v2713_v37 = vpack.c.bf16 %v4659_v46, %v4663_v44 }
 0x784   :  { %3963 = vmatprep.mubr.bf16.mxu1 %v2712_v51 }
 0x785   :  { %3964 = vmatmul.mubr.bf16.gmra.mxu1 %v2713_v37 }
 0x78c   :  { %v3921_v49 = vpop.f32.mrf.mxu0 }
 0x78d   :  { %v2662_v0 = vadd.f32 %v3921_v49, %v5493_v34 }
 0x78e   :  { %v2653_v56 = vpop.f32.mrf.mxu0 }
 0x78f   :  { %v2654_v58 = vadd.f32 %v5493_v34, %v2653_v56 }
 0x790   :  { %v3922_v61 = vpop.f32.mrf.mxu0 }
 0x791   :  { %v2665_v48 = vadd.f32 %v3922_v61, %v5493_v34  ;;  %4664 = vtanh.f32 %v2654_v58 }
 0x792   :  { %v2656_v52 = vpop.f32.mrf.mxu0 }
 0x793   :  { %v2657_v8 = vadd.f32 %v5493_v34, %v2656_v52  ;;  %4666 = vtanh.f32 %v2665_v48 }
 0x795   :  { %4668 = vtanh.f32 %v2657_v8 }
 0x796   :  { %4670 = vtanh.f32 %v2662_v0 }
 0x798   :  { %v3941_v60 = vpop.f32.mrf.mxu1 }
 0x799   :  { %v2832_v33 = vadd.f32 %v3941_v60, %v5530_v54 }
 0x79a   :  { %v2823_v43 = vpop.f32.mrf.mxu1 }
 0x79b   :  { %v2824_v39 = vadd.f32 %v5530_v54, %v2823_v43 }
 0x79c   :  { %v3942_v36 = vpop.f32.mrf.mxu1 }
 0x79d   :  { %v2835_v63 = vadd.f32 %v3942_v36, %v5530_v54  ;;  %4672 = vtanh.f32 %v2824_v39 }
 0x79e   :  { %v2826_v3 = vpop.f32.mrf.mxu1  ;;  %v4665_v40 = vpop.eup %4664 }
 0x79f   :  { %v2827_v34 = vadd.f32 %v5530_v54, %v2826_v3  ;;  %4674 = vtanh.f32 %v2835_v63 }
 0x7a0   :  { %v3945_v59 = vpop.f32.mrf.mxu1  ;;  %v4667_v4 = vpop.eup %4666 }
 0x7a1   :  { %4676 = vtanh.f32 %v2827_v34  ;;  %v2848_v41 = vadd.f32 %v3945_v59, %v5530_v54 }
 0x7a2   :  { %v4669_v1 = vpop.eup %4668  ;;  %4678 = vtanh.f32 %v2832_v33  ;;  %v2839_v30 = vpop.f32.mrf.mxu1 }
 0x7a3   :  { %v4671_v45 = vpop.eup %4670  ;;  %v2840_v5 = vadd.f32 %v5530_v54, %v2839_v30  ;;  %v2714_v6 = vpack.c.bf16 %v4669_v1, %v4665_v40 }
 0x7a4   :  { %v3946_v47 = vpop.f32.mrf.mxu1  ;;  %v2715_v11 = vpack.c.bf16 %v4667_v4, %v4671_v45 }
 0x7a5   :  { %v2851_v53 = vadd.f32 %v3946_v47, %v5530_v54  ;;  %3967 = vmatprep.mubr.bf16.mxu1 %v2714_v6  ;;  %4680 = vtanh.f32 %v2840_v5 }
 0x7a6   :  { %v2842_v14 = vpop.f32.mrf.mxu1  ;;  %3968 = vmatmul.mubr.bf16.gmra.mxu1 %v2715_v11 }
 0x7a7   :  { %v2843_v19 = vadd.f32 %v5530_v54, %v2842_v14  ;;  %4682 = vtanh.f32 %v2851_v53 }
 0x7a9   :  { %4684 = vtanh.f32 %v2843_v19 }
 0x7aa   :  { %4686 = vtanh.f32 %v2848_v41  ;;  %v4673_v62 = vpop.eup %4672 }
 0x7ac   :  { %v4675_v20 = vpop.eup %4674 }
 0x7ae   :  { %v4677_v21 = vpop.eup %4676 }
 0x7af   :  { %v4679_v55 = vpop.eup %4678  ;;  %v2982_v15 = vpack.c.bf16 %v4677_v21, %v4673_v62 }
 0x7b0   :  { %v2983_v22 = vpack.c.bf16 %v4675_v20, %v4679_v55 }
 0x7b1   :  { %3987 = vmatprep.mubr.bf16.mxu0 %v2982_v15 }
 0x7b2   :  { %3988 = vmatmul.mubr.bf16.vlgmr.msra.gmra.mxu0 %v2983_v22  ;;  %v4681_v50 = vpop.eup %4680 }
 0x7b4   :  { %v4683_v23 = vpop.eup %4682 }
 0x7b6   :  { %v4685_v18 = vpop.eup %4684 }
 0x7b7   :  { %v4687_v2 = vpop.eup %4686  ;;  %v2984_v24 = vpack.c.bf16 %v4685_v18, %v4681_v50 }
 0x7b8   :  { %v2985_v57 = vpack.c.bf16 %v4683_v23, %v4687_v2 }
 0x7b9   :  { %3991 = vmatprep.mubr.bf16.mxu0 %v2984_v24 }
 0x7ba   :  { %3992 = vmatmul.mubr.bf16.gmra.mxu0 %v2985_v57 }
 0x7c5   :  { %v3949_v17 = vpop.f32.mrf.mxu1 }
 0x7c6   :  { %v2864_v28 = vadd.f32 %v3949_v17, %v5530_v54 }
 0x7c7   :  { %v2855_v26 = vpop.f32.mrf.mxu1 }
 0x7c8   :  { %v2856_v25 = vadd.f32 %v5530_v54, %v2855_v26 }
 0x7c9   :  { %v3950_v31 = vpop.f32.mrf.mxu1 }
 0x7ca   :  { %v2867_v27 = vadd.f32 %v3950_v31, %v5530_v54  ;;  %4688 = vtanh.f32 %v2856_v25 }
 0x7cb   :  { %v2858_v12 = vpop.f32.mrf.mxu1 }
 0x7cc   :  { %v2859_v29 = vadd.f32 %v5530_v54, %v2858_v12  ;;  %4690 = vtanh.f32 %v2867_v27 }
 0x7ce   :  { %4692 = vtanh.f32 %v2859_v29 }
 0x7cf   :  { %4694 = vtanh.f32 %v2864_v28 }
 0x7d7   :  { %v4689_v9 = vpop.eup %4688 }
 0x7d9   :  { %v4691_v10 = vpop.eup %4690 }
 0x7da   :  { %v3953_v32 = vpop.f32.mrf.mxu1 }
 0x7db   :  { %v4693_v16 = vpop.eup %4692  ;;  %v2880_v51 = vadd.f32 %v3953_v32, %v5530_v54 }
 0x7dc   :  { %v4695_v13 = vpop.eup %4694  ;;  %v2871_v35 = vpop.f32.mrf.mxu1  ;;  %v2986_v7 = vpack.c.bf16 %v4693_v16, %v4689_v9 }
 0x7dd   :  { %v2872_v42 = vadd.f32 %v5530_v54, %v2871_v35  ;;  %v2987_v46 = vpack.c.bf16 %v4691_v10, %v4695_v13 }
 0x7de   :  { %v3954_v38 = vpop.f32.mrf.mxu1  ;;  %3995 = vmatprep.mubr.bf16.mxu0 %v2986_v7 }
 0x7df   :  { %v2883_v44 = vadd.f32 %v3954_v38, %v5530_v54  ;;  %3996 = vmatmul.mubr.bf16.gmra.mxu0 %v2987_v46  ;;  %4696 = vtanh.f32 %v2872_v42  ;;  %v5567_v42 = vld [vmem:[%s5608_s4 + $0x8] ss:$0 sm:$0xff]  ;;  %s4786_s4 = smov [#allocation5]  }
 0x7e0   :  { %v2874_v37 = vpop.f32.mrf.mxu1  ;;  %s3269_s29 = sshll.u32 %s4786_s4, 4  ;;  %s3270_s29 = int_to_ptr.vmem [resolvable:$true] %s3269_s29 }
 0x7e1   :  { %v2875_v49 = vadd.f32 %v5530_v54, %v2874_v37  ;;  %4698 = vtanh.f32 %v2883_v44  ;;  %s4756_s30 = scalar_lea.vmem %s3270_s29, 4096  ;;  %p4761_p6 = scmp.lt.s32.totalorder %s3270_s29, %s3270_s29 }
 0x7e2   :  { %p4757_p5 = scmp.ne.s32.totalorder %s3270_s29, %s4756_s30  ;;  %p4762_p7 = scmp.lt.s32.totalorder %s4756_s30, %s4756_s30 }
 0x7e3   :  { %4700 = vtanh.f32 %v2875_v49 }
 0x7e4   :  { %4702 = vtanh.f32 %v2880_v51  ;;  %p4763_p8 = por %p4762_p7, %p4761_p6 }
 0x7e6   :  { %p4764_p9 = pnand %p4763_p8, %p4757_p5 }
 0x7ec   :  { %v4697_v56 = vpop.eup %4696 }
 0x7ee   :  { %v4699_v58 = vpop.eup %4698 }
 0x7f0   :  { %v4701_v61 = vpop.eup %4700 }
 0x7f1   :  { %v4703_v48 = vpop.eup %4702  ;;  %v2988_v0 = vpack.c.bf16 %v4701_v61, %v4697_v56 }
 0x7f2   :  { %v2989_v52 = vpack.c.bf16 %v4699_v58, %v4703_v48 }
 0x7f3   :  { %3999 = vmatprep.mubr.bf16.mxu0 %v2988_v0 }
 0x7f4   :  { %4000 = vmatmul.mubr.bf16.gmra.mxu0 %v2989_v52 }
 0x7ff   :  { %v3957_v8 = vpop.f32.mrf.mxu1 }
 0x800   :  { %v2896_v63 = vadd.f32 %v3957_v8, %v5530_v54 }
 0x801   :  { %v2887_v60 = vpop.f32.mrf.mxu1 }
 0x802   :  { %v2888_v43 = vadd.f32 %v5530_v54, %v2887_v60 }
 0x803   :  { %v3958_v39 = vpop.f32.mrf.mxu1 }
 0x804   :  { %v2899_v36 = vadd.f32 %v3958_v39, %v5530_v54  ;;  %4704 = vtanh.f32 %v2888_v43 }
 0x805   :  { %v2890_v33 = vpop.f32.mrf.mxu1 }
 0x806   :  { %v2891_v3 = vadd.f32 %v5530_v54, %v2890_v33  ;;  %4706 = vtanh.f32 %v2899_v36 }
 0x808   :  { %4708 = vtanh.f32 %v2891_v3 }
 0x809   :  { %4710 = vtanh.f32 %v2896_v63 }
 0x811   :  { %v4705_v34 = vpop.eup %4704 }
 0x813   :  { %v4707_v40 = vpop.eup %4706 }
 0x815   :  { %v4709_v59 = vpop.eup %4708 }
 0x816   :  { %v4711_v4 = vpop.eup %4710  ;;  %v2990_v1 = vpack.c.bf16 %v4709_v59, %v4705_v34 }
 0x817   :  { %v2991_v30 = vpack.c.bf16 %v4707_v40, %v4711_v4 }
 0x818   :  { %4003 = vmatprep.mubr.bf16.mxu0 %v2990_v1 }
 0x819   :  { %4004 = vmatmul.mubr.bf16.gmra.mxu0 %v2991_v30 }
 0x820   :  { %v3961_v45 = vpop.f32.mrf.mxu1 }
 0x821   :  { %v2912_v53 = vadd.f32 %v3961_v45, %v5530_v54 }
 0x822   :  { %v2903_v5 = vpop.f32.mrf.mxu1 }
 0x823   :  { %v2904_v6 = vadd.f32 %v5530_v54, %v2903_v5 }
 0x824   :  { %v3962_v47 = vpop.f32.mrf.mxu1 }
 0x825   :  { %v2915_v11 = vadd.f32 %v3962_v47, %v5530_v54  ;;  %4712 = vtanh.f32 %v2904_v6 }
 0x826   :  { %v2906_v41 = vpop.f32.mrf.mxu1 }
 0x827   :  { %v2907_v14 = vadd.f32 %v5530_v54, %v2906_v41  ;;  %4714 = vtanh.f32 %v2915_v11 }
 0x829   :  { %4716 = vtanh.f32 %v2907_v14 }
 0x82a   :  { %4718 = vtanh.f32 %v2912_v53 }
 0x832   :  { %v4713_v19 = vpop.eup %4712 }
 0x834   :  { %v4715_v62 = vpop.eup %4714 }
 0x836   :  { %v4717_v20 = vpop.eup %4716 }
 0x837   :  { %v4719_v21 = vpop.eup %4718  ;;  %v2992_v55 = vpack.c.bf16 %v4717_v20, %v4713_v19 }
 0x838   :  { %v2993_v15 = vpack.c.bf16 %v4715_v62, %v4719_v21 }
 0x839   :  { %4007 = vmatprep.mubr.bf16.mxu0 %v2992_v55 }
 0x83a   :  { %4008 = vmatmul.mubr.bf16.gmra.mxu0 %v2993_v15 }
 0x845   :  { %v3965_v22 = vpop.f32.mrf.mxu1 }
 0x846   :  { %v2928_v24 = vadd.f32 %v3965_v22, %v5530_v54 }
 0x847   :  { %v2919_v50 = vpop.f32.mrf.mxu1 }
 0x848   :  { %v2920_v23 = vadd.f32 %v5530_v54, %v2919_v50 }
 0x849   :  { %v3966_v18 = vpop.f32.mrf.mxu1 }
 0x84a   :  { %v2931_v2 = vadd.f32 %v3966_v18, %v5530_v54  ;;  %4720 = vtanh.f32 %v2920_v23 }
 0x84b   :  { %v2922_v57 = vpop.f32.mrf.mxu1 }
 0x84c   :  { %v2923_v17 = vadd.f32 %v5530_v54, %v2922_v57  ;;  %4722 = vtanh.f32 %v2931_v2 }
 0x84e   :  { %4724 = vtanh.f32 %v2923_v17 }
 0x84f   :  { %4726 = vtanh.f32 %v2928_v24 }
 0x857   :  { %v4721_v26 = vpop.eup %4720 }
 0x859   :  { %v4723_v25 = vpop.eup %4722 }
 0x85b   :  { %v4725_v31 = vpop.eup %4724 }
 0x85c   :  { %v4727_v27 = vpop.eup %4726  ;;  %v2994_v28 = vpack.c.bf16 %v4725_v31, %v4721_v26 }
 0x85d   :  { %v2995_v12 = vpack.c.bf16 %v4723_v25, %v4727_v27 }
 0x85e   :  { %4011 = vmatprep.mubr.bf16.mxu0 %v2994_v28 }
 0x85f   :  { %4012 = vmatmul.mubr.bf16.gmra.mxu0 %v2995_v12 }
 0x866   :  { %v3969_v29 = vpop.f32.mrf.mxu1 }
 0x867   :  { %v2944_v13 = vadd.f32 %v3969_v29, %v5530_v54 }
 0x868   :  { %v2935_v9 = vpop.f32.mrf.mxu1 }
 0x869   :  { %v2936_v10 = vadd.f32 %v5530_v54, %v2935_v9 }
 0x86a   :  { %v3970_v32 = vpop.f32.mrf.mxu1 }
 0x86b   :  { %v2947_v16 = vadd.f32 %v3970_v32, %v5530_v54  ;;  %4728 = vtanh.f32 %v2936_v10 }
 0x86c   :  { %v2938_v35 = vpop.f32.mrf.mxu1 }
 0x86d   :  { %v2939_v7 = vadd.f32 %v5530_v54, %v2938_v35  ;;  %4730 = vtanh.f32 %v2947_v16 }
 0x86f   :  { %4732 = vtanh.f32 %v2939_v7 }
 0x870   :  { %4734 = vtanh.f32 %v2944_v13 }
 0x872   :  { %v3989_v46 = vpop.f32.mrf.mxu0 }
 0x873   :  { %v3114_v38 = vadd.f32 %v3989_v46, %v5567_v42 }
 0x874   :  { %v3105_v44 = vpop.f32.mrf.mxu0 }
 0x875   :  { %3234 = vst [vmem:[#allocation5 + $0x10] sm:$0xff] %v3114_v38  ;;  %v3106_v51 = vadd.f32 %v5567_v42, %v3105_v44 }
 0x876   :  { %v3990_v37 = vpop.f32.mrf.mxu0 }
 0x877   :  { %3232 = vst [vmem:[#allocation5] sm:$0xff] %v3106_v51  ;;  %v3117_v49 = vadd.f32 %v3990_v37, %v5567_v42 }
 0x878   :  { %v3108_v54 = vpop.f32.mrf.mxu0  ;;  %v4729_v58 = vpop.eup %4728 }
 0x879   :  { %3235 = vst [vmem:[#allocation5 + $0x18] sm:$0xff] %v3117_v49  ;;  %v3109_v56 = vadd.f32 %v5567_v42, %v3108_v54 }
 0x87a   :  { %v3993_v61 = vpop.f32.mrf.mxu0  ;;  %v4731_v48 = vpop.eup %4730 }
 0x87b   :  { %3233 = vst [vmem:[#allocation5 + $0x8] sm:$0xff] %v3109_v56  ;;  %v3130_v0 = vadd.f32 %v3993_v61, %v5567_v42 }
 0x87c   :  { %v4733_v52 = vpop.eup %4732  ;;  %v3121_v8 = vpop.f32.mrf.mxu0 }
 0x87d   :  { %v4735_v60 = vpop.eup %4734  ;;  %3238 = vst [vmem:[#allocation5 + $0x30] sm:$0xff] %v3130_v0  ;;  %v3122_v43 = vadd.f32 %v5567_v42, %v3121_v8  ;;  %v2996_v39 = vpack.c.bf16 %v4733_v52, %v4729_v58 }
 0x87e   :  { %v3994_v36 = vpop.f32.mrf.mxu0  ;;  %v2997_v63 = vpack.c.bf16 %v4731_v48, %v4735_v60 }
 0x87f   :  { %3236 = vst [vmem:[#allocation5 + $0x20] sm:$0xff] %v3122_v43  ;;  %v3133_v33 = vadd.f32 %v3994_v36, %v5567_v42  ;;  %4015 = vmatprep.mubr.bf16.mxu0 %v2996_v39 }
 0x880   :  { %v3124_v3 = vpop.f32.mrf.mxu0  ;;  %4016 = vmatmul.mubr.bf16.gmra.mxu0 %v2997_v63 }
 0x881   :  { %3239 = vst [vmem:[#allocation5 + $0x38] sm:$0xff] %v3133_v33  ;;  %v3125_v34 = vadd.f32 %v5567_v42, %v3124_v3 }
 0x883   :  { %3237 = vst [vmem:[#allocation5 + $0x28] sm:$0xff] %v3125_v34 }
 0x89f   :  { %v3997_v40 = vpop.f32.mrf.mxu0 }
 0x8a0   :  { %v3146_v59 = vadd.f32 %v3997_v40, %v5567_v42 }
 0x8a1   :  { %v3137_v4 = vpop.f32.mrf.mxu0 }
 0x8a2   :  { %3242 = vst [vmem:[#allocation5 + $0x50] sm:$0xff] %v3146_v59  ;;  %v3138_v1 = vadd.f32 %v5567_v42, %v3137_v4 }
 0x8a3   :  { %v3998_v30 = vpop.f32.mrf.mxu0 }
 0x8a4   :  { %3240 = vst [vmem:[#allocation5 + $0x40] sm:$0xff] %v3138_v1  ;;  %v3149_v45 = vadd.f32 %v3998_v30, %v5567_v42 }
 0x8a5   :  { %v3140_v5 = vpop.f32.mrf.mxu0 }
 0x8a6   :  { %3243 = vst [vmem:[#allocation5 + $0x58] sm:$0xff] %v3149_v45  ;;  %v3141_v6 = vadd.f32 %v5567_v42, %v3140_v5 }
 0x8a8   :  { %3241 = vst [vmem:[#allocation5 + $0x48] sm:$0xff] %v3141_v6 }
 0x8b4   :  { %v4001_v47 = vpop.f32.mrf.mxu0 }
 0x8b5   :  { %v3162_v11 = vadd.f32 %v4001_v47, %v5567_v42 }
 0x8b6   :  { %v3153_v53 = vpop.f32.mrf.mxu0 }
 0x8b7   :  { %3246 = vst [vmem:[#allocation5 + $0x70] sm:$0xff] %v3162_v11  ;;  %v3154_v41 = vadd.f32 %v5567_v42, %v3153_v53 }
 0x8b8   :  { %v4002_v14 = vpop.f32.mrf.mxu0 }
 0x8b9   :  { %3244 = vst [vmem:[#allocation5 + $0x60] sm:$0xff] %v3154_v41  ;;  %v3165_v19 = vadd.f32 %v4002_v14, %v5567_v42 }
 0x8ba   :  { %v3156_v62 = vpop.f32.mrf.mxu0 }
 0x8bb   :  { %3247 = vst [vmem:[#allocation5 + $0x78] sm:$0xff] %v3165_v19  ;;  %v3157_v20 = vadd.f32 %v5567_v42, %v3156_v62 }
 0x8bd   :  { %3245 = vst [vmem:[#allocation5 + $0x68] sm:$0xff] %v3157_v20 }
 0x8d9   :  { %v4005_v21 = vpop.f32.mrf.mxu0 }
 0x8da   :  { %v3178_v55 = vadd.f32 %v4005_v21, %v5567_v42 }
 0x8db   :  { %v3169_v15 = vpop.f32.mrf.mxu0 }
 0x8dc   :  { %3250 = vst [vmem:[#allocation5 + $0x90] sm:$0xff] %v3178_v55  ;;  %v3170_v22 = vadd.f32 %v5567_v42, %v3169_v15 }
 0x8dd   :  { %v4006_v50 = vpop.f32.mrf.mxu0 }
 0x8de   :  { %3248 = vst [vmem:[#allocation5 + $0x80] sm:$0xff] %v3170_v22  ;;  %v3181_v23 = vadd.f32 %v4006_v50, %v5567_v42 }
 0x8df   :  { %v3172_v18 = vpop.f32.mrf.mxu0 }
 0x8e0   :  { %3251 = vst [vmem:[#allocation5 + $0x98] sm:$0xff] %v3181_v23  ;;  %v3173_v2 = vadd.f32 %v5567_v42, %v3172_v18 }
 0x8e2   :  { %3249 = vst [vmem:[#allocation5 + $0x88] sm:$0xff] %v3173_v2 }
 0x8fa   :  { %v4009_v24 = vpop.f32.mrf.mxu0 }
 0x8fb   :  { %v3194_v57 = vadd.f32 %v4009_v24, %v5567_v42 }
 0x8fc   :  { %v3185_v17 = vpop.f32.mrf.mxu0 }
 0x8fd   :  { %3254 = vst [vmem:[#allocation5 + $0xb0] sm:$0xff] %v3194_v57  ;;  %v3186_v26 = vadd.f32 %v5567_v42, %v3185_v17 }
 0x8fe   :  { %v4010_v25 = vpop.f32.mrf.mxu0 }
 0x8ff   :  { %3252 = vst [vmem:[#allocation5 + $0xa0] sm:$0xff] %v3186_v26  ;;  %v3197_v31 = vadd.f32 %v4010_v25, %v5567_v42 }
 0x900   :  { %v3188_v27 = vpop.f32.mrf.mxu0 }
 0x901   :  { %3255 = vst [vmem:[#allocation5 + $0xb8] sm:$0xff] %v3197_v31  ;;  %v3189_v28 = vadd.f32 %v5567_v42, %v3188_v27 }
 0x903   :  { %3253 = vst [vmem:[#allocation5 + $0xa8] sm:$0xff] %v3189_v28 }
 0x91f   :  { %v4013_v12 = vpop.f32.mrf.mxu0 }
 0x920   :  { %v3210_v29 = vadd.f32 %v4013_v12, %v5567_v42 }
 0x921   :  { %v3201_v9 = vpop.f32.mrf.mxu0 }
 0x922   :  { %3258 = vst [vmem:[#allocation5 + $0xd0] sm:$0xff] %v3210_v29  ;;  %v3202_v10 = vadd.f32 %v5567_v42, %v3201_v9 }
 0x923   :  { %v4014_v32 = vpop.f32.mrf.mxu0 }
 0x924   :  { %3256 = vst [vmem:[#allocation5 + $0xc0] sm:$0xff] %v3202_v10  ;;  %v3213_v16 = vadd.f32 %v4014_v32, %v5567_v42 }
 0x925   :  { %v3204_v13 = vpop.f32.mrf.mxu0 }
 0x926   :  { %3259 = vst [vmem:[#allocation5 + $0xd8] sm:$0xff] %v3213_v16  ;;  %v3205_v35 = vadd.f32 %v5567_v42, %v3204_v13 }
 0x928   :  { %3257 = vst [vmem:[#allocation5 + $0xc8] sm:$0xff] %v3205_v35 }
 0x940   :  { %v4017_v7 = vpop.f32.mrf.mxu0 }
 0x941   :  { %v3226_v46 = vadd.f32 %v4017_v7, %v5567_v42 }
 0x942   :  { %v3217_v38 = vpop.f32.mrf.mxu0 }
 0x943   :  { %3262 = vst [vmem:[#allocation5 + $0xf0] sm:$0xff] %v3226_v46  ;;  %v3218_v44 = vadd.f32 %v5567_v42, %v3217_v38 }
 0x944   :  { %v4018_v51 = vpop.f32.mrf.mxu0 }
 0x945   :  { %3260 = vst [vmem:[#allocation5 + $0xe0] sm:$0xff] %v3218_v44  ;;  %v3229_v37 = vadd.f32 %v4018_v51, %v5567_v42 }
 0x946   :  { %v3220_v49 = vpop.f32.mrf.mxu0 }
 0x947   :  { %3263 = vst [vmem:[#allocation5 + $0xf8] sm:$0xff] %v3229_v37  ;;  %v3221_v54 = vadd.f32 %v5567_v42, %v3220_v49 }
 0x949   :  { %3261 = vst [vmem:[#allocation5 + $0xe8] sm:$0xff] %v3221_v54 }
 0x94a   :  { %4767 = shalt.err (!%p4764_p9)
}
 0x94b   :  { %s4787_s6 = smov 128   ;;  %s4788_s7 = smov 8  }
 0x94c   :  { %3275 = dma.vmem_to_hbm [thread:$0]  %s3270_s29, 4096, %s5609_s5, [#allocation4], %s4787_s6, %s4787_s6, %s4788_s7  }
 0x94d   :  { %4778 = dma.done.wait [#allocation4], 4096  }
 0x94e   :  { %4779 = vsyncadd [#allocation4], 4294963200 }
 0x94f   :  { %3279 = vsyncpa [#allocation3], 1 }
 0x950   :  { %3280 = vsyncpa [#allocation4], 1 }

</bundles_post_ra>
